<compile_context>
chip_gen: v7x
topology: tpu7x:2x2x1
jax: 0.10.0
libtpu: 0.0.40
codegen_flags: <defaults>
</compile_context>

<pallas_src>
import functools

import jax
import jax.numpy as jnp
from jax.experimental import pallas as pl
from jax.experimental.pallas import tpu as pltpu


def rcab_kernel(x_ref, masks_ref, w1_ref, b1_ref, w2_ref, b2_ref,
                cw1_ref, cb1_ref, cw2t_ref, cb2_ref,
                o_ref, slab_ref, *, H, W, KH, KW, res_scale):
    Bb = x_ref.shape[0]
    C = x_ref.shape[1]
    M = H * W
    ph, pw = KH // 2, KW // 2

    def build_slab(img):
        # Vertical (row) taps only: slab rows [ki*C:(ki+1)*C] hold the image
        # shifted by (ki-ph) rows; out-of-image rows are zeroed by the
        # pre-broadcast vertical mask.  ki*C offsets are sublane-aligned
        # (C % 8 == 0); lane width M is a multiple of 128 (dense stores).
        for ki in range(KH):
            shift = (ph - ki) * W
            if shift == 0:
                slab_ref[ki * C:(ki + 1) * C, :] = img
            else:
                rolled = pltpu.roll(img, shift % M, axis=1)
                slab_ref[ki * C:(ki + 1) * C, :] = rolled * masks_ref[ki]

    def conv(w_ref, b_ref):
        # Horizontal (column) taps realized on the OUTPUT side:
        #   W_kj @ roll(V, d)    == roll(W_kj @ V, d)
        #   W_kj @ (V * colmask) == (W_kj @ V) * colmask
        # -> KW accumulated K = KH*C matmuls, RHS streamed from slab scratch.
        acc = None
        for kj in range(KW):
            part = jnp.dot(w_ref[kj], slab_ref[...],
                           preferred_element_type=jnp.float32)
            shift = pw - kj
            if shift != 0:
                part = pltpu.roll(part, shift % M, axis=1) * masks_ref[KH + kj]
            acc = part if acc is None else acc + part
        return acc + b_ref[...]

    for b in range(Bb):                                   # static unroll
        xb = x_ref[b]                                      # (C, M)

        # ---- conv1 ('same') + bias + ReLU --------------------------------
        build_slab(xb)
        h1 = jnp.maximum(conv(w1_ref, b1_ref), 0.0)        # (C, M)

        # ---- conv2 + bias --------------------------------------------------
        build_slab(h1)
        t2 = conv(w2_ref, b2_ref)                          # (C, M)

        # ---- channel attention (squeeze-and-excitation), VPU/XLU only -----
        y = jnp.mean(t2, axis=1, keepdims=True)            # (C, 1) global avg pool
        z = jnp.sum(cw1_ref[...] * y, axis=0, keepdims=True) + cb1_ref[...]
        z = jnp.maximum(z, 0.0)                            # (1, Cr)
        s = jnp.sum(cw2t_ref[...] * z, axis=1, keepdims=True) + cb2_ref[...]
        s = jax.nn.sigmoid(s) * res_scale                  # fold res_scale (C, 1)

        # ---- scale + residual ----------------------------------------------
        o_ref[b] = xb + t2 * s


def rcab_pallas(x_nchw, params, res_scale=1.0, images_per_step=None):
    B, C, H, W = x_nchw.shape
    w1 = params["w1"]
    KH, KW = w1.shape[0], w1.shape[1]
    ph, pw = KH // 2, KW // 2
    M = H * W
    Cr = params["cw1"].shape[1]

    # Fail loudly on shapes this kernel's layout assumes.
    assert C % 8 == 0, f"C={C} must be a multiple of 8 (sublane-aligned slab)"
    assert M % 128 == 0, f"H*W={M} must be a multiple of 128 (lane-dense)"

    if images_per_step is None:
        # One fat grid step on single-TC v5e/v6e; two "parallel" steps on
        # dual-TC v7x so both TensorCores get a batch block.
        try:
            dk = jax.devices()[0].device_kind.lower()
        except Exception:  # pragma: no cover
            dk = ""
        images_per_step = B // 2 if ("v7" in dk and B % 2 == 0 and B >= 2) else B
    Bb = max(1, images_per_step)
    assert B % Bb == 0, (B, Bb)
    n_steps = B // Bb

    x3 = x_nchw.reshape(B, C, M).astype(jnp.float32)       # NCHW-flat, no transpose

    def conv_w(w):  # HWIO (kh,kw,ci,co) -> (kw, co, kh*ci), row-tap-major K
        kh, kw, ci, co = w.shape
        return jnp.transpose(w, (1, 3, 0, 2)).reshape(kw, co, kh * ci).astype(jnp.float32)

    w1g = conv_w(params["w1"])                              # (KW, C, KH*C)
    w2g = conv_w(params["w2"])
    b1k = params["b1"].reshape(C, 1).astype(jnp.float32)
    b2k = params["b2"].reshape(C, 1).astype(jnp.float32)
    cw1k = params["cw1"].astype(jnp.float32)                # (C, Cr)
    cb1k = params["cb1"].astype(jnp.float32)                # (1, Cr)
    cw2t = params["cw2"].T.astype(jnp.float32)              # (C, Cr)
    cb2k = params["cb2"].reshape(C, 1).astype(jnp.float32)  # (C, 1)

    # Pre-broadcast 0/1 validity masks (hoisted out of the kernel):
    #   rows [0, KH)       vertical (row) masks for tap ki
    #   rows [KH, KH+KW)   horizontal (column) masks for tap kj
    p = jnp.arange(M, dtype=jnp.int32)
    h_idx, w_idx = p // W, p % W
    vm = [((h_idx + (ki - ph)) >= 0) & ((h_idx + (ki - ph)) < H) for ki in range(KH)]
    hm = [((w_idx + (kj - pw)) >= 0) & ((w_idx + (kj - pw)) < W) for kj in range(KW)]
    masks = jnp.broadcast_to(
        jnp.stack(vm + hm).astype(jnp.float32)[:, None, :], (KH + KW, C, M))
    masks = masks + jnp.zeros_like(masks)                   # materialize once

    kernel = functools.partial(rcab_kernel, H=H, W=W, KH=KH, KW=KW,
                               res_scale=float(res_scale))

    out3 = pl.pallas_call(
        kernel,
        out_shape=jax.ShapeDtypeStruct((B, C, M), jnp.float32),
        grid_spec=pltpu.PrefetchScalarGridSpec(
            num_scalar_prefetch=0,
            grid=(n_steps,),
            in_specs=[
                pl.BlockSpec((Bb, C, M), lambda g: (g, 0, 0)),          # x block
                pl.BlockSpec((KH + KW, C, M), lambda g: (0, 0, 0)),     # masks (const)
                pl.BlockSpec((KW, C, KH * C), lambda g: (0, 0, 0)),     # w1 groups
                pl.BlockSpec((C, 1), lambda g: (0, 0)),                 # b1
                pl.BlockSpec((KW, C, KH * C), lambda g: (0, 0, 0)),     # w2 groups
                pl.BlockSpec((C, 1), lambda g: (0, 0)),                 # b2
                pl.BlockSpec((C, Cr), lambda g: (0, 0)),                # SE down W
                pl.BlockSpec((1, Cr), lambda g: (0, 0)),                # SE down b
                pl.BlockSpec((C, Cr), lambda g: (0, 0)),                # SE up W^T
                pl.BlockSpec((C, 1), lambda g: (0, 0)),                 # SE up b
            ],
            out_specs=pl.BlockSpec((Bb, C, M), lambda g: (g, 0, 0)),
            scratch_shapes=[
                pltpu.VMEM((KH * C, M), jnp.float32),                   # vertical slab
            ],
        ),
        compiler_params=pltpu.CompilerParams(
            dimension_semantics=("parallel",)),
    )(x3, masks, w1g, b1k, w2g, b2k, cw1k, cb1k, cw2t, cb2k)

    return out3.reshape(B, C, H, W)


def init_params(key, n_feat, kernel_size, reduction):
    """Deterministic synthetic parameters (PyTorch-default-style uniform init).

    Conv weights are HWIO (kh, kw, Cin, Cout); SE 1x1 convs are plain
    (Cin, Cout) matrices."""
    Cr = n_feat // reduction
    ks = jax.random.split(key, 8)

    def u(k, shape, fan_in):
        bound = 1.0 / jnp.sqrt(float(fan_in))
        return jax.random.uniform(k, shape, jnp.float32, -bound, bound)

    fan_conv = n_feat * kernel_size * kernel_size
    return {
        "w1": u(ks[0], (kernel_size, kernel_size, n_feat, n_feat), fan_conv),
        "b1": u(ks[1], (1, n_feat), fan_conv),
        "w2": u(ks[2], (kernel_size, kernel_size, n_feat, n_feat), fan_conv),
        "b2": u(ks[3], (1, n_feat), fan_conv),
        "cw1": u(ks[4], (n_feat, Cr), n_feat),
        "cb1": u(ks[5], (1, Cr), n_feat),
        "cw2": u(ks[6], (Cr, n_feat), Cr),
        "cb2": u(ks[7], (1, n_feat), Cr),
    }


def rcab_ref(x_nchw, params, res_scale=1.0):
    """Pure-JAX reference (mirrors the PyTorch RCAB forward)."""
    x = jnp.transpose(x_nchw, (0, 2, 3, 1)).astype(jnp.float32)
    dn = jax.lax.conv_dimension_numbers(x.shape, params["w1"].shape,
                                        ("NHWC", "HWIO", "NHWC"))
    t = jax.lax.conv_general_dilated(x, params["w1"], (1, 1), "SAME",
                                     dimension_numbers=dn) + params["b1"][0]
    t = jnp.maximum(t, 0.0)
    t = jax.lax.conv_general_dilated(t, params["w2"], (1, 1), "SAME",
                                     dimension_numbers=dn) + params["b2"][0]
    y = jnp.mean(t, axis=(1, 2))                              # (B, C)
    z = jnp.maximum(y @ params["cw1"] + params["cb1"], 0.0)
    s = jax.nn.sigmoid(z @ params["cw2"] + params["cb2"])
    res = t * s[:, None, None, :]
    out = x + res * res_scale
    return jnp.transpose(out, (0, 3, 1, 2))


if __name__ == "__main__":
    key = jax.random.PRNGKey(0)
    kp, kx = jax.random.split(key)

    B, C, H, W = 2, 64, 16, 16          # n_feat=64, spatial 16x16, batch 2
    kernel_size, reduction = 3, 16
    res_scale = 1.0

    params = init_params(kp, C, kernel_size, reduction)
    x = jax.random.normal(kx, (B, C, H, W), jnp.float32)      # NCHW like PyTorch

    out = rcab_pallas(x, params, res_scale=res_scale)
    out = jax.block_until_ready(out)

    ref = rcab_ref(x, params, res_scale=res_scale)
    max_err = float(jnp.max(jnp.abs(out - ref)))
    assert out.shape == x.shape, (out.shape, x.shape)
    assert max_err < 1e-3, f"max abs err {max_err}"
    print("KERNEL_OK")
</pallas_src>

<mosaic_0001>
module attributes {stable_mosaic.version = 11 : i64} {
  func.func @rcab_kernel(%arg0: i32, %arg1: memref<2x64x256xf32, #tpu.memory_space<vmem>>, %arg2: memref<6x64x256xf32, #tpu.memory_space<vmem>>, %arg3: memref<3x64x192xf32, #tpu.memory_space<vmem>>, %arg4: memref<64x1xf32, #tpu.memory_space<vmem>>, %arg5: memref<3x64x192xf32, #tpu.memory_space<vmem>>, %arg6: memref<64x1xf32, #tpu.memory_space<vmem>>, %arg7: memref<64x4xf32, #tpu.memory_space<vmem>>, %arg8: memref<1x4xf32, #tpu.memory_space<vmem>>, %arg9: memref<64x4xf32, #tpu.memory_space<vmem>>, %arg10: memref<64x1xf32, #tpu.memory_space<vmem>>, %arg11: memref<2x64x256xf32, #tpu.memory_space<vmem>>, %arg12: memref<192x256xf32, #tpu.memory_space<vmem>>) attributes {dimension_semantics = [#tpu.dimension_semantics<parallel>], iteration_bounds = array<i64: 1>, scalar_prefetch = 0 : i64, scratch_operands = 1 : i64, tpu.core_type = #tpu.core_type<tc>, window_params = [{transform_indices = @transform_0, window_bounds = array<i64: 2, 64, 256>}, {pipeline_mode = #tpu.pipeline_mode<synchronous>, transform_indices = @transform_1, window_bounds = array<i64: 6, 64, 256>}, {pipeline_mode = #tpu.pipeline_mode<synchronous>, transform_indices = @transform_2, window_bounds = array<i64: 3, 64, 192>}, {pipeline_mode = #tpu.pipeline_mode<synchronous>, transform_indices = @transform_3, window_bounds = array<i64: 64, 1>}, {pipeline_mode = #tpu.pipeline_mode<synchronous>, transform_indices = @transform_4, window_bounds = array<i64: 3, 64, 192>}, {pipeline_mode = #tpu.pipeline_mode<synchronous>, transform_indices = @transform_5, window_bounds = array<i64: 64, 1>}, {pipeline_mode = #tpu.pipeline_mode<synchronous>, transform_indices = @transform_6, window_bounds = array<i64: 64, 4>}, {pipeline_mode = #tpu.pipeline_mode<synchronous>, transform_indices = @transform_7, window_bounds = array<i64: 1, 4>}, {pipeline_mode = #tpu.pipeline_mode<synchronous>, transform_indices = @transform_8, window_bounds = array<i64: 64, 4>}, {pipeline_mode = #tpu.pipeline_mode<synchronous>, transform_indices = @transform_9, window_bounds = array<i64: 64, 1>}, {transform_indices = @transform_10, window_bounds = array<i64: 2, 64, 256>}]} {
    %c0 = arith.constant 0 : index
    %c0_0 = arith.constant 0 : index
    %c0_1 = arith.constant 0 : index
    %0 = vector.load %arg1[%c0, %c0_0, %c0_1] : memref<2x64x256xf32, #tpu.memory_space<vmem>>, vector<1x64x256xf32>
    %1 = vector.shape_cast %0 : vector<1x64x256xf32> to vector<64x256xf32>
    %c16_i32 = arith.constant 16 : i32
    %2 = tpu.dynamic_rotate %1 by %c16_i32 dim 1 : vector<64x256xf32>, i32 -> vector<64x256xf32>
    %c0_2 = arith.constant 0 : index
    %c0_3 = arith.constant 0 : index
    %c0_4 = arith.constant 0 : index
    %3 = vector.load %arg2[%c0_2, %c0_3, %c0_4] : memref<6x64x256xf32, #tpu.memory_space<vmem>>, vector<1x64x256xf32>
    %4 = vector.shape_cast %3 : vector<1x64x256xf32> to vector<64x256xf32>
    %5 = arith.mulf %2, %4 : vector<64x256xf32>
    %c0_5 = arith.constant 0 : index
    %c0_6 = arith.constant 0 : index
    %6 = vector.load %arg12[%c0_5, %c0_6] : memref<192x256xf32, #tpu.memory_space<vmem>>, vector<64x256xf32>
    tpu.vector_store %arg12[%c0_5, %c0_6], %5 {strides = array<i32>} : memref<192x256xf32, #tpu.memory_space<vmem>>, vector<64x256xf32>,
    %c64 = arith.constant 64 : index
    %c0_7 = arith.constant 0 : index
    %7 = vector.load %arg12[%c64, %c0_7] : memref<192x256xf32, #tpu.memory_space<vmem>>, vector<64x256xf32>
    tpu.vector_store %arg12[%c64, %c0_7], %1 {strides = array<i32>} : memref<192x256xf32, #tpu.memory_space<vmem>>, vector<64x256xf32>,
    %c240_i32 = arith.constant 240 : i32
    %8 = tpu.dynamic_rotate %1 by %c240_i32 dim 1 : vector<64x256xf32>, i32 -> vector<64x256xf32>
    %c2 = arith.constant 2 : index
    %c0_8 = arith.constant 0 : index
    %c0_9 = arith.constant 0 : index
    %9 = vector.load %arg2[%c2, %c0_8, %c0_9] : memref<6x64x256xf32, #tpu.memory_space<vmem>>, vector<1x64x256xf32>
    %10 = vector.shape_cast %9 : vector<1x64x256xf32> to vector<64x256xf32>
    %11 = arith.mulf %8, %10 : vector<64x256xf32>
    %c128 = arith.constant 128 : index
    %c0_10 = arith.constant 0 : index
    %12 = vector.load %arg12[%c128, %c0_10] : memref<192x256xf32, #tpu.memory_space<vmem>>, vector<64x256xf32>
    tpu.vector_store %arg12[%c128, %c0_10], %11 {strides = array<i32>} : memref<192x256xf32, #tpu.memory_space<vmem>>, vector<64x256xf32>,
    %c0_11 = arith.constant 0 : index
    %c0_12 = arith.constant 0 : index
    %c0_13 = arith.constant 0 : index
    %13 = vector.load %arg3[%c0_11, %c0_12, %c0_13] : memref<3x64x192xf32, #tpu.memory_space<vmem>>, vector<1x64x192xf32>
    %14 = vector.shape_cast %13 : vector<1x64x192xf32> to vector<64x192xf32>
    %c0_14 = arith.constant 0 : index
    %c0_15 = arith.constant 0 : index
    %15 = vector.load %arg12[%c0_14, %c0_15] : memref<192x256xf32, #tpu.memory_space<vmem>>, vector<192x256xf32>
    %cst = arith.constant dense<0.000000e+00> : vector<64x256xf32>
    %16 = tpu.matmul %14, %15, %cst {dimension_numbers = #tpu.dot_dimension_numbers<[1], [0], [0], [1], [0, 0, 1, 1], [], []>} : vector<64x192xf32>, vector<192x256xf32>, vector<64x256xf32> -> vector<64x256xf32>
    %c1_i32 = arith.constant 1 : i32
    %17 = tpu.dynamic_rotate %16 by %c1_i32 dim 1 : vector<64x256xf32>, i32 -> vector<64x256xf32>
    %c3 = arith.constant 3 : index
    %c0_16 = arith.constant 0 : index
    %c0_17 = arith.constant 0 : index
    %18 = vector.load %arg2[%c3, %c0_16, %c0_17] : memref<6x64x256xf32, #tpu.memory_space<vmem>>, vector<1x64x256xf32>
    %19 = vector.shape_cast %18 : vector<1x64x256xf32> to vector<64x256xf32>
    %20 = arith.mulf %17, %19 : vector<64x256xf32>
    %c1 = arith.constant 1 : index
    %c0_18 = arith.constant 0 : index
    %c0_19 = arith.constant 0 : index
    %21 = vector.load %arg3[%c1, %c0_18, %c0_19] : memref<3x64x192xf32, #tpu.memory_space<vmem>>, vector<1x64x192xf32>
    %22 = vector.shape_cast %21 : vector<1x64x192xf32> to vector<64x192xf32>
    %c0_20 = arith.constant 0 : index
    %c0_21 = arith.constant 0 : index
    %23 = vector.load %arg12[%c0_20, %c0_21] : memref<192x256xf32, #tpu.memory_space<vmem>>, vector<192x256xf32>
    %cst_22 = arith.constant dense<0.000000e+00> : vector<64x256xf32>
    %24 = tpu.matmul %22, %23, %cst_22 {dimension_numbers = #tpu.dot_dimension_numbers<[1], [0], [0], [1], [0, 0, 1, 1], [], []>} : vector<64x192xf32>, vector<192x256xf32>, vector<64x256xf32> -> vector<64x256xf32>
    %25 = arith.addf %20, %24 : vector<64x256xf32>
    %c2_23 = arith.constant 2 : index
    %c0_24 = arith.constant 0 : index
    %c0_25 = arith.constant 0 : index
    %26 = vector.load %arg3[%c2_23, %c0_24, %c0_25] : memref<3x64x192xf32, #tpu.memory_space<vmem>>, vector<1x64x192xf32>
    %27 = vector.shape_cast %26 : vector<1x64x192xf32> to vector<64x192xf32>
    %c0_26 = arith.constant 0 : index
    %c0_27 = arith.constant 0 : index
    %28 = vector.load %arg12[%c0_26, %c0_27] : memref<192x256xf32, #tpu.memory_space<vmem>>, vector<192x256xf32>
    %cst_28 = arith.constant dense<0.000000e+00> : vector<64x256xf32>
    %29 = tpu.matmul %27, %28, %cst_28 {dimension_numbers = #tpu.dot_dimension_numbers<[1], [0], [0], [1], [0, 0, 1, 1], [], []>} : vector<64x192xf32>, vector<192x256xf32>, vector<64x256xf32> -> vector<64x256xf32>
    %c255_i32 = arith.constant 255 : i32
    %30 = tpu.dynamic_rotate %29 by %c255_i32 dim 1 : vector<64x256xf32>, i32 -> vector<64x256xf32>
    %c5 = arith.constant 5 : index
    %c0_29 = arith.constant 0 : index
    %c0_30 = arith.constant 0 : index
    %31 = vector.load %arg2[%c5, %c0_29, %c0_30] : memref<6x64x256xf32, #tpu.memory_space<vmem>>, vector<1x64x256xf32>
    %32 = vector.shape_cast %31 : vector<1x64x256xf32> to vector<64x256xf32>
    %33 = arith.mulf %30, %32 : vector<64x256xf32>
    %34 = arith.addf %25, %33 : vector<64x256xf32>
    %c0_31 = arith.constant 0 : index
    %c0_32 = arith.constant 0 : index
    %35 = vector.load %arg4[%c0_31, %c0_32] : memref<64x1xf32, #tpu.memory_space<vmem>>, vector<64x1xf32>
    %36 = vector.broadcast %35 : vector<64x1xf32> to vector<64x256xf32>
    %37 = arith.addf %34, %36 : vector<64x256xf32>
    %cst_33 = arith.constant 0.000000e+00 : f32
    %38 = vector.broadcast %cst_33 : f32 to vector<64x256xf32>
    %39 = arith.maximumf %37, %38 : vector<64x256xf32>
    %c16_i32_34 = arith.constant 16 : i32
    %40 = tpu.dynamic_rotate %39 by %c16_i32_34 dim 1 : vector<64x256xf32>, i32 -> vector<64x256xf32>
    %c0_35 = arith.constant 0 : index
    %c0_36 = arith.constant 0 : index
    %c0_37 = arith.constant 0 : index
    %41 = vector.load %arg2[%c0_35, %c0_36, %c0_37] : memref<6x64x256xf32, #tpu.memory_space<vmem>>, vector<1x64x256xf32>
    %42 = vector.shape_cast %41 : vector<1x64x256xf32> to vector<64x256xf32>
    %43 = arith.mulf %40, %42 : vector<64x256xf32>
    %c0_38 = arith.constant 0 : index
    %c0_39 = arith.constant 0 : index
    %44 = vector.load %arg12[%c0_38, %c0_39] : memref<192x256xf32, #tpu.memory_space<vmem>>, vector<64x256xf32>
    tpu.vector_store %arg12[%c0_38, %c0_39], %43 {strides = array<i32>} : memref<192x256xf32, #tpu.memory_space<vmem>>, vector<64x256xf32>,
    %c64_40 = arith.constant 64 : index
    %c0_41 = arith.constant 0 : index
    %45 = vector.load %arg12[%c64_40, %c0_41] : memref<192x256xf32, #tpu.memory_space<vmem>>, vector<64x256xf32>
    tpu.vector_store %arg12[%c64_40, %c0_41], %39 {strides = array<i32>} : memref<192x256xf32, #tpu.memory_space<vmem>>, vector<64x256xf32>,
    %c240_i32_42 = arith.constant 240 : i32
    %46 = tpu.dynamic_rotate %39 by %c240_i32_42 dim 1 : vector<64x256xf32>, i32 -> vector<64x256xf32>
    %c2_43 = arith.constant 2 : index
    %c0_44 = arith.constant 0 : index
    %c0_45 = arith.constant 0 : index
    %47 = vector.load %arg2[%c2_43, %c0_44, %c0_45] : memref<6x64x256xf32, #tpu.memory_space<vmem>>, vector<1x64x256xf32>
    %48 = vector.shape_cast %47 : vector<1x64x256xf32> to vector<64x256xf32>
    %49 = arith.mulf %46, %48 : vector<64x256xf32>
    %c128_46 = arith.constant 128 : index
    %c0_47 = arith.constant 0 : index
    %50 = vector.load %arg12[%c128_46, %c0_47] : memref<192x256xf32, #tpu.memory_space<vmem>>, vector<64x256xf32>
    tpu.vector_store %arg12[%c128_46, %c0_47], %49 {strides = array<i32>} : memref<192x256xf32, #tpu.memory_space<vmem>>, vector<64x256xf32>,
    %c0_48 = arith.constant 0 : index
    %c0_49 = arith.constant 0 : index
    %c0_50 = arith.constant 0 : index
    %51 = vector.load %arg5[%c0_48, %c0_49, %c0_50] : memref<3x64x192xf32, #tpu.memory_space<vmem>>, vector<1x64x192xf32>
    %52 = vector.shape_cast %51 : vector<1x64x192xf32> to vector<64x192xf32>
    %c0_51 = arith.constant 0 : index
    %c0_52 = arith.constant 0 : index
    %53 = vector.load %arg12[%c0_51, %c0_52] : memref<192x256xf32, #tpu.memory_space<vmem>>, vector<192x256xf32>
    %cst_53 = arith.constant dense<0.000000e+00> : vector<64x256xf32>
    %54 = tpu.matmul %52, %53, %cst_53 {dimension_numbers = #tpu.dot_dimension_numbers<[1], [0], [0], [1], [0, 0, 1, 1], [], []>} : vector<64x192xf32>, vector<192x256xf32>, vector<64x256xf32> -> vector<64x256xf32>
    %c1_i32_54 = arith.constant 1 : i32
    %55 = tpu.dynamic_rotate %54 by %c1_i32_54 dim 1 : vector<64x256xf32>, i32 -> vector<64x256xf32>
    %c3_55 = arith.constant 3 : index
    %c0_56 = arith.constant 0 : index
    %c0_57 = arith.constant 0 : index
    %56 = vector.load %arg2[%c3_55, %c0_56, %c0_57] : memref<6x64x256xf32, #tpu.memory_space<vmem>>, vector<1x64x256xf32>
    %57 = vector.shape_cast %56 : vector<1x64x256xf32> to vector<64x256xf32>
    %58 = arith.mulf %55, %57 : vector<64x256xf32>
    %c1_58 = arith.constant 1 : index
    %c0_59 = arith.constant 0 : index
    %c0_60 = arith.constant 0 : index
    %59 = vector.load %arg5[%c1_58, %c0_59, %c0_60] : memref<3x64x192xf32, #tpu.memory_space<vmem>>, vector<1x64x192xf32>
    %60 = vector.shape_cast %59 : vector<1x64x192xf32> to vector<64x192xf32>
    %c0_61 = arith.constant 0 : index
    %c0_62 = arith.constant 0 : index
    %61 = vector.load %arg12[%c0_61, %c0_62] : memref<192x256xf32, #tpu.memory_space<vmem>>, vector<192x256xf32>
    %cst_63 = arith.constant dense<0.000000e+00> : vector<64x256xf32>
    %62 = tpu.matmul %60, %61, %cst_63 {dimension_numbers = #tpu.dot_dimension_numbers<[1], [0], [0], [1], [0, 0, 1, 1], [], []>} : vector<64x192xf32>, vector<192x256xf32>, vector<64x256xf32> -> vector<64x256xf32>
    %63 = arith.addf %58, %62 : vector<64x256xf32>
    %c2_64 = arith.constant 2 : index
    %c0_65 = arith.constant 0 : index
    %c0_66 = arith.constant 0 : index
    %64 = vector.load %arg5[%c2_64, %c0_65, %c0_66] : memref<3x64x192xf32, #tpu.memory_space<vmem>>, vector<1x64x192xf32>
    %65 = vector.shape_cast %64 : vector<1x64x192xf32> to vector<64x192xf32>
    %c0_67 = arith.constant 0 : index
    %c0_68 = arith.constant 0 : index
    %66 = vector.load %arg12[%c0_67, %c0_68] : memref<192x256xf32, #tpu.memory_space<vmem>>, vector<192x256xf32>
    %cst_69 = arith.constant dense<0.000000e+00> : vector<64x256xf32>
    %67 = tpu.matmul %65, %66, %cst_69 {dimension_numbers = #tpu.dot_dimension_numbers<[1], [0], [0], [1], [0, 0, 1, 1], [], []>} : vector<64x192xf32>, vector<192x256xf32>, vector<64x256xf32> -> vector<64x256xf32>
    %c255_i32_70 = arith.constant 255 : i32
    %68 = tpu.dynamic_rotate %67 by %c255_i32_70 dim 1 : vector<64x256xf32>, i32 -> vector<64x256xf32>
    %c5_71 = arith.constant 5 : index
    %c0_72 = arith.constant 0 : index
    %c0_73 = arith.constant 0 : index
    %69 = vector.load %arg2[%c5_71, %c0_72, %c0_73] : memref<6x64x256xf32, #tpu.memory_space<vmem>>, vector<1x64x256xf32>
    %70 = vector.shape_cast %69 : vector<1x64x256xf32> to vector<64x256xf32>
    %71 = arith.mulf %68, %70 : vector<64x256xf32>
    %72 = arith.addf %63, %71 : vector<64x256xf32>
    %c0_74 = arith.constant 0 : index
    %c0_75 = arith.constant 0 : index
    %73 = vector.load %arg6[%c0_74, %c0_75] : memref<64x1xf32, #tpu.memory_space<vmem>>, vector<64x1xf32>
    %74 = vector.broadcast %73 : vector<64x1xf32> to vector<64x256xf32>
    %75 = arith.addf %72, %74 : vector<64x256xf32>
    %cst_76 = arith.constant dense<0.000000e+00> : vector<64xf32>
    %76 = vector.multi_reduction <add>, %75, %cst_76 [1] : vector<64x256xf32> to vector<64xf32>
    %77 = vector.shape_cast %76 : vector<64xf32> to vector<64x1xf32>
    %cst_77 = arith.constant 2.560000e+02 : f32
    %78 = vector.broadcast %cst_77 : f32 to vector<64x1xf32>
    %79 = arith.divf %77, %78 : vector<64x1xf32>
    %c0_78 = arith.constant 0 : index
    %c0_79 = arith.constant 0 : index
    %80 = vector.load %arg7[%c0_78, %c0_79] : memref<64x4xf32, #tpu.memory_space<vmem>>, vector<64x4xf32>
    %81 = vector.broadcast %79 : vector<64x1xf32> to vector<64x4xf32>
    %82 = arith.mulf %80, %81 : vector<64x4xf32>
    %cst_80 = arith.constant dense<0.000000e+00> : vector<4xf32>
    %83 = vector.multi_reduction <add>, %82, %cst_80 [0] : vector<64x4xf32> to vector<4xf32>
    %84 = vector.shape_cast %83 : vector<4xf32> to vector<1x4xf32>
    %c0_81 = arith.constant 0 : index
    %c0_82 = arith.constant 0 : index
    %85 = vector.load %arg8[%c0_81, %c0_82] : memref<1x4xf32, #tpu.memory_space<vmem>>, vector<1x4xf32>
    %86 = arith.addf %84, %85 : vector<1x4xf32>
    %cst_83 = arith.constant 0.000000e+00 : f32
    %87 = vector.broadcast %cst_83 : f32 to vector<1x4xf32>
    %88 = arith.maximumf %86, %87 : vector<1x4xf32>
    %c0_84 = arith.constant 0 : index
    %c0_85 = arith.constant 0 : index
    %89 = vector.load %arg9[%c0_84, %c0_85] : memref<64x4xf32, #tpu.memory_space<vmem>>, vector<64x4xf32>
    %90 = vector.broadcast %88 : vector<1x4xf32> to vector<64x4xf32>
    %91 = arith.mulf %89, %90 : vector<64x4xf32>
    %cst_86 = arith.constant dense<0.000000e+00> : vector<64xf32>
    %92 = vector.multi_reduction <add>, %91, %cst_86 [1] : vector<64x4xf32> to vector<64xf32>
    %93 = vector.shape_cast %92 : vector<64xf32> to vector<64x1xf32>
    %c0_87 = arith.constant 0 : index
    %c0_88 = arith.constant 0 : index
    %94 = vector.load %arg10[%c0_87, %c0_88] : memref<64x1xf32, #tpu.memory_space<vmem>>, vector<64x1xf32>
    %95 = arith.addf %93, %94 : vector<64x1xf32>
    %96 = arith.negf %95 : vector<64x1xf32>
    %97 = math.exp %96 : vector<64x1xf32>
    %cst_89 = arith.constant 1.000000e+00 : f32
    %98 = vector.broadcast %cst_89 : f32 to vector<64x1xf32>
    %99 = arith.addf %98, %97 : vector<64x1xf32>
    %100 = arith.divf %98, %99 : vector<64x1xf32>
    %cst_90 = arith.constant 1.000000e+00 : f32
    %101 = vector.broadcast %cst_90 : f32 to vector<64x1xf32>
    %102 = arith.mulf %100, %101 : vector<64x1xf32>
    %103 = vector.broadcast %102 : vector<64x1xf32> to vector<64x256xf32>
    %104 = arith.mulf %75, %103 : vector<64x256xf32>
    %105 = arith.addf %1, %104 : vector<64x256xf32>
    %c0_91 = arith.constant 0 : index
    %c0_92 = arith.constant 0 : index
    %c0_93 = arith.constant 0 : index
    %106 = vector.load %arg11[%c0_91, %c0_92, %c0_93] : memref<2x64x256xf32, #tpu.memory_space<vmem>>, vector<1x64x256xf32>
    %107 = vector.shape_cast %106 : vector<1x64x256xf32> to vector<64x256xf32>
    %108 = vector.shape_cast %105 : vector<64x256xf32> to vector<1x64x256xf32>
    tpu.vector_store %arg11[%c0_91, %c0_92, %c0_93], %108 {strides = array<i32>} : memref<2x64x256xf32, #tpu.memory_space<vmem>>, vector<1x64x256xf32>,
    %c1_94 = arith.constant 1 : index
    %c0_95 = arith.constant 0 : index
    %c0_96 = arith.constant 0 : index
    %109 = vector.load %arg1[%c1_94, %c0_95, %c0_96] : memref<2x64x256xf32, #tpu.memory_space<vmem>>, vector<1x64x256xf32>
    %110 = vector.shape_cast %109 : vector<1x64x256xf32> to vector<64x256xf32>
    %c16_i32_97 = arith.constant 16 : i32
    %111 = tpu.dynamic_rotate %110 by %c16_i32_97 dim 1 : vector<64x256xf32>, i32 -> vector<64x256xf32>
    %c0_98 = arith.constant 0 : index
    %c0_99 = arith.constant 0 : index
    %c0_100 = arith.constant 0 : index
    %112 = vector.load %arg2[%c0_98, %c0_99, %c0_100] : memref<6x64x256xf32, #tpu.memory_space<vmem>>, vector<1x64x256xf32>
    %113 = vector.shape_cast %112 : vector<1x64x256xf32> to vector<64x256xf32>
    %114 = arith.mulf %111, %113 : vector<64x256xf32>
    %c0_101 = arith.constant 0 : index
    %c0_102 = arith.constant 0 : index
    %115 = vector.load %arg12[%c0_101, %c0_102] : memref<192x256xf32, #tpu.memory_space<vmem>>, vector<64x256xf32>
    tpu.vector_store %arg12[%c0_101, %c0_102], %114 {strides = array<i32>} : memref<192x256xf32, #tpu.memory_space<vmem>>, vector<64x256xf32>,
    %c64_103 = arith.constant 64 : index
    %c0_104 = arith.constant 0 : index
    %116 = vector.load %arg12[%c64_103, %c0_104] : memref<192x256xf32, #tpu.memory_space<vmem>>, vector<64x256xf32>
    tpu.vector_store %arg12[%c64_103, %c0_104], %110 {strides = array<i32>} : memref<192x256xf32, #tpu.memory_space<vmem>>, vector<64x256xf32>,
    %c240_i32_105 = arith.constant 240 : i32
    %117 = tpu.dynamic_rotate %110 by %c240_i32_105 dim 1 : vector<64x256xf32>, i32 -> vector<64x256xf32>
    %c2_106 = arith.constant 2 : index
    %c0_107 = arith.constant 0 : index
    %c0_108 = arith.constant 0 : index
    %118 = vector.load %arg2[%c2_106, %c0_107, %c0_108] : memref<6x64x256xf32, #tpu.memory_space<vmem>>, vector<1x64x256xf32>
    %119 = vector.shape_cast %118 : vector<1x64x256xf32> to vector<64x256xf32>
    %120 = arith.mulf %117, %119 : vector<64x256xf32>
    %c128_109 = arith.constant 128 : index
    %c0_110 = arith.constant 0 : index
    %121 = vector.load %arg12[%c128_109, %c0_110] : memref<192x256xf32, #tpu.memory_space<vmem>>, vector<64x256xf32>
    tpu.vector_store %arg12[%c128_109, %c0_110], %120 {strides = array<i32>} : memref<192x256xf32, #tpu.memory_space<vmem>>, vector<64x256xf32>,
    %c0_111 = arith.constant 0 : index
    %c0_112 = arith.constant 0 : index
    %c0_113 = arith.constant 0 : index
    %122 = vector.load %arg3[%c0_111, %c0_112, %c0_113] : memref<3x64x192xf32, #tpu.memory_space<vmem>>, vector<1x64x192xf32>
    %123 = vector.shape_cast %122 : vector<1x64x192xf32> to vector<64x192xf32>
    %c0_114 = arith.constant 0 : index
    %c0_115 = arith.constant 0 : index
    %124 = vector.load %arg12[%c0_114, %c0_115] : memref<192x256xf32, #tpu.memory_space<vmem>>, vector<192x256xf32>
    %cst_116 = arith.constant dense<0.000000e+00> : vector<64x256xf32>
    %125 = tpu.matmul %123, %124, %cst_116 {dimension_numbers = #tpu.dot_dimension_numbers<[1], [0], [0], [1], [0, 0, 1, 1], [], []>} : vector<64x192xf32>, vector<192x256xf32>, vector<64x256xf32> -> vector<64x256xf32>
    %c1_i32_117 = arith.constant 1 : i32
    %126 = tpu.dynamic_rotate %125 by %c1_i32_117 dim 1 : vector<64x256xf32>, i32 -> vector<64x256xf32>
    %c3_118 = arith.constant 3 : index
    %c0_119 = arith.constant 0 : index
    %c0_120 = arith.constant 0 : index
    %127 = vector.load %arg2[%c3_118, %c0_119, %c0_120] : memref<6x64x256xf32, #tpu.memory_space<vmem>>, vector<1x64x256xf32>
    %128 = vector.shape_cast %127 : vector<1x64x256xf32> to vector<64x256xf32>
    %129 = arith.mulf %126, %128 : vector<64x256xf32>
    %c1_121 = arith.constant 1 : index
    %c0_122 = arith.constant 0 : index
    %c0_123 = arith.constant 0 : index
    %130 = vector.load %arg3[%c1_121, %c0_122, %c0_123] : memref<3x64x192xf32, #tpu.memory_space<vmem>>, vector<1x64x192xf32>
    %131 = vector.shape_cast %130 : vector<1x64x192xf32> to vector<64x192xf32>
    %c0_124 = arith.constant 0 : index
    %c0_125 = arith.constant 0 : index
    %132 = vector.load %arg12[%c0_124, %c0_125] : memref<192x256xf32, #tpu.memory_space<vmem>>, vector<192x256xf32>
    %cst_126 = arith.constant dense<0.000000e+00> : vector<64x256xf32>
    %133 = tpu.matmul %131, %132, %cst_126 {dimension_numbers = #tpu.dot_dimension_numbers<[1], [0], [0], [1], [0, 0, 1, 1], [], []>} : vector<64x192xf32>, vector<192x256xf32>, vector<64x256xf32> -> vector<64x256xf32>
    %134 = arith.addf %129, %133 : vector<64x256xf32>
    %c2_127 = arith.constant 2 : index
    %c0_128 = arith.constant 0 : index
    %c0_129 = arith.constant 0 : index
    %135 = vector.load %arg3[%c2_127, %c0_128, %c0_129] : memref<3x64x192xf32, #tpu.memory_space<vmem>>, vector<1x64x192xf32>
    %136 = vector.shape_cast %135 : vector<1x64x192xf32> to vector<64x192xf32>
    %c0_130 = arith.constant 0 : index
    %c0_131 = arith.constant 0 : index
    %137 = vector.load %arg12[%c0_130, %c0_131] : memref<192x256xf32, #tpu.memory_space<vmem>>, vector<192x256xf32>
    %cst_132 = arith.constant dense<0.000000e+00> : vector<64x256xf32>
    %138 = tpu.matmul %136, %137, %cst_132 {dimension_numbers = #tpu.dot_dimension_numbers<[1], [0], [0], [1], [0, 0, 1, 1], [], []>} : vector<64x192xf32>, vector<192x256xf32>, vector<64x256xf32> -> vector<64x256xf32>
    %c255_i32_133 = arith.constant 255 : i32
    %139 = tpu.dynamic_rotate %138 by %c255_i32_133 dim 1 : vector<64x256xf32>, i32 -> vector<64x256xf32>
    %c5_134 = arith.constant 5 : index
    %c0_135 = arith.constant 0 : index
    %c0_136 = arith.constant 0 : index
    %140 = vector.load %arg2[%c5_134, %c0_135, %c0_136] : memref<6x64x256xf32, #tpu.memory_space<vmem>>, vector<1x64x256xf32>
    %141 = vector.shape_cast %140 : vector<1x64x256xf32> to vector<64x256xf32>
    %142 = arith.mulf %139, %141 : vector<64x256xf32>
    %143 = arith.addf %134, %142 : vector<64x256xf32>
    %c0_137 = arith.constant 0 : index
    %c0_138 = arith.constant 0 : index
    %144 = vector.load %arg4[%c0_137, %c0_138] : memref<64x1xf32, #tpu.memory_space<vmem>>, vector<64x1xf32>
    %145 = vector.broadcast %144 : vector<64x1xf32> to vector<64x256xf32>
    %146 = arith.addf %143, %145 : vector<64x256xf32>
    %cst_139 = arith.constant 0.000000e+00 : f32
    %147 = vector.broadcast %cst_139 : f32 to vector<64x256xf32>
    %148 = arith.maximumf %146, %147 : vector<64x256xf32>
    %c16_i32_140 = arith.constant 16 : i32
    %149 = tpu.dynamic_rotate %148 by %c16_i32_140 dim 1 : vector<64x256xf32>, i32 -> vector<64x256xf32>
    %c0_141 = arith.constant 0 : index
    %c0_142 = arith.constant 0 : index
    %c0_143 = arith.constant 0 : index
    %150 = vector.load %arg2[%c0_141, %c0_142, %c0_143] : memref<6x64x256xf32, #tpu.memory_space<vmem>>, vector<1x64x256xf32>
    %151 = vector.shape_cast %150 : vector<1x64x256xf32> to vector<64x256xf32>
    %152 = arith.mulf %149, %151 : vector<64x256xf32>
    %c0_144 = arith.constant 0 : index
    %c0_145 = arith.constant 0 : index
    %153 = vector.load %arg12[%c0_144, %c0_145] : memref<192x256xf32, #tpu.memory_space<vmem>>, vector<64x256xf32>
    tpu.vector_store %arg12[%c0_144, %c0_145], %152 {strides = array<i32>} : memref<192x256xf32, #tpu.memory_space<vmem>>, vector<64x256xf32>,
    %c64_146 = arith.constant 64 : index
    %c0_147 = arith.constant 0 : index
    %154 = vector.load %arg12[%c64_146, %c0_147] : memref<192x256xf32, #tpu.memory_space<vmem>>, vector<64x256xf32>
    tpu.vector_store %arg12[%c64_146, %c0_147], %148 {strides = array<i32>} : memref<192x256xf32, #tpu.memory_space<vmem>>, vector<64x256xf32>,
    %c240_i32_148 = arith.constant 240 : i32
    %155 = tpu.dynamic_rotate %148 by %c240_i32_148 dim 1 : vector<64x256xf32>, i32 -> vector<64x256xf32>
    %c2_149 = arith.constant 2 : index
    %c0_150 = arith.constant 0 : index
    %c0_151 = arith.constant 0 : index
    %156 = vector.load %arg2[%c2_149, %c0_150, %c0_151] : memref<6x64x256xf32, #tpu.memory_space<vmem>>, vector<1x64x256xf32>
    %157 = vector.shape_cast %156 : vector<1x64x256xf32> to vector<64x256xf32>
    %158 = arith.mulf %155, %157 : vector<64x256xf32>
    %c128_152 = arith.constant 128 : index
    %c0_153 = arith.constant 0 : index
    %159 = vector.load %arg12[%c128_152, %c0_153] : memref<192x256xf32, #tpu.memory_space<vmem>>, vector<64x256xf32>
    tpu.vector_store %arg12[%c128_152, %c0_153], %158 {strides = array<i32>} : memref<192x256xf32, #tpu.memory_space<vmem>>, vector<64x256xf32>,
    %c0_154 = arith.constant 0 : index
    %c0_155 = arith.constant 0 : index
    %c0_156 = arith.constant 0 : index
    %160 = vector.load %arg5[%c0_154, %c0_155, %c0_156] : memref<3x64x192xf32, #tpu.memory_space<vmem>>, vector<1x64x192xf32>
    %161 = vector.shape_cast %160 : vector<1x64x192xf32> to vector<64x192xf32>
    %c0_157 = arith.constant 0 : index
    %c0_158 = arith.constant 0 : index
    %162 = vector.load %arg12[%c0_157, %c0_158] : memref<192x256xf32, #tpu.memory_space<vmem>>, vector<192x256xf32>
    %cst_159 = arith.constant dense<0.000000e+00> : vector<64x256xf32>
    %163 = tpu.matmul %161, %162, %cst_159 {dimension_numbers = #tpu.dot_dimension_numbers<[1], [0], [0], [1], [0, 0, 1, 1], [], []>} : vector<64x192xf32>, vector<192x256xf32>, vector<64x256xf32> -> vector<64x256xf32>
    %c1_i32_160 = arith.constant 1 : i32
    %164 = tpu.dynamic_rotate %163 by %c1_i32_160 dim 1 : vector<64x256xf32>, i32 -> vector<64x256xf32>
    %c3_161 = arith.constant 3 : index
    %c0_162 = arith.constant 0 : index
    %c0_163 = arith.constant 0 : index
    %165 = vector.load %arg2[%c3_161, %c0_162, %c0_163] : memref<6x64x256xf32, #tpu.memory_space<vmem>>, vector<1x64x256xf32>
    %166 = vector.shape_cast %165 : vector<1x64x256xf32> to vector<64x256xf32>
    %167 = arith.mulf %164, %166 : vector<64x256xf32>
    %c1_164 = arith.constant 1 : index
    %c0_165 = arith.constant 0 : index
    %c0_166 = arith.constant 0 : index
    %168 = vector.load %arg5[%c1_164, %c0_165, %c0_166] : memref<3x64x192xf32, #tpu.memory_space<vmem>>, vector<1x64x192xf32>
    %169 = vector.shape_cast %168 : vector<1x64x192xf32> to vector<64x192xf32>
    %c0_167 = arith.constant 0 : index
    %c0_168 = arith.constant 0 : index
    %170 = vector.load %arg12[%c0_167, %c0_168] : memref<192x256xf32, #tpu.memory_space<vmem>>, vector<192x256xf32>
    %cst_169 = arith.constant dense<0.000000e+00> : vector<64x256xf32>
    %171 = tpu.matmul %169, %170, %cst_169 {dimension_numbers = #tpu.dot_dimension_numbers<[1], [0], [0], [1], [0, 0, 1, 1], [], []>} : vector<64x192xf32>, vector<192x256xf32>, vector<64x256xf32> -> vector<64x256xf32>
    %172 = arith.addf %167, %171 : vector<64x256xf32>
    %c2_170 = arith.constant 2 : index
    %c0_171 = arith.constant 0 : index
    %c0_172 = arith.constant 0 : index
    %173 = vector.load %arg5[%c2_170, %c0_171, %c0_172] : memref<3x64x192xf32, #tpu.memory_space<vmem>>, vector<1x64x192xf32>
    %174 = vector.shape_cast %173 : vector<1x64x192xf32> to vector<64x192xf32>
    %c0_173 = arith.constant 0 : index
    %c0_174 = arith.constant 0 : index
    %175 = vector.load %arg12[%c0_173, %c0_174] : memref<192x256xf32, #tpu.memory_space<vmem>>, vector<192x256xf32>
    %cst_175 = arith.constant dense<0.000000e+00> : vector<64x256xf32>
    %176 = tpu.matmul %174, %175, %cst_175 {dimension_numbers = #tpu.dot_dimension_numbers<[1], [0], [0], [1], [0, 0, 1, 1], [], []>} : vector<64x192xf32>, vector<192x256xf32>, vector<64x256xf32> -> vector<64x256xf32>
    %c255_i32_176 = arith.constant 255 : i32
    %177 = tpu.dynamic_rotate %176 by %c255_i32_176 dim 1 : vector<64x256xf32>, i32 -> vector<64x256xf32>
    %c5_177 = arith.constant 5 : index
    %c0_178 = arith.constant 0 : index
    %c0_179 = arith.constant 0 : index
    %178 = vector.load %arg2[%c5_177, %c0_178, %c0_179] : memref<6x64x256xf32, #tpu.memory_space<vmem>>, vector<1x64x256xf32>
    %179 = vector.shape_cast %178 : vector<1x64x256xf32> to vector<64x256xf32>
    %180 = arith.mulf %177, %179 : vector<64x256xf32>
    %181 = arith.addf %172, %180 : vector<64x256xf32>
    %c0_180 = arith.constant 0 : index
    %c0_181 = arith.constant 0 : index
    %182 = vector.load %arg6[%c0_180, %c0_181] : memref<64x1xf32, #tpu.memory_space<vmem>>, vector<64x1xf32>
    %183 = vector.broadcast %182 : vector<64x1xf32> to vector<64x256xf32>
    %184 = arith.addf %181, %183 : vector<64x256xf32>
    %cst_182 = arith.constant dense<0.000000e+00> : vector<64xf32>
    %185 = vector.multi_reduction <add>, %184, %cst_182 [1] : vector<64x256xf32> to vector<64xf32>
    %186 = vector.shape_cast %185 : vector<64xf32> to vector<64x1xf32>
    %cst_183 = arith.constant 2.560000e+02 : f32
    %187 = vector.broadcast %cst_183 : f32 to vector<64x1xf32>
    %188 = arith.divf %186, %187 : vector<64x1xf32>
    %c0_184 = arith.constant 0 : index
    %c0_185 = arith.constant 0 : index
    %189 = vector.load %arg7[%c0_184, %c0_185] : memref<64x4xf32, #tpu.memory_space<vmem>>, vector<64x4xf32>
    %190 = vector.broadcast %188 : vector<64x1xf32> to vector<64x4xf32>
    %191 = arith.mulf %189, %190 : vector<64x4xf32>
    %cst_186 = arith.constant dense<0.000000e+00> : vector<4xf32>
    %192 = vector.multi_reduction <add>, %191, %cst_186 [0] : vector<64x4xf32> to vector<4xf32>
    %193 = vector.shape_cast %192 : vector<4xf32> to vector<1x4xf32>
    %c0_187 = arith.constant 0 : index
    %c0_188 = arith.constant 0 : index
    %194 = vector.load %arg8[%c0_187, %c0_188] : memref<1x4xf32, #tpu.memory_space<vmem>>, vector<1x4xf32>
    %195 = arith.addf %193, %194 : vector<1x4xf32>
    %cst_189 = arith.constant 0.000000e+00 : f32
    %196 = vector.broadcast %cst_189 : f32 to vector<1x4xf32>
    %197 = arith.maximumf %195, %196 : vector<1x4xf32>
    %c0_190 = arith.constant 0 : index
    %c0_191 = arith.constant 0 : index
    %198 = vector.load %arg9[%c0_190, %c0_191] : memref<64x4xf32, #tpu.memory_space<vmem>>, vector<64x4xf32>
    %199 = vector.broadcast %197 : vector<1x4xf32> to vector<64x4xf32>
    %200 = arith.mulf %198, %199 : vector<64x4xf32>
    %cst_192 = arith.constant dense<0.000000e+00> : vector<64xf32>
    %201 = vector.multi_reduction <add>, %200, %cst_192 [1] : vector<64x4xf32> to vector<64xf32>
    %202 = vector.shape_cast %201 : vector<64xf32> to vector<64x1xf32>
    %c0_193 = arith.constant 0 : index
    %c0_194 = arith.constant 0 : index
    %203 = vector.load %arg10[%c0_193, %c0_194] : memref<64x1xf32, #tpu.memory_space<vmem>>, vector<64x1xf32>
    %204 = arith.addf %202, %203 : vector<64x1xf32>
    %205 = arith.negf %204 : vector<64x1xf32>
    %206 = math.exp %205 : vector<64x1xf32>
    %cst_195 = arith.constant 1.000000e+00 : f32
    %207 = vector.broadcast %cst_195 : f32 to vector<64x1xf32>
    %208 = arith.addf %207, %206 : vector<64x1xf32>
    %209 = arith.divf %207, %208 : vector<64x1xf32>
    %cst_196 = arith.constant 1.000000e+00 : f32
    %210 = vector.broadcast %cst_196 : f32 to vector<64x1xf32>
    %211 = arith.mulf %209, %210 : vector<64x1xf32>
    %212 = vector.broadcast %211 : vector<64x1xf32> to vector<64x256xf32>
    %213 = arith.mulf %184, %212 : vector<64x256xf32>
    %214 = arith.addf %110, %213 : vector<64x256xf32>
    %c1_197 = arith.constant 1 : index
    %c0_198 = arith.constant 0 : index
    %c0_199 = arith.constant 0 : index
    %215 = vector.load %arg11[%c1_197, %c0_198, %c0_199] : memref<2x64x256xf32, #tpu.memory_space<vmem>>, vector<1x64x256xf32>
    %216 = vector.shape_cast %215 : vector<1x64x256xf32> to vector<64x256xf32>
    %217 = vector.shape_cast %214 : vector<64x256xf32> to vector<1x64x256xf32>
    tpu.vector_store %arg11[%c1_197, %c0_198, %c0_199], %217 {strides = array<i32>} : memref<2x64x256xf32, #tpu.memory_space<vmem>>, vector<1x64x256xf32>,
    return
  }
  func.func @transform_0(%arg0: i32) -> (i32, i32, i32) {
    %c0_i32 = arith.constant 0 : i32
    %c0_i32_0 = arith.constant 0 : i32
    %c0_i32_1 = arith.constant 0 : i32
    return %arg0, %c0_i32, %c0_i32_0 : i32, i32, i32
  }
  func.func @transform_1(%arg0: i32) -> (i32, i32, i32) {
    %c0_i32 = arith.constant 0 : i32
    %c0_i32_0 = arith.constant 0 : i32
    %c0_i32_1 = arith.constant 0 : i32
    %c0_i32_2 = arith.constant 0 : i32
    return %c0_i32, %c0_i32_0, %c0_i32_1 : i32, i32, i32
  }
  func.func @transform_2(%arg0: i32) -> (i32, i32, i32) {
    %c0_i32 = arith.constant 0 : i32
    %c0_i32_0 = arith.constant 0 : i32
    %c0_i32_1 = arith.constant 0 : i32
    %c0_i32_2 = arith.constant 0 : i32
    return %c0_i32, %c0_i32_0, %c0_i32_1 : i32, i32, i32
  }
  func.func @transform_3(%arg0: i32) -> (i32, i32) {
    %c0_i32 = arith.constant 0 : i32
    %c0_i32_0 = arith.constant 0 : i32
    %c0_i32_1 = arith.constant 0 : i32
    return %c0_i32, %c0_i32_0 : i32, i32
  }
  func.func @transform_4(%arg0: i32) -> (i32, i32, i32) {
    %c0_i32 = arith.constant 0 : i32
    %c0_i32_0 = arith.constant 0 : i32
    %c0_i32_1 = arith.constant 0 : i32
    %c0_i32_2 = arith.constant 0 : i32
    return %c0_i32, %c0_i32_0, %c0_i32_1 : i32, i32, i32
  }
  func.func @transform_5(%arg0: i32) -> (i32, i32) {
    %c0_i32 = arith.constant 0 : i32
    %c0_i32_0 = arith.constant 0 : i32
    %c0_i32_1 = arith.constant 0 : i32
    return %c0_i32, %c0_i32_0 : i32, i32
  }
  func.func @transform_6(%arg0: i32) -> (i32, i32) {
    %c0_i32 = arith.constant 0 : i32
    %c0_i32_0 = arith.constant 0 : i32
    %c0_i32_1 = arith.constant 0 : i32
    return %c0_i32, %c0_i32_0 : i32, i32
  }
  func.func @transform_7(%arg0: i32) -> (i32, i32) {
    %c0_i32 = arith.constant 0 : i32
    %c0_i32_0 = arith.constant 0 : i32
    %c0_i32_1 = arith.constant 0 : i32
    return %c0_i32, %c0_i32_0 : i32, i32
  }
  func.func @transform_8(%arg0: i32) -> (i32, i32) {
    %c0_i32 = arith.constant 0 : i32
    %c0_i32_0 = arith.constant 0 : i32
    %c0_i32_1 = arith.constant 0 : i32
    return %c0_i32, %c0_i32_0 : i32, i32
  }
  func.func @transform_9(%arg0: i32) -> (i32, i32) {
    %c0_i32 = arith.constant 0 : i32
    %c0_i32_0 = arith.constant 0 : i32
    %c0_i32_1 = arith.constant 0 : i32
    return %c0_i32, %c0_i32_0 : i32, i32
  }
  func.func @transform_10(%arg0: i32) -> (i32, i32, i32) {
    %c0_i32 = arith.constant 0 : i32
    %c0_i32_0 = arith.constant 0 : i32
    %c0_i32_1 = arith.constant 0 : i32
    return %arg0, %c0_i32, %c0_i32_0 : i32, i32, i32
  }
}

</mosaic_0001>

<bundles_post_ra>
// kernel: tpu_custom_call.1
= control target key start
LH: loop header
LB: loop body
LE: loop exit
PB: predicated region body
PF: predicated region fallthrough
CT: control target
= control target key end

     0   :  { %15 = vsyncpa [#allocation4], 0  ;;  %s8633_s0 = inlined_call_operand.vmem [shape: f32[2,64,256], index: 0, kind: input, shape index: {}]   ;;  %s8634_s1 = inlined_call_operand.hbm [shape: f32[6,64,256], index: 1, kind: input, shape index: {}]   ;;  %s8635_s2 = inlined_call_operand.hbm [shape: f32[3,64,192], index: 2, kind: input, shape index: {}]   ;;  %s8636_s3 = inlined_call_operand.vmem [shape: f32[64,1], index: 3, kind: input, shape index: {}]   ;;  %s8637_s4 = inlined_call_operand.hbm [shape: f32[3,64,192], index: 4, kind: input, shape index: {}]   ;;  %s8638_s5 = inlined_call_operand.vmem [shape: f32[64,1], index: 5, kind: input, shape index: {}]   ;;  %s8639_s6 = inlined_call_operand.vmem [shape: f32[64,4], index: 6, kind: input, shape index: {}]   ;;  %s8640_s7 = inlined_call_operand.vmem [shape: f32[1,4], index: 7, kind: input, shape index: {}]   ;;  %s8641_s8 = inlined_call_operand.vmem [shape: f32[64,4], index: 8, kind: input, shape index: {}]   ;;  %s8642_s9 = inlined_call_operand.vmem [shape: f32[64,1], index: 9, kind: input, shape index: {}]   ;;  %s8643_s10 = inlined_call_operand.hbm [shape: f32[2,64,256], index: 10, kind: output, shape index: {}]  }
   0x1   :  { %16 = vsyncpa [#allocation7], 0 }
   0x2   :  { %17 = vsyncpa [#allocation5], 0  ;;  %s5520_s13 = smov [#allocation6]   ;;  %s5521_s15 = smov [#allocation3]  }
   0x3   :  { %s37_s14 = sshll.u32 %s5520_s13, 4  ;;  %s25_s16 = sshll.u32 %s5521_s15, 4  ;;  %s38_s14 = int_to_ptr.vmem [resolvable:$true] %s37_s14  ;;  %s5585_s16 = int_to_ptr.vmem [resolvable:$true] %s25_s16 }
   0x4   :  { %s5426_s19 = scalar_lea.hbm %s8635_s2, 6144 }
   0x5   :  { %p5427_p0 = scmp.ne.s32.totalorder %s8635_s2, %s5426_s19  ;;  %p5430_p1 = scmp.lt.u32.totalorder %s5426_s19, %s8635_s2 }
   0x7   :  { %p5432_p2 = pnand %p5430_p1, %p5427_p0 }
   0x9   :  { %5435 = shalt.err (!%p5432_p2)
}
   0xa   :  { %s5436_s24 = scalar_lea.vmem %s38_s14, 6144  ;;  %p5441_p4 = scmp.lt.s32.totalorder %s38_s14, %s38_s14 }
   0xb   :  { %p5437_p3 = scmp.ne.s32.totalorder %s38_s14, %s5436_s24  ;;  %p5442_p5 = scmp.lt.s32.totalorder %s5436_s24, %s5436_s24 }
   0xd   :  { %p5443_p6 = por %p5442_p5, %p5441_p4 }
   0xf   :  { %p5444_p7 = pnand %p5443_p6, %p5437_p3 }
  0x11   :  { %5447 = shalt.err (!%p5444_p7)
}
  0x12   :  { %s5522_s25 = smov 256   ;;  %s5523_s26 = smov 16  }
  0x13   :  { %43 = dma.hbm_to_vmem [thread:$0]  %s8635_s2, 6144, %s38_s14, [#allocation7], %s5522_s25, %s5522_s25, %s5523_s26  }
  0x14   :  { %s5448_s11 = scalar_lea.hbm %s8634_s1, 12288 }
  0x15   :  { %p5449_p8 = scmp.ne.s32.totalorder %s8634_s1, %s5448_s11  ;;  %p5452_p9 = scmp.lt.u32.totalorder %s5448_s11, %s8634_s1 }
  0x17   :  { %p5454_p10 = pnand %p5452_p9, %p5449_p8 }
  0x19   :  { %5457 = shalt.err (!%p5454_p10)
}
  0x1a   :  { %s5458_s18 = scalar_lea.vmem %s5585_s16, 12288  ;;  %p5463_p12 = scmp.lt.s32.totalorder %s5585_s16, %s5585_s16 }
  0x1b   :  { %p5459_p11 = scmp.ne.s32.totalorder %s5585_s16, %s5458_s18  ;;  %p5464_p13 = scmp.lt.s32.totalorder %s5458_s18, %s5458_s18 }
  0x1d   :  { %p5465_p0 = por %p5464_p13, %p5463_p12 }
  0x1f   :  { %p5466_p1 = pnand %p5465_p0, %p5459_p11 }
  0x21   :  { %5469 = shalt.err (!%p5466_p1)
}
  0x22   :  { %31 = dma.hbm_to_vmem [thread:$0]  %s8634_s1, 12288, %s5585_s16, [#allocation4], %s5522_s25, %s5522_s25, %s5523_s26  }
  0x23   :  { %s5524_s19 = smov [#allocation8]   ;;  %s5470_s23 = scalar_lea.hbm %s8637_s4, 6144 }
  0x24   :  { %s51_s20 = sshll.u32 %s5524_s19, 4  ;;  %p5471_p2 = scmp.ne.s32.totalorder %s8637_s4, %s5470_s23  ;;  %s52_s20 = int_to_ptr.vmem [resolvable:$true] %s51_s20 }
  0x25   :  { %p5474_p3 = scmp.lt.u32.totalorder %s5470_s23, %s8637_s4 }
  0x27   :  { %p5476_p4 = pnand %p5474_p3, %p5471_p2 }
  0x29   :  { %5479 = shalt.err (!%p5476_p4)
}
  0x2a   :  { %s5480_s30 = scalar_lea.vmem %s52_s20, 6144  ;;  %p5485_p6 = scmp.lt.s32.totalorder %s52_s20, %s52_s20 }
  0x2b   :  { %p5481_p5 = scmp.ne.s32.totalorder %s52_s20, %s5480_s30  ;;  %p5486_p7 = scmp.lt.s32.totalorder %s5480_s30, %s5480_s30 }
  0x2d   :  { %p5487_p8 = por %p5486_p7, %p5485_p6 }
  0x2f   :  { %p5488_p9 = pnand %p5487_p8, %p5481_p5 }
  0x31   :  { %5491 = shalt.err (!%p5488_p9)
}
  0x32   :  { %57 = dma.hbm_to_vmem [thread:$0]  %s8637_s4, 6144, %s52_s20, [#allocation7], %s5522_s25, %s5522_s25, %s5523_s26  }
  0x33   :  { %5514 = dma.done.wait [#allocation4], 12288  }
  0x34   :  { %5515 = vsyncadd [#allocation4], 4294955008 }
  0x35   :  { %5516 = dma.done.wait [#allocation7], 12288  }
  0x36   :  { %5517 = vsyncadd [#allocation7], 4294955008  ;;  %v5640_v0 = vld [vmem:[%s8633_s0 + $0x8] sm:$0xff]  ;;  %v5645_v1 = vld [vmem:[%s8633_s0] sm:$0xff]  ;;  %s5525_s21 = smov 112   ;;  %vm370_vm0 = vcmask 523264   ;;  %v8644_v17 = vlaneseq }
  0x37   :  { %109 = vrot.lane.b32.xlu1 %v5640_v0, %s5523_s26  ;;  %93 = vrot.lane.b32.xlu0 %v5645_v1, %s5523_s26  ;;  %v5654_v2 = vld [vmem:[%s8633_s0 + $0x18] sm:$0xff]  ;;  %v5659_v3 = vld [vmem:[%s8633_s0 + $0x10] sm:$0xff]  ;;  %v307_v16 = vld [vmem:[#allocation6 + $0x8] sm:$0xff]  ;;  %s5527_s2 = smov 1   ;;  %s5528_s14 = smov 127   ;;  %vm2114_vm5 = vcmask 31744  }
  0x38   :  { %v5668_v4 = vld [vmem:[%s8633_s0 + $0x30] sm:$0xff]  ;;  %v5673_v5 = vld [vmem:[%s8633_s0 + $0x20] sm:$0xff]  ;;  %v5682_v6 = vld [vmem:[%s8633_s0 + $0x38] sm:$0xff]  ;;  %4597 = vmatprep.mubr.msk.f32.mxu0 %vm370_vm0, %v307_v16  ;;  %v5783_v18 = vand.u32 127, %v8644_v17  ;;  %v5526_v16 = vmov 0   ;;  %s5529_s30 = smov [#allocation9]  }
  0x39   :  { %v5687_v7 = vld [vmem:[%s8633_s0 + $0x28] sm:$0xff]  ;;  %v5696_v8 = vld [vmem:[%s8633_s0 + $0x50] sm:$0xff]  ;;  %v5701_v9 = vld [vmem:[%s8633_s0 + $0x40] sm:$0xff]  ;;  %5311 = vset.pattern.permute.xlu0 %v5526_v16  ;;  %5312 = vset.pattern.permute.xlu1 %v5526_v16  ;;  %s4584_s1 = sshll.u32 %s5529_s30, 4  ;;  %s4585_s1 = int_to_ptr.vmem [resolvable:$true] %s4584_s1 }
  0x3a   :  { %v5710_v10 = vld [vmem:[%s8633_s0 + $0x58] sm:$0xff]  ;;  %v5715_v11 = vld [vmem:[%s8633_s0 + $0x48] sm:$0xff]  ;;  %v5724_v12 = vld [vmem:[%s8633_s0 + $0x70] sm:$0xff]  ;;  %vm127_vm1 = vcmp.lt.s32.totalorder %v5783_v18, 16  ;;  %vm240_vm2 = vcmp.lt.s32.totalorder %v5783_v18, 112  ;;  %vm540_vm3 = vcmp.lt.s32.totalorder %v5783_v18, 1  ;;  %p5497_p11 = scmp.lt.s32.totalorder %s4585_s1, %s4585_s1 }
  0x3b   :  { %111 = vrot.lane.b32.xlu1 %v5654_v2, %s5523_s26  ;;  %95 = vrot.lane.b32.xlu0 %v5659_v3, %s5523_s26  ;;  %v5729_v13 = vld [vmem:[%s8633_s0 + $0x60] sm:$0xff]  ;;  %v5738_v14 = vld [vmem:[%s8633_s0 + $0x78] sm:$0xff]  ;;  %v145_v22 = vld [vmem:[#allocation3 + $0x8] sm:$0xff]  ;;  %vm946_vm4 = vcmp.lt.s32.totalorder %v5783_v18, 127 }
  0x3c   :  { %v5743_v15 = vld [vmem:[%s8633_s0 + $0x68] sm:$0xff]  ;;  %v144_v21 = vld [vmem:[#allocation3] sm:$0xff]  ;;  %v146_v25 = vld [vmem:[#allocation3 + $0x10] sm:$0xff] }
  0x3d   :  { %v147_v26 = vld [vmem:[#allocation3 + $0x18] sm:$0xff]  ;;  %v150_v39 = vld [vmem:[#allocation3 + $0x30] sm:$0xff]  ;;  %v148_v41 = vld [vmem:[#allocation3 + $0x20] sm:$0xff] }
  0x3e   :  { %v151_v40 = vld [vmem:[#allocation3 + $0x38] sm:$0xff]  ;;  %v149_v42 = vld [vmem:[#allocation3 + $0x28] sm:$0xff]  ;;  %v154_v57 = vld [vmem:[#allocation3 + $0x50] sm:$0xff] }
  0x3f   :  { %99 = vrot.lane.b32.xlu1 %v5668_v4, %s5523_s26  ;;  %97 = vrot.lane.b32.xlu0 %v5673_v5, %s5523_s26  ;;  %v592_v58 = vld [vmem:[#allocation6 + $0x88] sm:$0xff]  ;;  %v155_v59 = vld [vmem:[#allocation3 + $0x58] sm:$0xff]  ;;  %v152_v60 = vld [vmem:[#allocation3 + $0x40] sm:$0xff] }
  0x40   :  { %v153_v61 = vld [vmem:[#allocation3 + $0x48] sm:$0xff]  ;;  %4605 = vmatprep.mubr.msk.f32.mxu1 %vm370_vm0, %v592_v58 }
  0x43   :  { %115 = vrot.lane.b32.xlu1 %v5682_v6, %s5523_s26  ;;  %113 = vrot.lane.b32.xlu0 %v5687_v7, %s5523_s26 }
  0x47   :  { %103 = vrot.lane.b32.xlu1 %v5696_v8, %s5523_s26  ;;  %101 = vrot.lane.b32.xlu0 %v5701_v9, %s5523_s26 }
  0x4b   :  { %119 = vrot.lane.b32.xlu1 %v5710_v10, %s5523_s26  ;;  %117 = vrot.lane.b32.xlu0 %v5715_v11, %s5523_s26 }
  0x4f   :  { %107 = vrot.lane.b32.xlu1 %v5724_v12, %s5523_s26  ;;  %105 = vrot.lane.b32.xlu0 %v5729_v13, %s5523_s26 }
  0x53   :  { %123 = vrot.lane.b32.xlu1 %v5738_v14, %s5523_s26  ;;  %121 = vrot.lane.b32.xlu0 %v5743_v15, %s5523_s26 }
  0x57   :  { %210 = vrot.lane.b32.xlu1 %v5659_v3, %s5525_s21  ;;  %208 = vrot.lane.b32.xlu0 %v5645_v1, %s5525_s21 }
  0x5b   :  { %226 = vrot.lane.b32.xlu1 %v5654_v2, %s5525_s21  ;;  %224 = vrot.lane.b32.xlu0 %v5640_v0, %s5525_s21 }
  0x5f   :  { %214 = vrot.lane.b32.xlu1 %v5668_v4, %s5525_s21  ;;  %212 = vrot.lane.b32.xlu0 %v5673_v5, %s5525_s21 }
  0x63   :  { %230 = vrot.lane.b32.xlu1 %v5682_v6, %s5525_s21  ;;  %228 = vrot.lane.b32.xlu0 %v5687_v7, %s5525_s21 }
  0x67   :  { %218 = vrot.lane.b32.xlu1 %v5696_v8, %s5525_s21  ;;  %216 = vrot.lane.b32.xlu0 %v5701_v9, %s5525_s21 }
  0x6b   :  { %234 = vrot.lane.b32.xlu1 %v5710_v10, %s5525_s21  ;;  %232 = vrot.lane.b32.xlu0 %v5715_v11, %s5525_s21 }
  0x6f   :  { %222 = vrot.lane.b32.xlu1 %v5724_v12, %s5525_s21  ;;  %220 = vrot.lane.b32.xlu0 %v5729_v13, %s5525_s21 }
  0x73   :  { %238 = vrot.lane.b32.xlu1 %v5738_v14, %s5525_s21  ;;  %236 = vrot.lane.b32.xlu0 %v5743_v15, %s5525_s21 }
  0xa9   :  { %v110_v19 = vpop.permute.xlu1 %109  ;;  %v94_v20 = vpop.permute.xlu0 %93 }
  0xaa   :  { %v128_v23 = vsel %vm127_vm1, %v94_v20, %v110_v19  ;;  %v136_v24 = vsel %vm127_vm1, %v110_v19, %v94_v20 }
  0xab   :  { %v160_v31 = vmul.f32 %v144_v21, %v136_v24  ;;  %v161_v32 = vmul.f32 %v145_v22, %v128_v23 }
  0xad   :  { %v112_v27 = vpop.permute.xlu1 %111  ;;  %v96_v28 = vpop.permute.xlu0 %95 }
  0xae   :  { %v129_v29 = vsel %vm127_vm1, %v96_v28, %v112_v27  ;;  %v137_v30 = vsel %vm127_vm1, %v112_v27, %v96_v28  ;;  %v1012_v27 = vld [vmem:[%s8636_s3] sm:$0xff] }
  0xaf   :  { %v162_v33 = vmul.f32 %v146_v25, %v137_v30  ;;  %v163_v34 = vmul.f32 %v147_v26, %v129_v29  ;;  %1022 = vperm.xlu0 %5311, %v1012_v27  }
  0xb1   :  { %v100_v35 = vpop.permute.xlu1 %99  ;;  %v98_v36 = vpop.permute.xlu0 %97  ;;  %v5794_v37 = vpack.c.bf16 %v163_v34, %v161_v32  ;;  %v5796_v38 = vpack.c.bf16 %v162_v33, %v160_v31  ;;  %v1013_v32 = vld [vmem:[%s8636_s3 + $0x8] sm:$0xff]  ;;  %v1015_v33 = vld [vmem:[%s8636_s3 + $0x18] sm:$0xff]  ;;  %v158_v34 = vld [vmem:[#allocation3 + $0x70] sm:$0xff] }
  0xb2   :  { %1027 = vperm.xlu1 %5312, %v1013_v32  }
  0xb3   :  { %4726 = vmatprep.subr.bf16.mxu0 %v5794_v37  ;;  %4774 = vmatprep.subr.bf16.mxu1 %v5794_v37 }
  0xb4   :  { %4728 = vmatpush1.bf16.msra.mxu0 %v5796_v38  ;;  %4776 = vmatpush1.bf16.msra.mxu1 %v5796_v38 }
  0xb5   :  { %v116_v43 = vpop.permute.xlu1 %115  ;;  %v114_v44 = vpop.permute.xlu0 %113  ;;  %1037 = vperm.xlu0 %5311, %v1015_v33  }
  0xb6   :  { %v131_v45 = vsel %vm127_vm1, %v100_v35, %v116_v43  ;;  %v139_v46 = vsel %vm127_vm1, %v116_v43, %v100_v35  ;;  %v130_v47 = vsel %vm127_vm1, %v98_v36, %v114_v44  ;;  %v138_v48 = vsel %vm127_vm1, %v114_v44, %v98_v36  ;;  %v1014_v35 = vld [vmem:[%s8636_s3 + $0x10] sm:$0xff]  ;;  %v159_v36 = vld [vmem:[#allocation3 + $0x78] sm:$0xff] }
  0xb7   :  { %v166_v49 = vmul.f32 %v150_v39, %v139_v46  ;;  %v167_v50 = vmul.f32 %v151_v40, %v131_v45  ;;  %v164_v51 = vmul.f32 %v148_v41, %v138_v48  ;;  %v165_v52 = vmul.f32 %v149_v42, %v130_v47  ;;  %v156_v39 = vld [vmem:[#allocation3 + $0x60] sm:$0xff]  ;;  %v157_v40 = vld [vmem:[#allocation3 + $0x68] sm:$0xff]  ;;  %1032 = vperm.xlu1 %5312, %v1014_v35   ;;  %v264_v35 = vld [vmem:[#allocation3 + $0x130] sm:$0xff] }
  0xb8   :  { %v1017_v47 = vld [vmem:[%s8636_s3 + $0x28] sm:$0xff] }
  0xb9   :  { %v104_v53 = vpop.permute.xlu1 %103  ;;  %v102_v54 = vpop.permute.xlu0 %101  ;;  %v5810_v55 = vpack.c.bf16 %v167_v50, %v165_v52  ;;  %v5812_v56 = vpack.c.bf16 %v166_v49, %v164_v51  ;;  %v1016_v52 = vld [vmem:[%s8636_s3 + $0x20] sm:$0xff]  ;;  %1047 = vperm.xlu0 %5311, %v1017_v47  }
  0xbb   :  { %4730 = vmatprep.subr.bf16.mxu0 %v5810_v55  ;;  %4778 = vmatprep.subr.bf16.mxu1 %v5810_v55 }
  0xbc   :  { %4732 = vmatpush1.bf16.msra.mxu0 %v5812_v56  ;;  %4780 = vmatpush1.bf16.msra.mxu1 %v5812_v56 }
  0xbd   :  { %v120_v62 = vpop.permute.xlu1 %119  ;;  %v118_v63 = vpop.permute.xlu0 %117  ;;  %1042 = vperm.xlu1 %5312, %v1016_v52   ;;  %v266_v52 = vld [vmem:[#allocation3 + $0x140] sm:$0xff] }
  0xbe   :  { %v133_v19 = vsel %vm127_vm1, %v104_v53, %v120_v62  ;;  %v141_v20 = vsel %vm127_vm1, %v120_v62, %v104_v53  ;;  %v132_v21 = vsel %vm127_vm1, %v102_v54, %v118_v63  ;;  %v140_v22 = vsel %vm127_vm1, %v118_v63, %v102_v54 }
  0xbf   :  { %v170_v23 = vmul.f32 %v154_v57, %v141_v20  ;;  %v171_v24 = vmul.f32 %v155_v59, %v133_v19  ;;  %v168_v25 = vmul.f32 %v152_v60, %v140_v22  ;;  %v169_v26 = vmul.f32 %v153_v61, %v132_v21  ;;  %v1019_v60 = vld [vmem:[%s8636_s3 + $0x38] sm:$0xff]  ;;  %v259_v20 = vld [vmem:[#allocation3 + $0x108] sm:$0xff] }
  0xc0   :  { %v5867_v59 = vpack.c.bf16 %v5654_v2, %v5640_v0  ;;  %v5878_v61 = vpack.c.bf16 %v5659_v3, %v5645_v1  ;;  %v1018_v0 = vld [vmem:[%s8636_s3 + $0x30] sm:$0xff]  ;;  %v5887_v63 = vpack.c.bf16 %v5682_v6, %v5687_v7  ;;  %1057 = vperm.xlu0 %5311, %v1019_v60   ;;  %v5893_v1 = vpack.c.bf16 %v5668_v4, %v5673_v5  ;;  %v261_v7 = vld [vmem:[#allocation3 + $0x118] sm:$0xff] }
  0xc1   :  { %v108_v28 = vpop.permute.xlu1 %107  ;;  %v106_v29 = vpop.permute.xlu0 %105  ;;  %v5830_v30 = vpack.c.bf16 %v171_v24, %v169_v26  ;;  %v5832_v31 = vpack.c.bf16 %v170_v23, %v168_v25  ;;  %1052 = vperm.xlu1 %5312, %v1018_v0   ;;  %v5900_v6 = vpack.c.bf16 %v5710_v10, %v5715_v11  ;;  %v5910_v5 = vpack.c.bf16 %v5696_v8, %v5701_v9  ;;  %v260_v11 = vld [vmem:[#allocation3 + $0x110] sm:$0xff]  ;;  %v258_v24 = vld [vmem:[#allocation3 + $0x100] sm:$0xff]  ;;  %v265_v26 = vld [vmem:[#allocation3 + $0x138] sm:$0xff] }
  0xc2   :  { %v5916_v10 = vpack.c.bf16 %v5738_v14, %v5743_v15  ;;  %v5930_v14 = vpack.c.bf16 %v5724_v12, %v5729_v13  ;;  %v269_v13 = vld [vmem:[#allocation3 + $0x158] sm:$0xff] }
  0xc3   :  { %4734 = vmatprep.subr.bf16.mxu0 %v5830_v30  ;;  %4782 = vmatprep.subr.bf16.mxu1 %v5830_v30 }
  0xc4   :  { %4736 = vmatpush1.bf16.msra.mxu0 %v5832_v31  ;;  %4784 = vmatpush1.bf16.msra.mxu1 %v5832_v31 }
  0xc5   :  { %v124_v41 = vpop.permute.xlu1 %123  ;;  %v122_v42 = vpop.permute.xlu0 %121 }
  0xc6   :  { %v135_v43 = vsel %vm127_vm1, %v108_v28, %v124_v41  ;;  %v143_v44 = vsel %vm127_vm1, %v124_v41, %v108_v28  ;;  %v134_v45 = vsel %vm127_vm1, %v106_v29, %v122_v42  ;;  %v142_v46 = vsel %vm127_vm1, %v122_v42, %v106_v29  ;;  %v263_v28 = vld [vmem:[#allocation3 + $0x128] sm:$0xff] }
  0xc7   :  { %v174_v48 = vmul.f32 %v158_v34, %v143_v44  ;;  %v175_v49 = vmul.f32 %v159_v36, %v135_v43  ;;  %v172_v50 = vmul.f32 %v156_v39, %v142_v46  ;;  %v173_v51 = vmul.f32 %v157_v40, %v134_v45  ;;  %v262_v39 = vld [vmem:[#allocation3 + $0x120] sm:$0xff]  ;;  %v267_v43 = vld [vmem:[#allocation3 + $0x148] sm:$0xff] }
  0xc9   :  { %v211_v53 = vpop.permute.xlu1 %210  ;;  %v209_v54 = vpop.permute.xlu0 %208  ;;  %v5861_v57 = vpack.c.bf16 %v175_v49, %v173_v51  ;;  %v5863_v58 = vpack.c.bf16 %v174_v48, %v172_v50  ;;  %v268_v49 = vld [vmem:[#allocation3 + $0x150] sm:$0xff] }
  0xcb   :  { %4738 = vmatprep.subr.bf16.mxu0 %v5861_v57  ;;  %4786 = vmatprep.subr.bf16.mxu1 %v5861_v57 }
  0xcc   :  { %4740 = vmatpush1.bf16.msra.mxu0 %v5863_v58  ;;  %4788 = vmatpush1.bf16.msra.mxu1 %v5863_v58 }
  0xcd   :  { %v227_v2 = vpop.permute.xlu1 %226  ;;  %v225_v62 = vpop.permute.xlu0 %224  ;;  %4742 = vmatprep.subr.bf16.mxu0 %v5867_v59  ;;  %4790 = vmatprep.subr.bf16.mxu1 %v5867_v59 }
  0xce   :  { %v250_v19 = vsel %vm240_vm2, %v227_v2, %v211_v53  ;;  %v249_v4 = vsel %vm240_vm2, %v225_v62, %v209_v54  ;;  %v242_v23 = vsel %vm240_vm2, %v211_v53, %v227_v2  ;;  %v241_v25 = vsel %vm240_vm2, %v209_v54, %v225_v62 }
  0xcf   :  { %v277_v8 = vmul.f32 %v261_v7, %v250_v19  ;;  %v275_v9 = vmul.f32 %v259_v20, %v249_v4  ;;  %v276_v15 = vmul.f32 %v260_v11, %v242_v23  ;;  %v274_v32 = vmul.f32 %v258_v24, %v241_v25  ;;  %v272_v20 = vld [vmem:[#allocation3 + $0x170] sm:$0xff]  ;;  %v271_v11 = vld [vmem:[#allocation3 + $0x168] sm:$0xff] }
  0xd0   :  { %4744 = vmatpush1.bf16.msra.mxu0 %v5878_v61  ;;  %4792 = vmatpush1.bf16.msra.mxu1 %v5878_v61 }
  0xd1   :  { %v215_v3 = vpop.permute.xlu1 %214  ;;  %v213_v16 = vpop.permute.xlu0 %212  ;;  %4746 = vmatprep.subr.bf16.mxu0 %v5887_v63  ;;  %4794 = vmatprep.subr.bf16.mxu1 %v5887_v63  ;;  %v5938_v12 = vpack.c.bf16 %v277_v8, %v275_v9  ;;  %v5944_v48 = vpack.c.bf16 %v276_v15, %v274_v32 }
  0xd4   :  { %4748 = vmatpush1.bf16.msra.mxu0 %v5893_v1  ;;  %4796 = vmatpush1.bf16.msra.mxu1 %v5893_v1 }
  0xd5   :  { %v231_v21 = vpop.permute.xlu1 %230  ;;  %v229_v22 = vpop.permute.xlu0 %228  ;;  %4750 = vmatprep.subr.bf16.mxu0 %v5900_v6  ;;  %4798 = vmatprep.subr.bf16.mxu1 %v5900_v6 }
  0xd6   :  { %v252_v27 = vsel %vm240_vm2, %v231_v21, %v215_v3  ;;  %v251_v29 = vsel %vm240_vm2, %v229_v22, %v213_v16  ;;  %v244_v36 = vsel %vm240_vm2, %v215_v3, %v231_v21  ;;  %v243_v40 = vsel %vm240_vm2, %v213_v16, %v229_v22  ;;  %v273_v21 = vld [vmem:[#allocation3 + $0x178] sm:$0xff]  ;;  %v270_v22 = vld [vmem:[#allocation3 + $0x160] sm:$0xff] }
  0xd7   :  { %v281_v41 = vmul.f32 %v265_v26, %v252_v27  ;;  %v279_v42 = vmul.f32 %v263_v28, %v251_v29  ;;  %v280_v44 = vmul.f32 %v264_v35, %v244_v36  ;;  %v278_v45 = vmul.f32 %v262_v39, %v243_v40  ;;  %v306_v35 = vld [vmem:[#allocation6] sm:$0xff]  ;;  %v309_v39 = vld [vmem:[#allocation6 + $0x18] sm:$0xff] }
  0xd8   :  { %4752 = vmatpush1.bf16.msra.mxu0 %v5910_v5  ;;  %4800 = vmatpush1.bf16.msra.mxu1 %v5910_v5  ;;  %v591_v36 = vld [vmem:[#allocation6 + $0x80] sm:$0xff]  ;;  %v594_v40 = vld [vmem:[#allocation6 + $0x98] sm:$0xff] }
  0xd9   :  { %v219_v33 = vpop.permute.xlu1 %218  ;;  %v217_v34 = vpop.permute.xlu0 %216  ;;  %4754 = vmatprep.subr.bf16.mxu0 %v5916_v10  ;;  %4802 = vmatprep.subr.bf16.mxu1 %v5916_v10  ;;  %v5954_v2 = vpack.c.bf16 %v281_v41, %v279_v42  ;;  %v5960_v19 = vpack.c.bf16 %v280_v44, %v278_v45  ;;  %v308_v41 = vld [vmem:[#allocation6 + $0x10] sm:$0xff]  ;;  %v595_v44 = vld [vmem:[#allocation6 + $0xa0] sm:$0xff]  ;;  %v598_v45 = vld [vmem:[#allocation6 + $0xb8] sm:$0xff] }
  0xda   :  { %v593_v42 = vld [vmem:[#allocation6 + $0x90] sm:$0xff] }
  0xdc   :  { %4756 = vmatpush1.bf16.msra.mxu0 %v5930_v14  ;;  %4804 = vmatpush1.bf16.msra.mxu1 %v5930_v14 }
  0xdd   :  { %v235_v46 = vpop.permute.xlu1 %234  ;;  %v233_v47 = vpop.permute.xlu0 %232  ;;  %4758 = vmatprep.subr.bf16.mxu0 %v5938_v12  ;;  %4806 = vmatprep.subr.bf16.mxu1 %v5938_v12 }
  0xde   :  { %v246_v50 = vsel %vm240_vm2, %v219_v33, %v235_v46  ;;  %v254_v51 = vsel %vm240_vm2, %v235_v46, %v219_v33  ;;  %v245_v53 = vsel %vm240_vm2, %v217_v34, %v233_v47  ;;  %v253_v54 = vsel %vm240_vm2, %v233_v47, %v217_v34  ;;  %v597_v46 = vld [vmem:[#allocation6 + $0xb0] sm:$0xff]  ;;  %v600_v47 = vld [vmem:[#allocation6 + $0xc8] sm:$0xff] }
  0xdf   :  { %v285_v60 = vmul.f32 %v269_v13, %v254_v51  ;;  %v283_v0 = vmul.f32 %v267_v43, %v253_v54  ;;  %v284_v62 = vmul.f32 %v268_v49, %v246_v50  ;;  %v282_v3 = vmul.f32 %v266_v52, %v245_v53  ;;  %v311_v13 = vld [vmem:[#allocation6 + $0x28] sm:$0xff]  ;;  %v599_v49 = vld [vmem:[#allocation6 + $0xc0] sm:$0xff]  ;;  %v602_v50 = vld [vmem:[#allocation6 + $0xd8] sm:$0xff] }
  0xe0   :  { %4760 = vmatpush1.bf16.msra.mxu0 %v5944_v48  ;;  %4808 = vmatpush1.bf16.msra.mxu1 %v5944_v48  ;;  %v596_v43 = vld [vmem:[#allocation6 + $0xa8] sm:$0xff]  ;;  %v601_v51 = vld [vmem:[#allocation6 + $0xd0] sm:$0xff]  ;;  %v603_v53 = vld [vmem:[#allocation6 + $0xe0] sm:$0xff] }
  0xe1   :  { %v223_v16 = vpop.permute.xlu1 %222  ;;  %v221_v7 = vpop.permute.xlu0 %220  ;;  %4762 = vmatprep.subr.bf16.mxu0 %v5954_v2  ;;  %4810 = vmatprep.subr.bf16.mxu1 %v5954_v2  ;;  %v5962_v4 = vpack.c.bf16 %v285_v60, %v283_v0  ;;  %v5968_v25 = vpack.c.bf16 %v284_v62, %v282_v3  ;;  %v604_v52 = vld [vmem:[#allocation6 + $0xe8] sm:$0xff]  ;;  %v606_v54 = vld [vmem:[#allocation6 + $0xf8] sm:$0xff]  ;;  %v605_v60 = vld [vmem:[#allocation6 + $0xf0] sm:$0xff] }
  0xe2   :  { %v767_v0 = vld [vmem:[#allocation6 + $0x130] sm:$0xff]  ;;  %v769_v62 = vld [vmem:[#allocation6 + $0x140] sm:$0xff]  ;;  %v772_v3 = vld [vmem:[#allocation6 + $0x158] sm:$0xff] }
  0xe4   :  { %4764 = vmatpush1.bf16.msra.mxu0 %v5960_v19  ;;  %4812 = vmatpush1.bf16.msra.mxu1 %v5960_v19 }
  0xe5   :  { %v239_v23 = vpop.permute.xlu1 %238  ;;  %v237_v24 = vpop.permute.xlu0 %236  ;;  %4766 = vmatprep.subr.bf16.mxu0 %v5962_v4  ;;  %4814 = vmatprep.subr.bf16.mxu1 %v5962_v4 }
  0xe6   :  { %v248_v8 = vsel %vm240_vm2, %v223_v16, %v239_v23  ;;  %v256_v9 = vsel %vm240_vm2, %v239_v23, %v223_v16  ;;  %v247_v26 = vsel %vm240_vm2, %v221_v7, %v237_v24  ;;  %v255_v27 = vsel %vm240_vm2, %v237_v24, %v221_v7  ;;  %v771_v16 = vld [vmem:[#allocation6 + $0x150] sm:$0xff]  ;;  %v774_v7 = vld [vmem:[#allocation6 + $0x168] sm:$0xff] }
  0xe7   :  { %v288_v28 = vmul.f32 %v272_v20, %v248_v8  ;;  %v289_v29 = vmul.f32 %v273_v21, %v256_v9  ;;  %v286_v15 = vmul.f32 %v270_v22, %v247_v26  ;;  %v287_v32 = vmul.f32 %v271_v11, %v255_v27  ;;  %v776_v20 = vld [vmem:[#allocation6 + $0x178] sm:$0xff] }
  0xe8   :  { %4768 = vmatpush1.bf16.msra.mxu0 %v5968_v25  ;;  %4816 = vmatpush1.bf16.msra.mxu1 %v5968_v25 }
  0xe9   :  { %v5980_v33 = vpack.c.bf16 %v289_v29, %v287_v32  ;;  %v5982_v34 = vpack.c.bf16 %v288_v28, %v286_v15 }
  0xeb   :  { %4770 = vmatprep.subr.bf16.mxu0 %v5980_v33  ;;  %4818 = vmatprep.subr.bf16.mxu1 %v5980_v33 }
  0xec   :  { %4772 = vmatpush1.bf16.msra.mxu0 %v5982_v34  ;;  %4820 = vmatpush1.bf16.msra.mxu1 %v5982_v34 }
  0xed   :  { %4822 = vmatprep.subr.bf16.mxu0 %v5794_v37  ;;  %v310_v37 = vld [vmem:[#allocation6 + $0x20] sm:$0xff] }
  0xef   :  { %460 = vmatmul.mubr.f32.vlgmr.msra.gmra.mrb[0].mxu0 %v306_v35  ;;  %696 = vmatmul.mubr.f32.vlgmr.msra.gmra.mrb[0].mxu1 %v591_v36 }
  0xf0   :  { %4824 = vmatpush1.bf16.msra.mxu0 %v5796_v38  ;;  %4598 = vmatprep.mubr.msk.f32.mxu0 %vm370_vm0, %v309_v39  ;;  %v313_v38 = vld [vmem:[#allocation6 + $0x38] sm:$0xff] }
  0xf1   :  { %4826 = vmatprep.subr.bf16.mxu0 %v5810_v55  ;;  %4606 = vmatprep.mubr.msk.f32.mxu1 %vm370_vm0, %v594_v40  ;;  %v312_v55 = vld [vmem:[#allocation6 + $0x30] sm:$0xff] }
  0xf3   :  { %466 = vmatmul.mubr.f32.gmra.mrb[2].mxu0 %v308_v41  ;;  %702 = vmatmul.mubr.f32.gmra.mrb[2].mxu1 %v593_v42 }
  0xf4   :  { %4828 = vmatpush1.bf16.msra.mxu0 %v5812_v56  ;;  %4599 = vmatprep.mubr.msk.f32.mxu0 %vm370_vm0, %v311_v13  ;;  %v315_v56 = vld [vmem:[#allocation6 + $0x48] sm:$0xff] }
  0xf5   :  { %4830 = vmatprep.subr.bf16.mxu0 %v5830_v30  ;;  %4607 = vmatprep.mubr.msk.f32.mxu1 %vm370_vm0, %v596_v43  ;;  %v314_v30 = vld [vmem:[#allocation6 + $0x40] sm:$0xff] }
  0xf7   :  { %472 = vmatmul.mubr.f32.gmra.mrb[4].mxu0 %v310_v37  ;;  %708 = vmatmul.mubr.f32.gmra.mrb[4].mxu1 %v595_v44 }
  0xf8   :  { %4832 = vmatpush1.bf16.msra.mxu0 %v5832_v31  ;;  %4600 = vmatprep.mubr.msk.f32.mxu0 %vm370_vm0, %v313_v38  ;;  %v317_v31 = vld [vmem:[#allocation6 + $0x58] sm:$0xff] }
  0xf9   :  { %4834 = vmatprep.subr.bf16.mxu0 %v5861_v57  ;;  %4608 = vmatprep.mubr.msk.f32.mxu1 %vm370_vm0, %v598_v45  ;;  %v316_v57 = vld [vmem:[#allocation6 + $0x50] sm:$0xff] }
  0xfb   :  { %478 = vmatmul.mubr.f32.gmra.mrb[6].mxu0 %v312_v55  ;;  %714 = vmatmul.mubr.f32.gmra.mrb[6].mxu1 %v597_v46 }
  0xfc   :  { %4836 = vmatpush1.bf16.msra.mxu0 %v5863_v58  ;;  %4601 = vmatprep.mubr.msk.f32.mxu0 %vm370_vm0, %v315_v56  ;;  %v319_v58 = vld [vmem:[#allocation6 + $0x68] sm:$0xff] }
  0xfd   :  { %4838 = vmatprep.subr.bf16.mxu0 %v5867_v59  ;;  %4609 = vmatprep.mubr.msk.f32.mxu1 %vm370_vm0, %v600_v47  ;;  %v318_v59 = vld [vmem:[#allocation6 + $0x60] sm:$0xff] }
  0xff   :  { %484 = vmatmul.mubr.f32.gmra.mrb[8].mxu0 %v314_v30  ;;  %720 = vmatmul.mubr.f32.gmra.mrb[8].mxu1 %v599_v49 }
 0x100   :  { %4840 = vmatpush1.bf16.msra.mxu0 %v5878_v61  ;;  %4602 = vmatprep.mubr.msk.f32.mxu0 %vm370_vm0, %v317_v31  ;;  %v321_v61 = vld [vmem:[#allocation6 + $0x78] sm:$0xff] }
 0x101   :  { %4842 = vmatprep.subr.bf16.mxu0 %v5887_v63  ;;  %4610 = vmatprep.mubr.msk.f32.mxu1 %vm370_vm0, %v602_v50  ;;  %v320_v63 = vld [vmem:[#allocation6 + $0x70] sm:$0xff] }
 0x103   :  { %490 = vmatmul.mubr.f32.gmra.mrb[10].mxu0 %v316_v57  ;;  %726 = vmatmul.mubr.f32.gmra.mrb[10].mxu1 %v601_v51 }
 0x104   :  { %4844 = vmatpush1.bf16.msra.mxu0 %v5893_v1  ;;  %4603 = vmatprep.mubr.msk.f32.mxu0 %vm370_vm0, %v319_v58  ;;  %v762_v1 = vld [vmem:[#allocation6 + $0x108] sm:$0xff] }
 0x105   :  { %4846 = vmatprep.subr.bf16.mxu0 %v5900_v6  ;;  %4611 = vmatprep.mubr.msk.f32.mxu1 %vm370_vm0, %v604_v52  ;;  %v761_v6 = vld [vmem:[#allocation6 + $0x100] sm:$0xff] }
 0x107   :  { %496 = vmatmul.mubr.f32.gmra.mrb[12].mxu0 %v318_v59  ;;  %732 = vmatmul.mubr.f32.gmra.mrb[12].mxu1 %v603_v53 }
 0x108   :  { %4848 = vmatpush1.bf16.msra.mxu0 %v5910_v5  ;;  %4604 = vmatprep.mubr.msk.f32.mxu0 %vm370_vm0, %v321_v61  ;;  %v764_v5 = vld [vmem:[#allocation6 + $0x118] sm:$0xff] }
 0x109   :  { %4850 = vmatprep.subr.bf16.mxu0 %v5916_v10  ;;  %4612 = vmatprep.mubr.msk.f32.mxu1 %vm370_vm0, %v606_v54  ;;  %v763_v10 = vld [vmem:[#allocation6 + $0x110] sm:$0xff] }
 0x10b   :  { %502 = vmatmul.mubr.f32.gmra.mrb[14].mxu0 %v320_v63  ;;  %738 = vmatmul.mubr.f32.gmra.mrb[14].mxu1 %v605_v60 }
 0x10c   :  { %4852 = vmatpush1.bf16.msra.mxu0 %v5930_v14  ;;  %4613 = vmatprep.mubr.msk.f32.mxu0 %vm370_vm0, %v762_v1  ;;  %v766_v14 = vld [vmem:[#allocation6 + $0x128] sm:$0xff] }
 0x10d   :  { %4854 = vmatprep.subr.bf16.mxu0 %v5938_v12  ;;  %v765_v12 = vld [vmem:[#allocation6 + $0x120] sm:$0xff] }
 0x110   :  { %4856 = vmatpush1.bf16.msra.mxu0 %v5944_v48  ;;  %v768_v48 = vld [vmem:[#allocation6 + $0x138] sm:$0xff] }
 0x111   :  { %4858 = vmatprep.subr.bf16.mxu0 %v5954_v2  ;;  %v770_v2 = vld [vmem:[#allocation6 + $0x148] sm:$0xff] }
 0x114   :  { %4860 = vmatpush1.bf16.msra.mxu0 %v5960_v19  ;;  %v773_v19 = vld [vmem:[#allocation6 + $0x160] sm:$0xff] }
 0x115   :  { %4862 = vmatprep.subr.bf16.mxu0 %v5962_v4  ;;  %v775_v4 = vld [vmem:[#allocation6 + $0x170] sm:$0xff] }
 0x118   :  { %4864 = vmatpush1.bf16.msra.mxu0 %v5968_v25 }
 0x119   :  { %4866 = vmatprep.subr.bf16.mxu0 %v5980_v33 }
 0x11c   :  { %4868 = vmatpush1.bf16.msra.mxu0 %v5982_v34 }
 0x11f   :  { %866 = vmatmul.mubr.f32.vlgmr.msra.gmra.mrb[16].mxu0 %v761_v6 }
 0x120   :  { %4614 = vmatprep.mubr.msk.f32.mxu0 %vm370_vm0, %v764_v5 }
 0x123   :  { %872 = vmatmul.mubr.f32.gmra.mrb[18].mxu0 %v763_v10 }
 0x124   :  { %4615 = vmatprep.mubr.msk.f32.mxu0 %vm370_vm0, %v766_v14 }
 0x127   :  { %878 = vmatmul.mubr.f32.gmra.mrb[20].mxu0 %v765_v12 }
 0x128   :  { %4616 = vmatprep.mubr.msk.f32.mxu0 %vm370_vm0, %v768_v48 }
 0x12b   :  { %884 = vmatmul.mubr.f32.gmra.mrb[22].mxu0 %v767_v0 }
 0x12c   :  { %4617 = vmatprep.mubr.msk.f32.mxu0 %vm370_vm0, %v770_v2 }
 0x12e   :  { %v6100_v10 = vpop.permute.xlu0 %1022 }
 0x12f   :  { %890 = vmatmul.mubr.f32.gmra.mrb[24].mxu0 %v769_v62 }
 0x130   :  { %4618 = vmatprep.mubr.msk.f32.mxu0 %vm370_vm0, %v772_v3 }
 0x131   :  { %v6098_v5 = vpop.permute.xlu1 %1027 }
 0x133   :  { %896 = vmatmul.mubr.f32.gmra.mrb[26].mxu0 %v771_v16 }
 0x134   :  { %4619 = vmatprep.mubr.msk.f32.mxu0 %vm370_vm0, %v774_v7  ;;  %v6104_v12 = vpop.permute.xlu0 %1037 }
 0x136   :  { %v6102_v14 = vpop.permute.xlu1 %1032 }
 0x137   :  { %902 = vmatmul.mubr.f32.gmra.mrb[28].mxu0 %v773_v19 }
 0x138   :  { %4620 = vmatprep.mubr.msk.f32.mxu0 %vm370_vm0, %v776_v20  ;;  %v6108_v0 = vpop.permute.xlu0 %1047 }
 0x13b   :  { %908 = vmatmul.mubr.f32.gmra.mrb[30].mxu0 %v775_v4 }
 0x13c   :  { %v6106_v48 = vpop.permute.xlu1 %1042 }
 0x13f   :  { %v6112_v62 = vpop.permute.xlu0 %1057 }
 0x140   :  { %v6110_v2 = vpop.permute.xlu1 %1052  ;;  %8696 = vst [vmem:[#allocation13_spill] sm:$0xff] %v6112_v62 }
 0x1c2   :  { %v461_v21 = vpop.f32.mrb[0].mxu0  ;;  %v6034_v22 = vpop.f32.mrb[0].mxu1 }
 0x1c3   :  { %508 = vrot.lane.b32.xlu0 %v461_v21, %s5527_s2  ;;  %v463_v11 = vpop.f32.mrb[1].mxu0  ;;  %v6037_v23 = vpop.f32.mrb[1].mxu1 }
 0x1c6   :  { %v467_v24 = vpop.f32.mrb[2].mxu0  ;;  %v6039_v25 = vpop.f32.mrb[2].mxu1 }
 0x1c7   :  { %524 = vrot.lane.b32.xlu0 %v463_v11, %s5527_s2  ;;  %510 = vrot.lane.b32.xlu1 %v467_v24, %s5527_s2  ;;  %v469_v8 = vpop.f32.mrb[3].mxu0  ;;  %v6043_v9 = vpop.f32.mrb[3].mxu1 }
 0x1ca   :  { %v473_v26 = vpop.f32.mrb[4].mxu0  ;;  %v6045_v27 = vpop.f32.mrb[4].mxu1 }
 0x1cb   :  { %526 = vrot.lane.b32.xlu1 %v469_v8, %s5527_s2  ;;  %v475_v28 = vpop.f32.mrb[5].mxu0  ;;  %v6048_v29 = vpop.f32.mrb[5].mxu1 }
 0x1ce   :  { %v479_v15 = vpop.f32.mrb[6].mxu0  ;;  %v6050_v32 = vpop.f32.mrb[6].mxu1 }
 0x1cf   :  { %512 = vrot.lane.b32.xlu1 %v473_v26, %s5527_s2  ;;  %514 = vrot.lane.b32.xlu0 %v479_v15, %s5527_s2  ;;  %v481_v33 = vpop.f32.mrb[7].mxu0  ;;  %v6054_v34 = vpop.f32.mrb[7].mxu1 }
 0x1d2   :  { %v485_v35 = vpop.f32.mrb[8].mxu0  ;;  %v6056_v36 = vpop.f32.mrb[8].mxu1 }
 0x1d3   :  { %528 = vrot.lane.b32.xlu1 %v475_v28, %s5527_s2  ;;  %530 = vrot.lane.b32.xlu0 %v481_v33, %s5527_s2  ;;  %v487_v39 = vpop.f32.mrb[9].mxu0  ;;  %v6060_v40 = vpop.f32.mrb[9].mxu1 }
 0x1d6   :  { %v491_v41 = vpop.f32.mrb[10].mxu0  ;;  %v6062_v42 = vpop.f32.mrb[10].mxu1 }
 0x1d7   :  { %516 = vrot.lane.b32.xlu1 %v485_v35, %s5527_s2  ;;  %518 = vrot.lane.b32.xlu0 %v491_v41, %s5527_s2  ;;  %v493_v13 = vpop.f32.mrb[11].mxu0  ;;  %v6066_v43 = vpop.f32.mrb[11].mxu1  ;;  %v558_v41 = vld [vmem:[#allocation3 + $0x180] sm:$0xff] }
 0x1da   :  { %v497_v37 = vpop.f32.mrb[12].mxu0  ;;  %v6068_v44 = vpop.f32.mrb[12].mxu1 }
 0x1db   :  { %532 = vrot.lane.b32.xlu1 %v487_v39, %s5527_s2  ;;  %534 = vrot.lane.b32.xlu0 %v493_v13, %s5527_s2  ;;  %v499_v38 = vpop.f32.mrb[13].mxu0  ;;  %v6072_v45 = vpop.f32.mrb[13].mxu1 }
 0x1de   :  { %v503_v55 = vpop.f32.mrb[14].mxu0  ;;  %v6074_v46 = vpop.f32.mrb[14].mxu1 }
 0x1df   :  { %520 = vrot.lane.b32.xlu1 %v497_v37, %s5527_s2  ;;  %522 = vrot.lane.b32.xlu0 %v503_v55, %s5527_s2  ;;  %v505_v56 = vpop.f32.mrb[15].mxu0  ;;  %v6078_v47 = vpop.f32.mrb[15].mxu1  ;;  %v559_v37 = vld [vmem:[#allocation3 + $0x188] sm:$0xff]  ;;  %v560_v55 = vld [vmem:[#allocation3 + $0x190] sm:$0xff] }
 0x1e3   :  { %536 = vrot.lane.b32.xlu1 %v499_v38, %s5527_s2  ;;  %538 = vrot.lane.b32.xlu0 %v505_v56, %s5527_s2 }
 0x1f2   :  { %v867_v30 = vpop.f32.mrb[16].mxu0 }
 0x1f3   :  { %914 = vrot.lane.b32.xlu1 %v867_v30, %s5528_s14  ;;  %v869_v49 = vpop.f32.mrb[17].mxu0 }
 0x1f6   :  { %v873_v31 = vpop.f32.mrb[18].mxu0 }
 0x1f7   :  { %930 = vrot.lane.b32.xlu1 %v869_v49, %s5528_s14  ;;  %916 = vrot.lane.b32.xlu0 %v873_v31, %s5528_s14  ;;  %v875_v50 = vpop.f32.mrb[19].mxu0 }
 0x1fa   :  { %v879_v57 = vpop.f32.mrb[20].mxu0 }
 0x1fb   :  { %932 = vrot.lane.b32.xlu0 %v875_v50, %s5528_s14  ;;  %918 = vrot.lane.b32.xlu1 %v879_v57, %s5528_s14  ;;  %v881_v51 = vpop.f32.mrb[21].mxu0  ;;  %v561_v50 = vld [vmem:[#allocation3 + $0x198] sm:$0xff] }
 0x1fe   :  { %v885_v58 = vpop.f32.mrb[22].mxu0 }
 0x1ff   :  { %934 = vrot.lane.b32.xlu1 %v881_v51, %s5528_s14  ;;  %920 = vrot.lane.b32.xlu0 %v885_v58, %s5528_s14  ;;  %v887_v52 = vpop.f32.mrb[23].mxu0  ;;  %v964_v58 = vld [vmem:[#allocation3 + $0x280] sm:$0xff] }
 0x202   :  { %v891_v59 = vpop.f32.mrb[24].mxu0 }
 0x203   :  { %936 = vrot.lane.b32.xlu0 %v887_v52, %s5528_s14  ;;  %922 = vrot.lane.b32.xlu1 %v891_v59, %s5528_s14  ;;  %v893_v53 = vpop.f32.mrb[25].mxu0  ;;  %v965_v52 = vld [vmem:[#allocation3 + $0x288] sm:$0xff] }
 0x206   :  { %v897_v61 = vpop.f32.mrb[26].mxu0 }
 0x207   :  { %938 = vrot.lane.b32.xlu1 %v893_v53, %s5528_s14  ;;  %924 = vrot.lane.b32.xlu0 %v897_v61, %s5528_s14  ;;  %v899_v54 = vpop.f32.mrb[27].mxu0  ;;  %v562_v61 = vld [vmem:[#allocation3 + $0x1a0] sm:$0xff] }
 0x20a   :  { %v903_v63 = vpop.f32.mrb[28].mxu0 }
 0x20b   :  { %940 = vrot.lane.b32.xlu0 %v899_v54, %s5528_s14  ;;  %926 = vrot.lane.b32.xlu1 %v903_v63, %s5528_s14  ;;  %v905_v60 = vpop.f32.mrb[29].mxu0  ;;  %v563_v63 = vld [vmem:[#allocation3 + $0x1a8] sm:$0xff] }
 0x20e   :  { %v909_v1 = vpop.f32.mrb[30].mxu0 }
 0x20f   :  { %942 = vrot.lane.b32.xlu1 %v905_v60, %s5528_s14  ;;  %928 = vrot.lane.b32.xlu0 %v909_v1, %s5528_s14  ;;  %v911_v6 = vpop.f32.mrb[31].mxu0 }
 0x213   :  { %944 = vrot.lane.b32.xlu0 %v911_v6, %s5528_s14 }
 0x235   :  { %v509_v16 = vpop.permute.xlu0 %508 }
 0x239   :  { %v511_v3 = vpop.permute.xlu1 %510  ;;  %v525_v19 = vpop.permute.xlu0 %524 }
 0x23a   :  { %v549_v39 = vsel %vm540_vm3, %v525_v19, %v509_v16  ;;  %v541_v13 = vsel %vm540_vm3, %v509_v16, %v525_v19  ;;  %v564_v16 = vld [vmem:[#allocation3 + $0x1b0] sm:$0xff] }
 0x23b   :  { %v574_v49 = vmul.f32 %v558_v41, %v549_v39  ;;  %v575_v57 = vmul.f32 %v559_v37, %v541_v13 }
 0x23d   :  { %v527_v7 = vpop.permute.xlu1 %526  ;;  %v744_v6 = vadd.f32 %v6034_v22, %v574_v49  ;;  %v745_v39 = vadd.f32 %v6037_v23, %v575_v57  ;;  %v967_v49 = vld [vmem:[#allocation3 + $0x298] sm:$0xff]  ;;  %v566_v57 = vld [vmem:[#allocation3 + $0x1c0] sm:$0xff] }
 0x23e   :  { %v550_v38 = vsel %vm540_vm3, %v527_v7, %v511_v3  ;;  %v542_v31 = vsel %vm540_vm3, %v511_v3, %v527_v7 }
 0x23f   :  { %v576_v51 = vmul.f32 %v560_v55, %v550_v38  ;;  %v577_v59 = vmul.f32 %v561_v50, %v542_v31  ;;  %v966_v55 = vld [vmem:[#allocation3 + $0x290] sm:$0xff] }
 0x241   :  { %v513_v20 = vpop.permute.xlu1 %512  ;;  %v515_v4 = vpop.permute.xlu0 %514  ;;  %v746_v22 = vadd.f32 %v6039_v25, %v576_v51  ;;  %v747_v31 = vadd.f32 %v6043_v9, %v577_v59  ;;  %v567_v9 = vld [vmem:[#allocation3 + $0x1c8] sm:$0xff] }
 0x245   :  { %v529_v21 = vpop.permute.xlu1 %528  ;;  %v531_v11 = vpop.permute.xlu0 %530 }
 0x246   :  { %v551_v53 = vsel %vm540_vm3, %v529_v21, %v513_v20  ;;  %v543_v54 = vsel %vm540_vm3, %v513_v20, %v529_v21  ;;  %v552_v3 = vsel %vm540_vm3, %v531_v11, %v515_v4  ;;  %v544_v20 = vsel %vm540_vm3, %v515_v4, %v531_v11  ;;  %v565_v21 = vld [vmem:[#allocation3 + $0x1b8] sm:$0xff] }
 0x247   :  { %v578_v37 = vmul.f32 %v562_v61, %v551_v53  ;;  %v579_v38 = vmul.f32 %v563_v63, %v543_v54  ;;  %v580_v50 = vmul.f32 %v564_v16, %v552_v3  ;;  %v581_v23 = vmul.f32 %v565_v21, %v544_v20  ;;  %v968_v63 = vld [vmem:[#allocation3 + $0x2a0] sm:$0xff] }
 0x249   :  { %v517_v24 = vpop.permute.xlu1 %516  ;;  %v6114_v8 = vpop.permute.xlu0 %518  ;;  %v748_v53 = vadd.f32 %v6045_v27, %v578_v37  ;;  %v749_v61 = vadd.f32 %v6048_v29, %v579_v38  ;;  %v970_v38 = vld [vmem:[#allocation3 + $0x2b0] sm:$0xff] }
 0x24d   :  { %v533_v26 = vpop.permute.xlu1 %532  ;;  %v6116_v28 = vpop.permute.xlu0 %534 }
 0x24e   :  { %v553_v4 = vsel %vm540_vm3, %v533_v26, %v517_v24  ;;  %v545_v51 = vsel %vm540_vm3, %v517_v24, %v533_v26  ;;  %v554_v54 = vsel %vm540_vm3, %v6116_v28, %v6114_v8  ;;  %v546_v24 = vsel %vm540_vm3, %v6114_v8, %v6116_v28 }
 0x251   :  { %v6118_v15 = vpop.permute.xlu1 %520  ;;  %v6120_v33 = vpop.permute.xlu0 %522 }
 0x255   :  { %v6123_v35 = vpop.permute.xlu1 %536  ;;  %v6131_v56 = vpop.permute.xlu0 %538 }
 0x265   :  { %v915_v30 = vpop.permute.xlu1 %914 }
 0x269   :  { %v931_v60 = vpop.permute.xlu1 %930  ;;  %v917_v1 = vpop.permute.xlu0 %916 }
 0x26a   :  { %v947_v7 = vsel %vm946_vm4, %v915_v30, %v931_v60  ;;  %v955_v19 = vsel %vm946_vm4, %v931_v60, %v915_v30 }
 0x26b   :  { %v980_v41 = vmul.f32 %v964_v58, %v947_v7  ;;  %v981_v13 = vmul.f32 %v965_v52, %v955_v19  ;;  %v582_v7 = vmul.f32 %v566_v57, %v553_v4  ;;  %v583_v19 = vmul.f32 %v567_v9, %v545_v51  ;;  %v972_v9 = vld [vmem:[#allocation3 + $0x2c0] sm:$0xff] }
 0x26c   :  { %v547_v51 = vsel %vm540_vm3, %v6118_v15, %v6123_v35 }
 0x26d   :  { %v933_v17 = vpop.permute.xlu0 %932  ;;  %v919_v62 = vpop.permute.xlu1 %918  ;;  %v996_v30 = vadd.f32 %v980_v41, %v744_v6  ;;  %v997_v60 = vadd.f32 %v981_v13, %v745_v39  ;;  %v568_v6 = vld [vmem:[#allocation3 + $0x1d0] sm:$0xff]  ;;  %v750_v13 = vadd.f32 %v6050_v32, %v580_v50 }
 0x26e   :  { %v948_v11 = vsel %vm946_vm4, %v917_v1, %v933_v17  ;;  %v956_v25 = vsel %vm946_vm4, %v933_v17, %v917_v1  ;;  %v969_v17 = vld [vmem:[#allocation3 + $0x2a8] sm:$0xff]  ;;  %v584_v37 = vmul.f32 %v568_v6, %v554_v54 }
 0x26f   :  { %v982_v58 = vmul.f32 %v966_v55, %v948_v11  ;;  %v983_v52 = vmul.f32 %v967_v49, %v956_v25  ;;  %v1060_v59 = vadd.f32 %v6100_v10, %v996_v30  ;;  %v1061_v1 = vadd.f32 %v6100_v10, %v997_v60  ;;  %v569_v10 = vld [vmem:[#allocation3 + $0x1d8] sm:$0xff] }
 0x270   :  { %v971_v55 = vld [vmem:[#allocation3 + $0x2b8] sm:$0xff]  ;;  %v752_v25 = vadd.f32 %v6056_v36, %v582_v7  ;;  %v585_v57 = vmul.f32 %v569_v10, %v546_v24  ;;  %v555_v36 = vsel %vm540_vm3, %v6123_v35, %v6118_v15  ;;  %v754_v24 = vadd.f32 %v6062_v42, %v584_v37  ;;  %v572_v10 = vld [vmem:[#allocation3 + $0x1f0] sm:$0xff] }
 0x271   :  { %v935_v26 = vpop.permute.xlu1 %934  ;;  %v921_v3 = vpop.permute.xlu0 %920  ;;  %v1076_v27 = vmax.f32 %v1060_v59, 0.0  ;;  %v998_v16 = vadd.f32 %v982_v58, %v746_v22  ;;  %v999_v29 = vadd.f32 %v983_v52, %v747_v31  ;;  %v751_v22 = vadd.f32 %v6054_v34, %v581_v23  ;;  %v973_v58 = vld [vmem:[#allocation3 + $0x2c8] sm:$0xff]  ;;  %v570_v59 = vld [vmem:[#allocation3 + $0x1e0] sm:$0xff] }
 0x272   :  { %v949_v39 = vsel %vm946_vm4, %v919_v62, %v935_v26  ;;  %v957_v20 = vsel %vm946_vm4, %v935_v26, %v919_v62  ;;  %v1077_v49 = vmax.f32 %v1061_v1, 0.0  ;;  %v753_v34 = vadd.f32 %v6060_v40, %v583_v19  ;;  %v974_v19 = vld [vmem:[#allocation3 + $0x2d0] sm:$0xff] }
 0x273   :  { %v984_v21 = vmul.f32 %v968_v63, %v949_v39  ;;  %v985_v41 = vmul.f32 %v969_v17, %v957_v20  ;;  %1092 = vrot.lane.b32.xlu1 %v1076_v27, %s5523_s26  ;;  %v1062_v8 = vadd.f32 %v6098_v5, %v998_v16  ;;  %v1063_v28 = vadd.f32 %v6098_v5, %v999_v29  ;;  %v975_v39 = vld [vmem:[#allocation3 + $0x2d8] sm:$0xff] }
 0x274   :  { %v556_v15 = vsel %vm540_vm3, %v6131_v56, %v6120_v33  ;;  %v548_v7 = vsel %vm540_vm3, %v6120_v33, %v6131_v56 }
 0x275   :  { %v937_v31 = vpop.permute.xlu0 %936  ;;  %v923_v30 = vpop.permute.xlu1 %922  ;;  %v1078_v62 = vmax.f32 %v1062_v8, 0.0  ;;  %v6181_v60 = vmax.f32 %v1063_v28, 0.0  ;;  %v1000_v4 = vadd.f32 %v984_v21, %v748_v53  ;;  %v1001_v11 = vadd.f32 %v985_v41, %v749_v61  ;;  %v571_v53 = vld [vmem:[#allocation3 + $0x1e8] sm:$0xff]  ;;  %v573_v21 = vld [vmem:[#allocation3 + $0x1f8] sm:$0xff] }
 0x276   :  { %v950_v5 = vsel %vm946_vm4, %v921_v3, %v937_v31  ;;  %v958_v32 = vsel %vm946_vm4, %v937_v31, %v921_v3  ;;  %v587_v29 = vmul.f32 %v571_v53, %v547_v51 }
 0x277   :  { %v986_v50 = vmul.f32 %v970_v38, %v950_v5  ;;  %v987_v23 = vmul.f32 %v971_v55, %v958_v32  ;;  %1108 = vrot.lane.b32.xlu1 %v1077_v49, %s5523_s26  ;;  %1094 = vrot.lane.b32.xlu0 %v1078_v62, %s5523_s26  ;;  %v6200_v40 = vpack.c.bf16 %v6181_v60, %v1077_v49 }
 0x278   :  { %v6202_v52 = vpack.c.bf16 %v1078_v62, %v1076_v27  ;;  %v1064_v63 = vadd.f32 %v6102_v14, %v1000_v4  ;;  %v1065_v17 = vadd.f32 %v6102_v14, %v1001_v11  ;;  %v586_v14 = vmul.f32 %v570_v59, %v555_v36  ;;  %v976_v11 = vld [vmem:[#allocation3 + $0x2e0] sm:$0xff] }
 0x279   :  { %v939_v61 = vpop.permute.xlu1 %938  ;;  %v925_v54 = vpop.permute.xlu0 %924  ;;  %v1002_v1 = vadd.f32 %v986_v50, %v750_v13  ;;  %v1003_v6 = vadd.f32 %v987_v23, %v751_v22  ;;  %v589_v4 = vmul.f32 %v573_v21, %v548_v7 }
 0x27a   :  { %8697 = vst [vmem:[#allocation14_spill] sm:$0xff] %v6202_v52  ;;  %v951_v35 = vsel %vm946_vm4, %v923_v30, %v939_v61  ;;  %v959_v26 = vsel %vm946_vm4, %v939_v61, %v923_v30  ;;  %v1080_v8 = vmax.f32 %v1064_v63, 0.0  ;;  %v6224_v28 = vmax.f32 %v1065_v17, 0.0  ;;  %v979_v61 = vld [vmem:[#allocation3 + $0x2f8] sm:$0xff] }
 0x27b   :  { %v988_v3 = vmul.f32 %v972_v9, %v951_v35  ;;  %v989_v16 = vmul.f32 %v973_v58, %v959_v26  ;;  %1204 = vrot.lane.b32.xlu1 %v1076_v27, %s5525_s21  ;;  %1110 = vrot.lane.b32.xlu0 %v6181_v60, %s5523_s26  ;;  %v1066_v42 = vadd.f32 %v6104_v12, %v1002_v1 }
 0x27c   :  { %v1067_v20 = vadd.f32 %v6104_v12, %v1003_v6  ;;  %v755_v12 = vadd.f32 %v6066_v43, %v585_v57  ;;  %v588_v30 = vmul.f32 %v572_v10, %v556_v15  ;;  %v759_v26 = vadd.f32 %v6078_v47, %v589_v4  ;;  %v8702_v47 = vld [vmem:[#allocation13_spill] sm:$0xff]  ;;  %v6377_v4 = vld [vmem:[%s8633_s0 + $0xd0] sm:$0xff] }
 0x27d   :  { %v941_v41 = vpop.permute.xlu0 %940  ;;  %v927_v27 = vpop.permute.xlu1 %926  ;;  %v6226_v13 = vmax.f32 %v1066_v42, 0.0  ;;  %v1004_v22 = vadd.f32 %v988_v3, %v752_v25  ;;  %v1005_v38 = vadd.f32 %v989_v16, %v753_v34  ;;  %v977_v25 = vld [vmem:[#allocation3 + $0x2e8] sm:$0xff]  ;;  %v756_v34 = vadd.f32 %v6068_v44, %v586_v14  ;;  %8709 = vst [vmem:[#allocation24_spill] sm:$0xff] %v6377_v4 }
 0x27e   :  { %v952_v37 = vsel %vm946_vm4, %v925_v54, %v941_v41  ;;  %v960_v33 = vsel %vm946_vm4, %v941_v41, %v925_v54  ;;  %v6232_v56 = vmax.f32 %v1067_v20, 0.0  ;;  %v758_v53 = vadd.f32 %v6074_v46, %v588_v30  ;;  %v6372_v30 = vld [vmem:[%s8633_s0 + $0xc8] sm:$0xff] }
 0x27f   :  { %v990_v55 = vmul.f32 %v974_v19, %v952_v37  ;;  %v991_v31 = vmul.f32 %v975_v39, %v960_v33  ;;  %1220 = vrot.lane.b32.xlu1 %v1077_v49, %s5525_s21  ;;  %1206 = vrot.lane.b32.xlu0 %v1078_v62, %s5525_s21  ;;  %v6242_v32 = vpack.c.bf16 %v6226_v13, %v1080_v8  ;;  %v6331_v37 = vld [vmem:[%s8633_s0 + $0xb0] sm:$0xff]  ;;  %v6340_v33 = vld [vmem:[%s8633_s0 + $0xa0] sm:$0xff] }
 0x280   :  { %v6239_v5 = vpack.c.bf16 %v6232_v56, %v6224_v28  ;;  %v1068_v50 = vadd.f32 %v6106_v48, %v1004_v22  ;;  %v757_v62 = vadd.f32 %v6072_v45, %v587_v29  ;;  %v1069_v9 = vadd.f32 %v6106_v48, %v1005_v38  ;;  %v978_v45 = vld [vmem:[#allocation3 + $0x2f0] sm:$0xff]  ;;  %v6326_v22 = vld [vmem:[%s8633_s0 + $0x88] sm:$0xff]  ;;  %8704 = vst [vmem:[#allocation19_spill] sm:$0xff] %v6331_v37 }
 0x281   :  { %8699 = vst [vmem:[#allocation16_spill] sm:$0xff] %v6242_v32  ;;  %v943_v43 = vpop.permute.xlu1 %942  ;;  %v929_v57 = vpop.permute.xlu0 %928  ;;  %v1006_v49 = vadd.f32 %v990_v55, %v754_v24  ;;  %v1007_v23 = vadd.f32 %v991_v31, %v755_v12  ;;  %8705 = vst [vmem:[#allocation20_spill] sm:$0xff] %v6340_v33  ;;  %v6354_v38 = vld [vmem:[%s8633_s0 + $0xa8] sm:$0xff]  ;;  %v6362_v31 = vld [vmem:[%s8633_s0 + $0xc0] sm:$0xff] }
 0x282   :  { %8698 = vst [vmem:[#allocation15_spill] sm:$0xff] %v6239_v5  ;;  %v953_v36 = vsel %vm946_vm4, %v927_v27, %v943_v43  ;;  %v961_v51 = vsel %vm946_vm4, %v943_v43, %v927_v27  ;;  %v1084_v17 = vmax.f32 %v1068_v50, 0.0  ;;  %v1583_v12 = vld [vmem:[#allocation8 + $0x88] sm:$0xff]  ;;  %8707 = vst [vmem:[#allocation22_spill] sm:$0xff] %v6362_v31  ;;  %v6405_v43 = vld [vmem:[%s8633_s0 + $0xf0] sm:$0xff] }
 0x283   :  { %v992_v58 = vmul.f32 %v976_v11, %v953_v36  ;;  %v993_v59 = vmul.f32 %v977_v25, %v961_v51  ;;  %1096 = vrot.lane.b32.xlu1 %v1080_v8, %s5523_s26  ;;  %1222 = vrot.lane.b32.xlu0 %v6181_v60, %s5525_s21  ;;  %v1070_v44 = vadd.f32 %v6108_v0, %v1006_v49  ;;  %v1085_v60 = vmax.f32 %v1069_v9, 0.0  ;;  %v1301_v55 = vld [vmem:[#allocation8 + $0x8] sm:$0xff]  ;;  %v6386_v11 = vld [vmem:[%s8633_s0 + $0xe0] sm:$0xff]  ;;  %v6391_v25 = vld [vmem:[%s8633_s0 + $0xd8] sm:$0xff] }
 0x284   :  { %v1071_v54 = vadd.f32 %v6108_v0, %v1007_v23  ;;  %4629 = vmatprep.mubr.msk.f32.mxu0 %vm370_vm0, %v1583_v12  ;;  %4621 = vmatprep.mubr.msk.f32.mxu1 %vm370_vm0, %v1301_v55  ;;  %8708 = vst [vmem:[#allocation23_spill] sm:$0xff] %v6372_v30  ;;  %8710 = vst [vmem:[#allocation25_spill] sm:$0xff] %v6386_v11  ;;  %v6448_v51 = vld [vmem:[#allocation3 + $0x8] sm:$0xff] }
 0x285   :  { %v945_v63 = vpop.permute.xlu0 %944  ;;  %v1086_v1 = vmax.f32 %v1070_v44, 0.0  ;;  %v1008_v6 = vadd.f32 %v992_v58, %v756_v34  ;;  %v1009_v48 = vadd.f32 %v993_v59, %v757_v62  ;;  %8711 = vst [vmem:[#allocation26_spill] sm:$0xff] %v6391_v25  ;;  %v6400_v34 = vld [vmem:[%s8633_s0 + $0xe8] sm:$0xff]  ;;  %8713 = vst [vmem:[#allocation28_spill] sm:$0xff] %v6405_v43  ;;  %v6440_v62 = vld [vmem:[#allocation3] sm:$0xff] }
 0x286   :  { %v954_v24 = vsel %vm946_vm4, %v929_v57, %v945_v63  ;;  %v962_v15 = vsel %vm946_vm4, %v945_v63, %v929_v57  ;;  %v1087_v35 = vmax.f32 %v1071_v54, 0.0  ;;  %8712 = vst [vmem:[#allocation27_spill] sm:$0xff] %v6400_v34  ;;  %v6414_v57 = vld [vmem:[%s8633_s0 + $0xf8] sm:$0xff]  ;;  %v6452_v58 = vld [vmem:[#allocation3 + $0x10] sm:$0xff] }
 0x287   :  { %v994_v46 = vmul.f32 %v978_v45, %v954_v24  ;;  %v995_v3 = vmul.f32 %v979_v61, %v962_v15  ;;  %1112 = vrot.lane.b32.xlu1 %v6224_v28, %s5523_s26  ;;  %1098 = vrot.lane.b32.xlu0 %v6226_v13, %s5523_s26  ;;  %v6269_v16 = vpack.c.bf16 %v1086_v1, %v1084_v17  ;;  %v6454_v59 = vld [vmem:[#allocation3 + $0x18] sm:$0xff] }
 0x288   :  { %v6267_v0 = vpack.c.bf16 %v1087_v35, %v1085_v60  ;;  %v1072_v42 = vadd.f32 %v6110_v2, %v1008_v6  ;;  %v1073_v14 = vadd.f32 %v6110_v2, %v1009_v48  ;;  %8714 = vst [vmem:[#allocation29_spill] sm:$0xff] %v6414_v57 }
 0x289   :  { %8701 = vst [vmem:[#allocation18_spill] sm:$0xff] %v6269_v16  ;;  %v1010_v29 = vadd.f32 %v994_v46, %v758_v53  ;;  %v1011_v7 = vadd.f32 %v995_v3, %v759_v26  ;;  %v5378_v46 = vld [vmem:[%s8636_s3 + $0x10] sm:$0xff]  ;;  %v5379_v3 = vld [vmem:[%s8636_s3 + $0x8] sm:$0xff] }
 0x28a   :  { %8700 = vst [vmem:[#allocation17_spill] sm:$0xff] %v6267_v0  ;;  %v1088_v20 = vmax.f32 %v1072_v42, 0.0  ;;  %v1089_v10 = vmax.f32 %v1073_v14, 0.0 }
 0x28b   :  { %1208 = vrot.lane.b32.xlu1 %v1080_v8, %s5525_s21  ;;  %1114 = vrot.lane.b32.xlu0 %v6232_v56, %s5523_s26  ;;  %v1074_v19 = vadd.f32 %v8702_v47, %v1010_v29  ;;  %v1075_v39 = vadd.f32 %v8702_v47, %v1011_v7  ;;  %v6304_v8 = vld [vmem:[%s8633_s0 + $0x90] sm:$0xff]  ;;  %v6495_v29 = vld [vmem:[#allocation3 + $0x20] sm:$0xff] }
 0x28c   :  { %v5380_v47 = vld [vmem:[%s8636_s3 + $0x20] sm:$0xff] }
 0x28d   :  { %v1090_v21 = vmax.f32 %v1074_v19, 0.0  ;;  %v1091_v41 = vmax.f32 %v1075_v39, 0.0  ;;  %v5381_v19 = vld [vmem:[%s8636_s3 + $0x18] sm:$0xff]  ;;  %v6505_v39 = vld [vmem:[#allocation3 + $0x28] sm:$0xff] }
 0x28f   :  { %1224 = vrot.lane.b32.xlu1 %v6224_v28, %s5525_s21  ;;  %1210 = vrot.lane.b32.xlu0 %v6226_v13, %s5525_s21  ;;  %v6282_v2 = vpack.c.bf16 %v1091_v41, %v1089_v10  ;;  %v6284_v27 = vpack.c.bf16 %v1090_v21, %v1088_v20  ;;  %v6312_v28 = vld [vmem:[%s8633_s0 + $0x80] sm:$0xff]  ;;  %v6317_v13 = vld [vmem:[%s8633_s0 + $0x98] sm:$0xff] }
 0x291   :  { %8703 = vst [vmem:[#allocation13_spill] sm:$0xff] %v6282_v2 }
 0x293   :  { %1100 = vrot.lane.b32.xlu1 %v1084_v17, %s5523_s26  ;;  %1226 = vrot.lane.b32.xlu0 %v6232_v56, %s5525_s21  ;;  %v6345_v56 = vld [vmem:[%s8633_s0 + $0xb8] sm:$0xff] }
 0x294   :  { %8706 = vst [vmem:[#allocation21_spill] sm:$0xff] %v6345_v56 }
 0x297   :  { %1116 = vrot.lane.b32.xlu1 %v1085_v60, %s5523_s26  ;;  %1102 = vrot.lane.b32.xlu0 %v1086_v1, %s5523_s26 }
 0x29b   :  { %1104 = vrot.lane.b32.xlu1 %v1088_v20, %s5523_s26  ;;  %1118 = vrot.lane.b32.xlu0 %v1087_v35, %s5523_s26 }
 0x29f   :  { %1120 = vrot.lane.b32.xlu1 %v1089_v10, %s5523_s26  ;;  %1106 = vrot.lane.b32.xlu0 %v1090_v21, %s5523_s26 }
 0x2a3   :  { %1212 = vrot.lane.b32.xlu1 %v1084_v17, %s5525_s21  ;;  %1122 = vrot.lane.b32.xlu0 %v1091_v41, %s5523_s26 }
 0x2a7   :  { %1228 = vrot.lane.b32.xlu1 %v1085_v60, %s5525_s21  ;;  %1214 = vrot.lane.b32.xlu0 %v1086_v1, %s5525_s21  ;;  %v5377_v60 = vld [vmem:[%s8636_s3] sm:$0xff] }
 0x2ab   :  { %1216 = vrot.lane.b32.xlu1 %v1088_v20, %s5525_s21  ;;  %1230 = vrot.lane.b32.xlu0 %v1087_v35, %s5525_s21 }
 0x2af   :  { %1232 = vrot.lane.b32.xlu1 %v1089_v10, %s5525_s21  ;;  %2354 = vrot.lane.b32.xlu0 %v6304_v8, %s5523_s26  ;;  %v6509_v10 = vld [vmem:[#allocation3 + $0x30] sm:$0xff] }
 0x2b3   :  { %2352 = vrot.lane.b32.xlu1 %v6312_v28, %s5523_s26  ;;  %2370 = vrot.lane.b32.xlu0 %v6317_v13, %s5523_s26 }
 0x2b7   :  { %2368 = vrot.lane.b32.xlu1 %v6326_v22, %s5523_s26  ;;  %2358 = vrot.lane.b32.xlu0 %v6331_v37, %s5523_s26 }
 0x2bb   :  { %2356 = vrot.lane.b32.xlu1 %v6340_v33, %s5523_s26  ;;  %2374 = vrot.lane.b32.xlu0 %v6345_v56, %s5523_s26 }
 0x2bf   :  { %2372 = vrot.lane.b32.xlu1 %v6354_v38, %s5523_s26  ;;  %1218 = vrot.lane.b32.xlu0 %v1090_v21, %s5525_s21  ;;  %v6511_v21 = vld [vmem:[#allocation3 + $0x38] sm:$0xff] }
 0x2c3   :  { %2360 = vrot.lane.b32.xlu1 %v6362_v31, %s5523_s26  ;;  %1234 = vrot.lane.b32.xlu0 %v1091_v41, %s5525_s21 }
 0x2c7   :  { %2376 = vrot.lane.b32.xlu1 %v6372_v30, %s5523_s26  ;;  %2362 = vrot.lane.b32.xlu0 %v6377_v4, %s5523_s26 }
 0x2cb   :  { %2364 = vrot.lane.b32.xlu1 %v6386_v11, %s5523_s26  ;;  %2378 = vrot.lane.b32.xlu0 %v6391_v25, %s5523_s26 }
 0x2cf   :  { %2380 = vrot.lane.b32.xlu1 %v6400_v34, %s5523_s26  ;;  %2366 = vrot.lane.b32.xlu0 %v6405_v43, %s5523_s26 }
 0x2d3   :  { %2464 = vrot.lane.b32.xlu1 %v6312_v28, %s5525_s21  ;;  %2382 = vrot.lane.b32.xlu0 %v6414_v57, %s5523_s26 }
 0x2d7   :  { %2480 = vrot.lane.b32.xlu1 %v6326_v22, %s5525_s21  ;;  %2466 = vrot.lane.b32.xlu0 %v6304_v8, %s5525_s21 }
 0x2db   :  { %2468 = vrot.lane.b32.xlu1 %v6340_v33, %s5525_s21  ;;  %2482 = vrot.lane.b32.xlu0 %v6317_v13, %s5525_s21  ;;  %v6644_v33 = vld [vmem:[#allocation3 + $0x138] sm:$0xff] }
 0x2df   :  { %2484 = vrot.lane.b32.xlu1 %v6354_v38, %s5525_s21  ;;  %2470 = vrot.lane.b32.xlu0 %v6331_v37, %s5525_s21 }
 0x2e3   :  { %2472 = vrot.lane.b32.xlu1 %v6362_v31, %s5525_s21  ;;  %2486 = vrot.lane.b32.xlu0 %v6345_v56, %s5525_s21 }
 0x2e5   :  { %v1093_v50 = vpop.permute.xlu1 %1092 }
 0x2e7   :  { %2488 = vrot.lane.b32.xlu1 %v6372_v30, %s5525_s21  ;;  %2474 = vrot.lane.b32.xlu0 %v6377_v4, %s5525_s21  ;;  %v6637_v30 = vld [vmem:[#allocation3 + $0x110] sm:$0xff] }
 0x2e8   :  { %8717 = vst [vmem:[#allocation32_spill] sm:$0xff] %v6637_v30 }
 0x2e9   :  { %v1109_v49 = vpop.permute.xlu1 %1108  ;;  %v1095_v23 = vpop.permute.xlu0 %1094 }
 0x2ea   :  { %v1132_v36 = vsel %vm127_vm1, %v1109_v49, %v1093_v50  ;;  %v1124_v9 = vsel %vm127_vm1, %v1093_v50, %v1109_v49 }
 0x2eb   :  { %2476 = vrot.lane.b32.xlu1 %v6386_v11, %s5525_s21  ;;  %2490 = vrot.lane.b32.xlu0 %v6391_v25, %s5525_s21  ;;  %v1156_v45 = vmul.f32 %v6440_v62, %v1132_v36  ;;  %v1157_v63 = vmul.f32 %v6448_v51, %v1124_v9 }
 0x2ed   :  { %v6456_v44 = vpop.permute.xlu1 %1204  ;;  %v1111_v53 = vpop.permute.xlu0 %1110 }
 0x2ee   :  { %v1125_v61 = vsel %vm127_vm1, %v1095_v23, %v1111_v53  ;;  %v1133_v54 = vsel %vm127_vm1, %v1111_v53, %v1095_v23  ;;  %v5382_v53 = vld [vmem:[%s8636_s3 + $0x30] sm:$0xff] }
 0x2ef   :  { %v1158_v17 = vmul.f32 %v6452_v58, %v1133_v54  ;;  %v1159_v1 = vmul.f32 %v6454_v59, %v1125_v61  ;;  %2492 = vrot.lane.b32.xlu1 %v6400_v34, %s5525_s21  ;;  %2478 = vrot.lane.b32.xlu0 %v6405_v43, %s5525_s21  ;;  %v6570_v43 = vld [vmem:[#allocation3 + $0x60] sm:$0xff] }
 0x2f1   :  { %v6470_v6 = vpack.c.bf16 %v1158_v17, %v1156_v45  ;;  %v6472_v48 = vpop.permute.xlu1 %1220  ;;  %v6474_v24 = vpop.permute.xlu0 %1206  ;;  %v6476_v15 = vpack.c.bf16 %v1159_v1, %v1157_v63  ;;  %v5383_v45 = vld [vmem:[%s8636_s3 + $0x28] sm:$0xff]  ;;  %v5384_v1 = vld [vmem:[%s8636_s3 + $0x38] sm:$0xff] }
 0x2f3   :  { %3269 = vperm.xlu1 %5312, %v5377_v60   ;;  %2494 = vrot.lane.b32.xlu0 %v6414_v57, %s5525_s21 }
 0x2f4   :  { %4870 = vmatprep.subr.bf16.mxu1 %v6476_v15  ;;  %4918 = vmatprep.subr.bf16.mxu0 %v6476_v15 }
 0x2f5   :  { %4872 = vmatpush1.bf16.msra.mxu1 %v6470_v6  ;;  %4920 = vmatpush1.bf16.msra.mxu0 %v6470_v6  ;;  %v1097_v35 = vpop.permute.xlu1 %1096  ;;  %v6487_v26 = vpop.permute.xlu0 %1222 }
 0x2f7   :  { %3279 = vperm.xlu1 %5312, %v5378_v46   ;;  %3274 = vperm.xlu0 %5311, %v5379_v3  }
 0x2f9   :  { %v1113_v42 = vpop.permute.xlu1 %1112  ;;  %v1099_v14 = vpop.permute.xlu0 %1098 }
 0x2fa   :  { %v1134_v7 = vsel %vm127_vm1, %v1113_v42, %v1097_v35  ;;  %v1126_v20 = vsel %vm127_vm1, %v1097_v35, %v1113_v42  ;;  %v6546_v42 = vld [vmem:[#allocation3 + $0x40] sm:$0xff] }
 0x2fb   :  { %3289 = vperm.xlu1 %5312, %v5380_v47   ;;  %3284 = vperm.xlu0 %5311, %v5381_v19   ;;  %v1160_v55 = vmul.f32 %v6495_v29, %v1134_v7  ;;  %v1161_v23 = vmul.f32 %v6505_v39, %v1126_v20  ;;  %v6554_v19 = vld [vmem:[#allocation3 + $0x50] sm:$0xff]  ;;  %v6556_v20 = vld [vmem:[#allocation3 + $0x58] sm:$0xff] }
 0x2fd   :  { %v6513_v41 = vpop.permute.xlu1 %1208  ;;  %v1115_v12 = vpop.permute.xlu0 %1114 }
 0x2fe   :  { %v1127_v50 = vsel %vm127_vm1, %v1099_v14, %v1115_v12  ;;  %v1135_v49 = vsel %vm127_vm1, %v1115_v12, %v1099_v14  ;;  %v6548_v14 = vld [vmem:[#allocation3 + $0x48] sm:$0xff] }
 0x2ff   :  { %v1162_v36 = vmul.f32 %v6509_v10, %v1135_v49  ;;  %v1163_v9 = vmul.f32 %v6511_v21, %v1127_v50  ;;  %3299 = vperm.xlu1 %5312, %v5382_v53   ;;  %3294 = vperm.xlu0 %5311, %v5383_v45  }
 0x301   :  { %v6529_v61 = vpack.c.bf16 %v1162_v36, %v1160_v55  ;;  %v6531_v54 = vpop.permute.xlu1 %1224  ;;  %v6533_v63 = vpop.permute.xlu0 %1210  ;;  %v6535_v17 = vpack.c.bf16 %v1163_v9, %v1161_v23 }
 0x303   :  { %3304 = vperm.xlu0 %5311, %v5384_v1   ;;  %4874 = vmatprep.subr.bf16.mxu1 %v6535_v17 }
 0x304   :  { %4922 = vmatprep.subr.bf16.mxu0 %v6535_v17  ;;  %4876 = vmatpush1.bf16.msra.mxu1 %v6529_v61 }
 0x305   :  { %4924 = vmatpush1.bf16.msra.mxu0 %v6529_v61  ;;  %v1101_v60 = vpop.permute.xlu1 %1100  ;;  %v6544_v35 = vpop.permute.xlu0 %1226 }
 0x309   :  { %v1117_v46 = vpop.permute.xlu1 %1116  ;;  %v1103_v3 = vpop.permute.xlu0 %1102 }
 0x30a   :  { %v1128_v7 = vsel %vm127_vm1, %v1101_v60, %v1117_v46  ;;  %v1136_v47 = vsel %vm127_vm1, %v1117_v46, %v1101_v60 }
 0x30b   :  { %v1164_v23 = vmul.f32 %v6546_v42, %v1136_v47  ;;  %v1165_v36 = vmul.f32 %v6548_v14, %v1128_v7 }
 0x30d   :  { %v1105_v12 = vpop.permute.xlu1 %1104  ;;  %v1119_v55 = vpop.permute.xlu0 %1118 }
 0x30e   :  { %v1129_v50 = vsel %vm127_vm1, %v1103_v3, %v1119_v55  ;;  %v1137_v49 = vsel %vm127_vm1, %v1119_v55, %v1103_v3  ;;  %v6574_v3 = vld [vmem:[#allocation3 + $0x68] sm:$0xff]  ;;  %v6582_v55 = vld [vmem:[#allocation3 + $0x70] sm:$0xff] }
 0x30f   :  { %v1166_v9 = vmul.f32 %v6554_v19, %v1137_v49  ;;  %v1167_v53 = vmul.f32 %v6556_v20, %v1129_v50  ;;  %v6584_v50 = vld [vmem:[#allocation3 + $0x78] sm:$0xff] }
 0x311   :  { %v6566_v45 = vpack.c.bf16 %v1166_v9, %v1164_v23  ;;  %v1121_v1 = vpop.permute.xlu1 %1120  ;;  %v1107_v60 = vpop.permute.xlu0 %1106  ;;  %v6568_v46 = vpack.c.bf16 %v1167_v53, %v1165_v36 }
 0x312   :  { %v1130_v7 = vsel %vm127_vm1, %v1105_v12, %v1121_v1  ;;  %v1138_v47 = vsel %vm127_vm1, %v1121_v1, %v1105_v12 }
 0x313   :  { %4878 = vmatprep.subr.bf16.mxu1 %v6568_v46  ;;  %4926 = vmatprep.subr.bf16.mxu0 %v6568_v46  ;;  %v1168_v53 = vmul.f32 %v6570_v43, %v1138_v47  ;;  %v1169_v12 = vmul.f32 %v6574_v3, %v1130_v7 }
 0x314   :  { %4880 = vmatpush1.bf16.msra.mxu1 %v6566_v45  ;;  %4928 = vmatpush1.bf16.msra.mxu0 %v6566_v45 }
 0x315   :  { %v6586_v49 = vpop.permute.xlu1 %1212  ;;  %v1123_v23 = vpop.permute.xlu0 %1122 }
 0x316   :  { %v1131_v36 = vsel %vm127_vm1, %v1107_v60, %v1123_v23  ;;  %v1139_v9 = vsel %vm127_vm1, %v1123_v23, %v1107_v60  ;;  %v6620_v23 = vld [vmem:[#allocation3 + $0x118] sm:$0xff] }
 0x317   :  { %v1170_v1 = vmul.f32 %v6582_v55, %v1139_v9  ;;  %v1171_v11 = vmul.f32 %v6584_v50, %v1131_v36  ;;  %8715 = vst [vmem:[#allocation30_spill] sm:$0xff] %v6620_v23  ;;  %v1245_v36 = vsel %vm240_vm2, %v6487_v26, %v6474_v24  ;;  %v6626_v9 = vld [vmem:[#allocation3 + $0x108] sm:$0xff] }
 0x318   :  { %8716 = vst [vmem:[#allocation31_spill] sm:$0xff] %v6626_v9 }
 0x319   :  { %v6596_v57 = vpack.c.bf16 %v1170_v1, %v1168_v53  ;;  %v6598_v34 = vpop.permute.xlu1 %1228  ;;  %v6600_v4 = vpop.permute.xlu0 %1214  ;;  %v6602_v31 = vpack.c.bf16 %v1171_v11, %v1169_v12  ;;  %v1244_v53 = vsel %vm240_vm2, %v6472_v48, %v6456_v44  ;;  %v1271_v12 = vmul.f32 %v6620_v23, %v1245_v36 }
 0x31a   :  { %v1269_v37 = vmul.f32 %v6626_v9, %v1244_v53  ;;  %v1247_v36 = vsel %vm240_vm2, %v6544_v35, %v6533_v63  ;;  %v1236_v23 = vsel %vm240_vm2, %v6456_v44, %v6472_v48  ;;  %v1246_v9 = vsel %vm240_vm2, %v6531_v54, %v6513_v41 }
 0x31b   :  { %4882 = vmatprep.subr.bf16.mxu1 %v6602_v31  ;;  %4930 = vmatprep.subr.bf16.mxu0 %v6602_v31 }
 0x31c   :  { %4884 = vmatpush1.bf16.msra.mxu1 %v6596_v57  ;;  %4932 = vmatpush1.bf16.msra.mxu0 %v6596_v57 }
 0x31d   :  { %v6608_v60 = vpop.permute.xlu1 %1216  ;;  %4886 = vmatprep.subr.bf16.mxu1 %v6200_v40  ;;  %4934 = vmatprep.subr.bf16.mxu0 %v6200_v40  ;;  %v6612_v7 = vpop.permute.xlu0 %1230 }
 0x320   :  { %4888 = vmatpush1.bf16.msra.mxu1 %v6202_v52  ;;  %4936 = vmatpush1.bf16.msra.mxu0 %v6202_v52 }
 0x321   :  { %v6616_v11 = vpop.permute.xlu1 %1232  ;;  %4890 = vmatprep.subr.bf16.mxu1 %v6239_v5  ;;  %4938 = vmatprep.subr.bf16.mxu0 %v6239_v5  ;;  %v2355_v47 = vpop.permute.xlu0 %2354  ;;  %v1237_v5 = vsel %vm240_vm2, %v6474_v24, %v6487_v26  ;;  %v6660_v26 = vld [vmem:[#allocation3 + $0x100] sm:$0xff] }
 0x322   :  { %v1270_v53 = vmul.f32 %v6637_v30, %v1237_v5  ;;  %v1239_v5 = vsel %vm240_vm2, %v6533_v63, %v6544_v35  ;;  %v1275_v30 = vmul.f32 %v6644_v33, %v1247_v36  ;;  %v1268_v63 = vmul.f32 %v6660_v26, %v1236_v23  ;;  %v6695_v36 = vld [vmem:[#allocation3 + $0x158] sm:$0xff]  ;;  %v6715_v23 = vld [vmem:[#allocation3 + $0x148] sm:$0xff] }
 0x323   :  { %v1238_v35 = vsel %vm240_vm2, %v6513_v41, %v6531_v54  ;;  %8718 = vst [vmem:[#allocation33_spill] sm:$0xff] %v6715_v23 }
 0x324   :  { %4892 = vmatpush1.bf16.msra.mxu1 %v6242_v32  ;;  %4940 = vmatpush1.bf16.msra.mxu0 %v6242_v32  ;;  %v6712_v41 = vpack.c.bf16 %v1270_v53, %v1268_v63 }
 0x325   :  { %v2353_v1 = vpop.permute.xlu1 %2352  ;;  %4894 = vmatprep.subr.bf16.mxu1 %v6267_v0  ;;  %4942 = vmatprep.subr.bf16.mxu0 %v6267_v0  ;;  %v2371_v25 = vpop.permute.xlu0 %2370 }
 0x326   :  { %v2385_v0 = vsel %vm127_vm1, %v2355_v47, %v2371_v25  ;;  %v2393_v24 = vsel %vm127_vm1, %v2371_v25, %v2355_v47  ;;  %v6671_v25 = vpack.c.bf16 %v1271_v12, %v1269_v37  ;;  %v6673_v47 = vld [vmem:[#allocation3 + $0x128] sm:$0xff] }
 0x327   :  { %v2418_v37 = vmul.f32 %v2393_v24, %v6452_v58  ;;  %v2419_v12 = vmul.f32 %v2385_v0, %v6454_v59  ;;  %v1249_v58 = vsel %vm240_vm2, %v6612_v7, %v6600_v4  ;;  %v1273_v0 = vmul.f32 %v6673_v47, %v1246_v9  ;;  %v6721_v9 = vld [vmem:[#allocation3 + $0x150] sm:$0xff] }
 0x328   :  { %4896 = vmatpush1.bf16.msra.mxu1 %v6269_v16  ;;  %4944 = vmatpush1.bf16.msra.mxu0 %v6269_v16 }
 0x329   :  { %v2369_v44 = vpop.permute.xlu1 %2368  ;;  %4898 = vmatprep.subr.bf16.mxu1 %v6282_v2  ;;  %4946 = vmatprep.subr.bf16.mxu0 %v6282_v2  ;;  %v6669_v48 = vpop.permute.xlu0 %2358  ;;  %v6684_v2 = vld [vmem:[#allocation3 + $0x130] sm:$0xff]  ;;  %v6728_v24 = vpack.c.bf16 %v1275_v30, %v1273_v0 }
 0x32a   :  { %v2384_v16 = vsel %vm127_vm1, %v2353_v1, %v2369_v44  ;;  %v2392_v32 = vsel %vm127_vm1, %v2369_v44, %v2353_v1  ;;  %v1274_v54 = vmul.f32 %v6684_v2, %v1239_v5  ;;  %v1241_v1 = vsel %vm240_vm2, %v6600_v4, %v6612_v7  ;;  %v6736_v5 = vld [vmem:[#allocation3 + $0x140] sm:$0xff] }
 0x32b   :  { %v2416_v52 = vmul.f32 %v2392_v32, %v6440_v62  ;;  %v2417_v56 = vmul.f32 %v2384_v16, %v6448_v51  ;;  %v6703_v32 = vld [vmem:[#allocation3 + $0x120] sm:$0xff]  ;;  %v1240_v4 = vsel %vm240_vm2, %v6586_v49, %v6598_v34  ;;  %v1278_v63 = vmul.f32 %v6721_v9, %v1241_v1 }
 0x32c   :  { %4900 = vmatpush1.bf16.msra.mxu1 %v6284_v27  ;;  %4948 = vmatpush1.bf16.msra.mxu0 %v6284_v27  ;;  %v1272_v53 = vmul.f32 %v6703_v32, %v1238_v35  ;;  %v1250_v1 = vsel %vm240_vm2, %v6616_v11, %v6608_v60 }
 0x32d   :  { %v6706_v16 = vpack.c.bf16 %v2418_v37, %v2416_v52  ;;  %v2357_v62 = vpop.permute.xlu1 %2356  ;;  %4902 = vmatprep.subr.bf16.mxu1 %v6671_v25  ;;  %4950 = vmatprep.subr.bf16.mxu0 %v6671_v25  ;;  %v2375_v51 = vpop.permute.xlu0 %2374  ;;  %v6710_v59 = vpack.c.bf16 %v2419_v12, %v2417_v56  ;;  %v1248_v52 = vsel %vm240_vm2, %v6598_v34, %v6586_v49 }
 0x32e   :  { %v1279_v56 = vmul.f32 %v6695_v36, %v1249_v58  ;;  %v2395_v44 = vsel %vm127_vm1, %v2375_v51, %v6669_v48  ;;  %v1277_v30 = vmul.f32 %v6715_v23, %v1248_v52  ;;  %v6745_v12 = vpack.c.bf16 %v1274_v54, %v1272_v53  ;;  %v6750_v58 = vld [vmem:[#allocation3 + $0x160] sm:$0xff]  ;;  %v6757_v23 = vld [vmem:[#allocation3 + $0x168] sm:$0xff] }
 0x32f   :  { %v2422_v0 = vmul.f32 %v2395_v44, %v6509_v10  ;;  %v1276_v52 = vmul.f32 %v6736_v5, %v1240_v4  ;;  %v1242_v54 = vsel %vm240_vm2, %v6608_v60, %v6616_v11  ;;  %v6771_v10 = vld [vmem:[#allocation3 + $0x178] sm:$0xff] }
 0x330   :  { %4904 = vmatpush1.bf16.msra.mxu1 %v6712_v41  ;;  %4952 = vmatpush1.bf16.msra.mxu0 %v6712_v41  ;;  %8719 = vst [vmem:[#allocation34_spill] sm:$0xff] %v6745_v12  ;;  %v6754_v49 = vpack.c.bf16 %v1279_v56, %v1277_v30  ;;  %v1280_v30 = vmul.f32 %v6750_v58, %v1242_v54 }
 0x331   :  { %v2373_v7 = vpop.permute.xlu1 %2372  ;;  %4906 = vmatprep.subr.bf16.mxu1 %v6728_v24  ;;  %4954 = vmatprep.subr.bf16.mxu0 %v6728_v24  ;;  %v1219_v37 = vpop.permute.xlu0 %1218  ;;  %v6777_v4 = vpack.c.bf16 %v1278_v63, %v1276_v52  ;;  %v2387_v54 = vsel %vm127_vm1, %v6669_v48, %v2375_v51 }
 0x332   :  { %v2394_v35 = vsel %vm127_vm1, %v2373_v7, %v2357_v62  ;;  %8720 = vst [vmem:[#allocation35_spill] sm:$0xff] %v6754_v49 }
 0x333   :  { %v2420_v34 = vmul.f32 %v2394_v35, %v6495_v29  ;;  %v6769_v29 = vld [vmem:[#allocation3 + $0x170] sm:$0xff]  ;;  %v1281_v35 = vmul.f32 %v6757_v23, %v1250_v1 }
 0x334   :  { %4908 = vmatpush1.bf16.msra.mxu1 %v6745_v12  ;;  %4956 = vmatpush1.bf16.msra.mxu0 %v6745_v12 }
 0x335   :  { %v6773_v56 = vpack.c.bf16 %v2422_v0, %v2420_v34  ;;  %v2361_v53 = vpop.permute.xlu1 %2360  ;;  %4910 = vmatprep.subr.bf16.mxu1 %v6754_v49  ;;  %4958 = vmatprep.subr.bf16.mxu0 %v6754_v49  ;;  %v1235_v44 = vpop.permute.xlu0 %1234  ;;  %v2386_v49 = vsel %vm127_vm1, %v2357_v62, %v2373_v7  ;;  %v1582_v62 = vld [vmem:[#allocation8 + $0x80] sm:$0xff] }
 0x336   :  { %v1243_v60 = vsel %vm240_vm2, %v1219_v37, %v1235_v44  ;;  %v1251_v11 = vsel %vm240_vm2, %v1235_v44, %v1219_v37  ;;  %v2421_v1 = vmul.f32 %v2386_v49, %v6505_v39  ;;  %v1300_v7 = vld [vmem:[#allocation8] sm:$0xff]  ;;  %v2423_v44 = vmul.f32 %v2387_v54, %v6511_v21 }
 0x337   :  { %v1282_v0 = vmul.f32 %v6769_v29, %v1243_v60  ;;  %v1283_v34 = vmul.f32 %v6771_v10, %v1251_v11 }
 0x338   :  { %4912 = vmatpush1.bf16.msra.mxu1 %v6777_v4  ;;  %4960 = vmatpush1.bf16.msra.mxu0 %v6777_v4  ;;  %v6813_v21 = vpack.c.bf16 %v2423_v44, %v2421_v1 }
 0x339   :  { %v6791_v63 = vpack.c.bf16 %v1282_v0, %v1280_v30  ;;  %v2377_v52 = vpop.permute.xlu1 %2376  ;;  %v2363_v12 = vpop.permute.xlu0 %2362  ;;  %v6793_v37 = vpack.c.bf16 %v1283_v34, %v1281_v35  ;;  %v1585_v30 = vld [vmem:[#allocation8 + $0x98] sm:$0xff]  ;;  %v1584_v0 = vld [vmem:[#allocation8 + $0x90] sm:$0xff] }
 0x33a   :  { %v2388_v39 = vsel %vm127_vm1, %v2361_v53, %v2377_v52  ;;  %v2396_v35 = vsel %vm127_vm1, %v2377_v52, %v2361_v53  ;;  %v1302_v34 = vld [vmem:[#allocation8 + $0x10] sm:$0xff] }
 0x33b   :  { %4914 = vmatprep.subr.bf16.mxu1 %v6793_v37  ;;  %4962 = vmatprep.subr.bf16.mxu0 %v6793_v37  ;;  %v2425_v54 = vmul.f32 %v2388_v39, %v6548_v14  ;;  %v1587_v14 = vld [vmem:[#allocation8 + $0xa8] sm:$0xff] }
 0x33c   :  { %4916 = vmatpush1.bf16.msra.mxu1 %v6791_v63  ;;  %4964 = vmatpush1.bf16.msra.mxu0 %v6791_v63 }
 0x33d   :  { %v2365_v60 = vpop.permute.xlu1 %2364  ;;  %4966 = vmatprep.subr.bf16.mxu1 %v6476_v15  ;;  %5014 = vmatprep.subr.bf16.mxu0 %v6710_v59  ;;  %v2379_v48 = vpop.permute.xlu0 %2378  ;;  %v1303_v15 = vld [vmem:[#allocation8 + $0x18] sm:$0xff] }
 0x33e   :  { %v2389_v51 = vsel %vm127_vm1, %v2363_v12, %v2379_v48  ;;  %v2397_v49 = vsel %vm127_vm1, %v2379_v48, %v2363_v12 }
 0x33f   :  { %v2427_v11 = vmul.f32 %v2389_v51, %v6556_v20  ;;  %1687 = vmatmul.mubr.f32.vlgmr.msra.gmra.mrb[32].mxu0 %v1582_v62  ;;  %1453 = vmatmul.mubr.f32.vlgmr.msra.gmra.mrb[16].mxu1 %v1300_v7  ;;  %v2426_v12 = vmul.f32 %v2397_v49, %v6554_v19  ;;  %v1305_v19 = vld [vmem:[#allocation8 + $0x28] sm:$0xff]  ;;  %v1586_v62 = vld [vmem:[#allocation8 + $0xa0] sm:$0xff]  ;;  %v1589_v51 = vld [vmem:[#allocation8 + $0xb8] sm:$0xff] }
 0x340   :  { %4968 = vmatpush1.bf16.msra.mxu1 %v6470_v6  ;;  %5016 = vmatpush1.bf16.msra.mxu0 %v6706_v16  ;;  %v2424_v6 = vmul.f32 %v2396_v35, %v6546_v42  ;;  %v1304_v7 = vld [vmem:[#allocation8 + $0x20] sm:$0xff] }
 0x341   :  { %v2381_v20 = vpop.permute.xlu1 %2380  ;;  %4970 = vmatprep.subr.bf16.mxu1 %v6535_v17  ;;  %5018 = vmatprep.subr.bf16.mxu0 %v6813_v21  ;;  %v2367_v1 = vpop.permute.xlu0 %2366  ;;  %v6828_v52 = vpack.c.bf16 %v2427_v11, %v2425_v54 }
 0x342   :  { %4630 = vmatprep.mubr.msk.f32.mxu0 %vm370_vm0, %v1585_v30  ;;  %4622 = vmatprep.mubr.msk.f32.mxu1 %vm370_vm0, %v1303_v15  ;;  %v2398_v53 = vsel %vm127_vm1, %v2381_v20, %v2365_v60  ;;  %v2390_v17 = vsel %vm127_vm1, %v2365_v60, %v2381_v20  ;;  %v6834_v44 = vpack.c.bf16 %v2426_v12, %v2424_v6  ;;  %v1588_v30 = vld [vmem:[#allocation8 + $0xb0] sm:$0xff]  ;;  %v8721_v12 = vld [vmem:[#allocation21_spill] sm:$0xff] }
 0x343   :  { %1693 = vmatmul.mubr.f32.gmra.mrb[34].mxu0 %v1584_v0  ;;  %1459 = vmatmul.mubr.f32.gmra.mrb[18].mxu1 %v1302_v34  ;;  %v2428_v39 = vmul.f32 %v2398_v53, %v6570_v43  ;;  %v2429_v49 = vmul.f32 %v2390_v17, %v6574_v3  ;;  %v1307_v43 = vld [vmem:[#allocation8 + $0x38] sm:$0xff]  ;;  %v6859_v3 = vpack.c.bf16 %v6317_v13, %v6326_v22  ;;  %v1590_v13 = vld [vmem:[#allocation8 + $0xc0] sm:$0xff] }
 0x344   :  { %4972 = vmatpush1.bf16.msra.mxu1 %v6529_v61  ;;  %5020 = vmatpush1.bf16.msra.mxu0 %v6773_v56  ;;  %v6876_v20 = vpack.c.bf16 %v8721_v12, %v6354_v38  ;;  %v1311_v53 = vld [vmem:[#allocation8 + $0x58] sm:$0xff]  ;;  %v8733_v12 = vld [vmem:[#allocation29_spill] sm:$0xff] }
 0x345   :  { %v6836_v42 = vpop.permute.xlu1 %2464  ;;  %4974 = vmatprep.subr.bf16.mxu1 %v6568_v46  ;;  %5022 = vmatprep.subr.bf16.mxu0 %v6828_v52  ;;  %v2383_v48 = vpop.permute.xlu0 %2382 }
 0x346   :  { %v2391_v60 = vsel %vm127_vm1, %v2367_v1, %v2383_v48  ;;  %v2399_v61 = vsel %vm127_vm1, %v2383_v48, %v2367_v1  ;;  %4631 = vmatprep.mubr.msk.f32.mxu0 %vm370_vm0, %v1587_v14  ;;  %4623 = vmatprep.mubr.msk.f32.mxu1 %vm370_vm0, %v1305_v19  ;;  %v8724_v1 = vld [vmem:[#allocation19_spill] sm:$0xff] }
 0x347   :  { %v2430_v46 = vmul.f32 %v2399_v61, %v6582_v55  ;;  %v2431_v11 = vmul.f32 %v2391_v60, %v6584_v50  ;;  %1699 = vmatmul.mubr.f32.gmra.mrb[36].mxu0 %v1586_v62  ;;  %1465 = vmatmul.mubr.f32.gmra.mrb[20].mxu1 %v1304_v7  ;;  %v1591_v55 = vld [vmem:[#allocation8 + $0xc8] sm:$0xff]  ;;  %v1592_v14 = vld [vmem:[#allocation8 + $0xd0] sm:$0xff] }
 0x348   :  { %4976 = vmatpush1.bf16.msra.mxu1 %v6566_v45  ;;  %5024 = vmatpush1.bf16.msra.mxu0 %v6834_v44  ;;  %v1306_v45 = vld [vmem:[#allocation8 + $0x30] sm:$0xff]  ;;  %v1309_v50 = vld [vmem:[#allocation8 + $0x48] sm:$0xff] }
 0x349   :  { %v6852_v15 = vpack.c.bf16 %v2430_v46, %v2428_v39  ;;  %v2481_v35 = vpop.permute.xlu1 %2480  ;;  %4978 = vmatprep.subr.bf16.mxu1 %v6602_v31  ;;  %v2467_v0 = vpop.permute.xlu0 %2466  ;;  %v6855_v34 = vpack.c.bf16 %v2431_v11, %v2429_v49  ;;  %4632 = vmatprep.mubr.msk.f32.mxu0 %vm370_vm0, %v1589_v51  ;;  %v6868_v31 = vpack.c.bf16 %v6304_v8, %v6312_v28  ;;  %v1308_v8 = vld [vmem:[#allocation8 + $0x40] sm:$0xff]  ;;  %v1593_v28 = vld [vmem:[#allocation8 + $0xd8] sm:$0xff]  ;;  %v8725_v19 = vld [vmem:[#allocation15_spill] sm:$0xff] }
 0x34a   :  { %4624 = vmatprep.mubr.msk.f32.mxu1 %vm370_vm0, %v1307_v43  ;;  %v8726_v62 = vld [vmem:[#allocation23_spill] sm:$0xff]  ;;  %v8727_v7 = vld [vmem:[#allocation26_spill] sm:$0xff]  ;;  %v8728_v51 = vld [vmem:[#allocation16_spill] sm:$0xff] }
 0x34b   :  { %5026 = vmatprep.subr.bf16.mxu0 %v6855_v34  ;;  %1705 = vmatmul.mubr.f32.gmra.mrb[38].mxu0 %v1588_v30  ;;  %v6890_v48 = vpack.c.bf16 %v8727_v7, %v8726_v62  ;;  %v1310_v39 = vld [vmem:[#allocation8 + $0x50] sm:$0xff]  ;;  %v1595_v60 = vld [vmem:[#allocation8 + $0xe8] sm:$0xff]  ;;  %v8730_v46 = vld [vmem:[#allocation24_spill] sm:$0xff] }
 0x34c   :  { %4980 = vmatpush1.bf16.msra.mxu1 %v6596_v57  ;;  %5028 = vmatpush1.bf16.msra.mxu0 %v6852_v15  ;;  %v8722_v57 = vld [vmem:[#allocation14_spill] sm:$0xff]  ;;  %v1594_v30 = vld [vmem:[#allocation8 + $0xe0] sm:$0xff] }
 0x34d   :  { %v6870_v22 = vpop.permute.xlu1 %2468  ;;  %4982 = vmatprep.subr.bf16.mxu1 %v6200_v40  ;;  %v2483_v54 = vpop.permute.xlu0 %2482  ;;  %5030 = vmatprep.subr.bf16.mxu0 %v6859_v3  ;;  %v8723_v40 = vld [vmem:[#allocation20_spill] sm:$0xff]  ;;  %v8729_v49 = vld [vmem:[#allocation22_spill] sm:$0xff] }
 0x34e   :  { %1471 = vmatmul.mubr.f32.gmra.mrb[22].mxu1 %v1306_v45  ;;  %4633 = vmatprep.mubr.msk.f32.mxu0 %vm370_vm0, %v1591_v55  ;;  %v6884_v6 = vpack.c.bf16 %v8724_v1, %v8723_v40  ;;  %v2505_v61 = vsel %vm240_vm2, %v2483_v54, %v2467_v0  ;;  %v6900_v11 = vpack.c.bf16 %v8730_v46, %v8729_v49  ;;  %v1313_v43 = vld [vmem:[#allocation8 + $0x68] sm:$0xff]  ;;  %v8731_v55 = vld [vmem:[#allocation17_spill] sm:$0xff] }
 0x34f   :  { %4625 = vmatprep.mubr.msk.f32.mxu1 %vm370_vm0, %v1309_v50  ;;  %1711 = vmatmul.mubr.f32.gmra.mrb[40].mxu0 %v1590_v13  ;;  %v8732_v13 = vld [vmem:[#allocation27_spill] sm:$0xff]  ;;  %v2496_v40 = vsel %vm240_vm2, %v6836_v42, %v2481_v35  ;;  %v8734_v1 = vld [vmem:[#allocation30_spill] sm:$0xff] }
 0x350   :  { %4984 = vmatpush1.bf16.msra.mxu1 %v8722_v57  ;;  %5032 = vmatpush1.bf16.msra.mxu0 %v6868_v31  ;;  %v2497_v57 = vsel %vm240_vm2, %v2467_v0, %v2483_v54  ;;  %v8735_v7 = vld [vmem:[#allocation18_spill] sm:$0xff]  ;;  %v8736_v0 = vld [vmem:[#allocation25_spill] sm:$0xff]  ;;  %v8737_v54 = vld [vmem:[#allocation28_spill] sm:$0xff] }
 0x351   :  { %v2485_v38 = vpop.permute.xlu1 %2484  ;;  %4986 = vmatprep.subr.bf16.mxu1 %v8725_v19  ;;  %v2471_v17 = vpop.permute.xlu0 %2470  ;;  %5034 = vmatprep.subr.bf16.mxu0 %v6876_v20  ;;  %v1597_v19 = vld [vmem:[#allocation8 + $0xf8] sm:$0xff] }
 0x352   :  { %1477 = vmatmul.mubr.f32.gmra.mrb[24].mxu1 %v1308_v8  ;;  %4634 = vmatprep.mubr.msk.f32.mxu0 %vm370_vm0, %v1593_v28  ;;  %v6906_v8 = vpack.c.bf16 %v8733_v12, %v8732_v13  ;;  %v2504_v28 = vsel %vm240_vm2, %v2481_v35, %v6836_v42  ;;  %v1596_v42 = vld [vmem:[#allocation8 + $0xf0] sm:$0xff]  ;;  %v2506_v13 = vsel %vm240_vm2, %v2485_v38, %v6870_v22 }
 0x353   :  { %4626 = vmatprep.mubr.msk.f32.mxu1 %vm370_vm0, %v1311_v53  ;;  %1717 = vmatmul.mubr.f32.gmra.mrb[42].mxu0 %v1592_v14  ;;  %v2531_v53 = vmul.f32 %v2505_v61, %v8734_v1  ;;  %v1312_v14 = vld [vmem:[#allocation8 + $0x60] sm:$0xff]  ;;  %v8738_v35 = vld [vmem:[#allocation31_spill] sm:$0xff] }
 0x354   :  { %4988 = vmatpush1.bf16.msra.mxu1 %v8728_v51  ;;  %5036 = vmatpush1.bf16.msra.mxu0 %v6884_v6  ;;  %v2529_v61 = vmul.f32 %v2504_v28, %v8738_v35  ;;  %v8739_v51 = vld [vmem:[#allocation32_spill] sm:$0xff]  ;;  %v1314_v1 = vld [vmem:[#allocation8 + $0x70] sm:$0xff] }
 0x355   :  { %v2473_v45 = vpop.permute.xlu1 %2472  ;;  %4990 = vmatprep.subr.bf16.mxu1 %v8731_v55  ;;  %v2487_v50 = vpop.permute.xlu0 %2486  ;;  %5038 = vmatprep.subr.bf16.mxu0 %v6890_v48  ;;  %v2530_v49 = vmul.f32 %v2497_v57, %v8739_v51  ;;  %v2528_v55 = vmul.f32 %v2496_v40, %v6660_v26  ;;  %v1753_v26 = vld [vmem:[#allocation8 + $0x108] sm:$0xff] }
 0x356   :  { %1483 = vmatmul.mubr.f32.gmra.mrb[26].mxu1 %v1310_v39  ;;  %4635 = vmatprep.mubr.msk.f32.mxu0 %vm370_vm0, %v1595_v60  ;;  %v2507_v62 = vsel %vm240_vm2, %v2487_v50, %v2471_v17  ;;  %v6925_v39 = vpack.c.bf16 %v8737_v54, %v8736_v0  ;;  %v1315_v60 = vld [vmem:[#allocation8 + $0x78] sm:$0xff]  ;;  %v2499_v12 = vsel %vm240_vm2, %v2471_v17, %v2487_v50 }
 0x357   :  { %4627 = vmatprep.mubr.msk.f32.mxu1 %vm370_vm0, %v1313_v43  ;;  %1723 = vmatmul.mubr.f32.gmra.mrb[44].mxu0 %v1594_v30  ;;  %v8740_v43 = vld [vmem:[#allocation13_spill] sm:$0xff]  ;;  %v2535_v28 = vmul.f32 %v2507_v62, %v6644_v33  ;;  %v6939_v57 = vpack.c.bf16 %v2531_v53, %v2529_v61  ;;  %v6944_v40 = vpack.c.bf16 %v2530_v49, %v2528_v55  ;;  %v8742_v61 = vld [vmem:[#allocation34_spill] sm:$0xff] }
 0x358   :  { %4992 = vmatpush1.bf16.msra.mxu1 %v8735_v7  ;;  %5040 = vmatpush1.bf16.msra.mxu0 %v6900_v11  ;;  %v2561_v7 = vld [vmem:[#allocation6 + $0x8] sm:$0xff]  ;;  %v2498_v17 = vsel %vm240_vm2, %v6870_v22, %v2485_v38  ;;  %v2533_v33 = vmul.f32 %v2506_v13, %v6673_v47  ;;  %v8741_v62 = vld [vmem:[#allocation33_spill] sm:$0xff] }
 0x359   :  { %v2489_v46 = vpop.permute.xlu1 %2488  ;;  %4994 = vmatprep.subr.bf16.mxu1 %v8740_v43  ;;  %v2475_v30 = vpop.permute.xlu0 %2474  ;;  %5042 = vmatprep.subr.bf16.mxu0 %v6906_v8 }
 0x35a   :  { %1489 = vmatmul.mubr.f32.gmra.mrb[28].mxu1 %v1312_v14  ;;  %4636 = vmatprep.mubr.msk.f32.mxu0 %vm370_vm0, %v1597_v19  ;;  %v2534_v14 = vmul.f32 %v2499_v12, %v6684_v2  ;;  %v2532_v2 = vmul.f32 %v2498_v17, %v6703_v32  ;;  %v2500_v38 = vsel %vm240_vm2, %v2473_v45, %v2489_v46  ;;  %v2568_v17 = vld [vmem:[#allocation6 + $0x40] sm:$0xff] }
 0x35b   :  { %4628 = vmatprep.mubr.msk.f32.mxu1 %vm370_vm0, %v1315_v60  ;;  %1729 = vmatmul.mubr.f32.gmra.mrb[46].mxu0 %v1596_v42 }
 0x35c   :  { %4996 = vmatpush1.bf16.msra.mxu1 %v6284_v27  ;;  %5044 = vmatpush1.bf16.msra.mxu0 %v6925_v39  ;;  %v2508_v27 = vsel %vm240_vm2, %v2489_v46, %v2473_v45  ;;  %v6972_v60 = vpack.c.bf16 %v2534_v14, %v2532_v2  ;;  %v2572_v14 = vld [vmem:[#allocation6 + $0x60] sm:$0xff]  ;;  %v2846_v2 = vld [vmem:[#allocation6 + $0xa8] sm:$0xff] }
 0x35d   :  { %v2477_v50 = vpop.permute.xlu1 %2476  ;;  %4998 = vmatprep.subr.bf16.mxu1 %v6671_v25  ;;  %5046 = vmatprep.subr.bf16.mxu0 %v6939_v57  ;;  %v2491_v53 = vpop.permute.xlu0 %2490  ;;  %v6961_v25 = vpack.c.bf16 %v2535_v28, %v2533_v33  ;;  %v2537_v0 = vmul.f32 %v2508_v27, %v8741_v62  ;;  %v2564_v28 = vld [vmem:[#allocation6 + $0x20] sm:$0xff]  ;;  %v1763_v33 = vld [vmem:[#allocation8 + $0x158] sm:$0xff] }
 0x35e   :  { %v2509_v19 = vsel %vm240_vm2, %v2491_v53, %v2475_v30  ;;  %1495 = vmatmul.mubr.f32.gmra.mrb[30].mxu1 %v1314_v1  ;;  %4669 = vmatprep.mubr.msk.f32.mxu0 %vm370_vm0, %v2561_v7  ;;  %v2501_v47 = vsel %vm240_vm2, %v2475_v30, %v2491_v53  ;;  %v1759_v1 = vld [vmem:[#allocation8 + $0x138] sm:$0xff]  ;;  %v2566_v7 = vld [vmem:[#allocation6 + $0x30] sm:$0xff]  ;;  %v1765_v53 = vld [vmem:[#allocation8 + $0x168] sm:$0xff] }
 0x35f   :  { %v2539_v22 = vmul.f32 %v2509_v19, %v6695_v36  ;;  %4637 = vmatprep.mubr.msk.f32.mxu1 %vm370_vm0, %v1753_v26  ;;  %v2538_v42 = vmul.f32 %v2501_v47, %v6721_v9  ;;  %v1761_v26 = vld [vmem:[#allocation8 + $0x148] sm:$0xff]  ;;  %v1767_v27 = vld [vmem:[#allocation8 + $0x178] sm:$0xff]  ;;  %v2574_v19 = vld [vmem:[#allocation6 + $0x70] sm:$0xff] }
 0x360   :  { %5000 = vmatpush1.bf16.msra.mxu1 %v6712_v41  ;;  %5048 = vmatpush1.bf16.msra.mxu0 %v6944_v40  ;;  %v2536_v41 = vmul.f32 %v2500_v38, %v6736_v5  ;;  %v2842_v47 = vld [vmem:[#allocation6 + $0x88] sm:$0xff]  ;;  %v3014_v38 = vld [vmem:[#allocation6 + $0x120] sm:$0xff] }
 0x361   :  { %v2493_v54 = vpop.permute.xlu1 %2492  ;;  %5002 = vmatprep.subr.bf16.mxu1 %v6728_v24  ;;  %5050 = vmatprep.subr.bf16.mxu0 %v6961_v25  ;;  %v2479_v36 = vpop.permute.xlu0 %2478  ;;  %v6975_v32 = vpack.c.bf16 %v2539_v22, %v2537_v0  ;;  %v8743_v24 = vld [vmem:[#allocation35_spill] sm:$0xff]  ;;  %v2845_v62 = vld [vmem:[#allocation6 + $0xa0] sm:$0xff]  ;;  %v3017_v0 = vld [vmem:[#allocation6 + $0x138] sm:$0xff] }
 0x362   :  { %v2502_v35 = vsel %vm240_vm2, %v2477_v50, %v2493_v54  ;;  %v2510_v45 = vsel %vm240_vm2, %v2493_v54, %v2477_v50  ;;  %v6986_v9 = vpack.c.bf16 %v2538_v42, %v2536_v41  ;;  %v2570_v50 = vld [vmem:[#allocation6 + $0x50] sm:$0xff]  ;;  %v2848_v54 = vld [vmem:[#allocation6 + $0xb8] sm:$0xff]  ;;  %v3019_v42 = vld [vmem:[#allocation6 + $0x148] sm:$0xff] }
 0x363   :  { %v2540_v46 = vmul.f32 %v2502_v35, %v6750_v58  ;;  %v2541_v43 = vmul.f32 %v2510_v45, %v6757_v23  ;;  %v2560_v23 = vld [vmem:[#allocation6] sm:$0xff]  ;;  %v2843_v22 = vld [vmem:[#allocation6 + $0x90] sm:$0xff]  ;;  %v3021_v45 = vld [vmem:[#allocation6 + $0x158] sm:$0xff] }
 0x364   :  { %5004 = vmatpush1.bf16.msra.mxu1 %v8742_v61  ;;  %5052 = vmatpush1.bf16.msra.mxu0 %v6972_v60  ;;  %v1752_v58 = vld [vmem:[#allocation8 + $0x100] sm:$0xff]  ;;  %v2852_v61 = vld [vmem:[#allocation6 + $0xd8] sm:$0xff] }
 0x365   :  { %5006 = vmatprep.subr.bf16.mxu1 %v8743_v24  ;;  %5054 = vmatprep.subr.bf16.mxu0 %v6975_v32  ;;  %v2495_v51 = vpop.permute.xlu0 %2494  ;;  %v3018_v41 = vld [vmem:[#allocation6 + $0x140] sm:$0xff]  ;;  %v3020_v24 = vld [vmem:[#allocation6 + $0x150] sm:$0xff] }
 0x366   :  { %v2503_v5 = vsel %vm240_vm2, %v2479_v36, %v2495_v51  ;;  %v2511_v49 = vsel %vm240_vm2, %v2495_v51, %v2479_v36  ;;  %v3016_v36 = vld [vmem:[#allocation6 + $0x130] sm:$0xff]  ;;  %v2849_v35 = vld [vmem:[#allocation6 + $0xc0] sm:$0xff] }
 0x367   :  { %v2542_v30 = vmul.f32 %v2503_v5, %v6769_v29  ;;  %v2543_v55 = vmul.f32 %v2511_v49, %v6771_v10  ;;  %v2563_v29 = vld [vmem:[#allocation6 + $0x18] sm:$0xff]  ;;  %v2851_v51 = vld [vmem:[#allocation6 + $0xd0] sm:$0xff]  ;;  %v2854_v5 = vld [vmem:[#allocation6 + $0xe8] sm:$0xff] }
 0x368   :  { %5008 = vmatpush1.bf16.msra.mxu1 %v6777_v4  ;;  %5056 = vmatpush1.bf16.msra.mxu0 %v6986_v9  ;;  %v1755_v10 = vld [vmem:[#allocation8 + $0x118] sm:$0xff]  ;;  %v2562_v4 = vld [vmem:[#allocation6 + $0x10] sm:$0xff]  ;;  %v3022_v49 = vld [vmem:[#allocation6 + $0x160] sm:$0xff] }
 0x369   :  { %v6998_v13 = vpack.c.bf16 %v2542_v30, %v2540_v46  ;;  %5010 = vmatprep.subr.bf16.mxu1 %v6793_v37  ;;  %v7001_v12 = vpack.c.bf16 %v2543_v55, %v2541_v43  ;;  %v1754_v37 = vld [vmem:[#allocation8 + $0x110] sm:$0xff]  ;;  %v2853_v46 = vld [vmem:[#allocation6 + $0xe0] sm:$0xff]  ;;  %v3025_v43 = vld [vmem:[#allocation6 + $0x178] sm:$0xff] }
 0x36a   :  { %v2856_v30 = vld [vmem:[#allocation6 + $0xf8] sm:$0xff]  ;;  %v3024_v55 = vld [vmem:[#allocation6 + $0x170] sm:$0xff] }
 0x36b   :  { %5058 = vmatprep.subr.bf16.mxu0 %v7001_v12 }
 0x36c   :  { %5012 = vmatpush1.bf16.msra.mxu1 %v6791_v63  ;;  %5060 = vmatpush1.bf16.msra.mxu0 %v6998_v13  ;;  %v1757_v63 = vld [vmem:[#allocation8 + $0x128] sm:$0xff] }
 0x36d   :  { %5062 = vmatprep.subr.bf16.mxu1 %v6710_v59  ;;  %5110 = vmatprep.subr.bf16.mxu0 %v6710_v59  ;;  %v2565_v59 = vld [vmem:[#allocation6 + $0x28] sm:$0xff] }
 0x36f   :  { %2713 = vmatmul.mubr.f32.vlgmr.msra.gmra.mrb[48].mxu0 %v2560_v23  ;;  %1857 = vmatmul.mubr.f32.vlgmr.msra.gmra.mrb[32].mxu1 %v1752_v58 }
 0x370   :  { %5064 = vmatpush1.bf16.msra.mxu1 %v6706_v16  ;;  %5112 = vmatpush1.bf16.msra.mxu0 %v6706_v16  ;;  %v1756_v16 = vld [vmem:[#allocation8 + $0x120] sm:$0xff] }
 0x371   :  { %5066 = vmatprep.subr.bf16.mxu1 %v6813_v21  ;;  %5114 = vmatprep.subr.bf16.mxu0 %v6813_v21  ;;  %v2567_v21 = vld [vmem:[#allocation6 + $0x38] sm:$0xff] }
 0x372   :  { %4670 = vmatprep.mubr.msk.f32.mxu0 %vm370_vm0, %v2563_v29  ;;  %4638 = vmatprep.mubr.msk.f32.mxu1 %vm370_vm0, %v1755_v10 }
 0x373   :  { %2719 = vmatmul.mubr.f32.gmra.mrb[50].mxu0 %v2562_v4  ;;  %1863 = vmatmul.mubr.f32.gmra.mrb[34].mxu1 %v1754_v37 }
 0x374   :  { %5068 = vmatpush1.bf16.msra.mxu1 %v6773_v56  ;;  %5116 = vmatpush1.bf16.msra.mxu0 %v6773_v56  ;;  %v1758_v56 = vld [vmem:[#allocation8 + $0x130] sm:$0xff] }
 0x375   :  { %5070 = vmatprep.subr.bf16.mxu1 %v6828_v52  ;;  %5118 = vmatprep.subr.bf16.mxu0 %v6828_v52  ;;  %v2569_v52 = vld [vmem:[#allocation6 + $0x48] sm:$0xff] }
 0x376   :  { %4671 = vmatprep.mubr.msk.f32.mxu0 %vm370_vm0, %v2565_v59  ;;  %4639 = vmatprep.mubr.msk.f32.mxu1 %vm370_vm0, %v1757_v63 }
 0x377   :  { %2725 = vmatmul.mubr.f32.gmra.mrb[52].mxu0 %v2564_v28  ;;  %1869 = vmatmul.mubr.f32.gmra.mrb[36].mxu1 %v1756_v16 }
 0x378   :  { %5072 = vmatpush1.bf16.msra.mxu1 %v6834_v44  ;;  %5120 = vmatpush1.bf16.msra.mxu0 %v6834_v44  ;;  %v1760_v44 = vld [vmem:[#allocation8 + $0x140] sm:$0xff] }
 0x379   :  { %5074 = vmatprep.subr.bf16.mxu1 %v6855_v34  ;;  %5122 = vmatprep.subr.bf16.mxu0 %v6855_v34  ;;  %v2571_v34 = vld [vmem:[#allocation6 + $0x58] sm:$0xff] }
 0x37a   :  { %4672 = vmatprep.mubr.msk.f32.mxu0 %vm370_vm0, %v2567_v21  ;;  %4640 = vmatprep.mubr.msk.f32.mxu1 %vm370_vm0, %v1759_v1 }
 0x37b   :  { %2731 = vmatmul.mubr.f32.gmra.mrb[54].mxu0 %v2566_v7  ;;  %1875 = vmatmul.mubr.f32.gmra.mrb[38].mxu1 %v1758_v56 }
 0x37c   :  { %5076 = vmatpush1.bf16.msra.mxu1 %v6852_v15  ;;  %5124 = vmatpush1.bf16.msra.mxu0 %v6852_v15  ;;  %v1762_v15 = vld [vmem:[#allocation8 + $0x150] sm:$0xff] }
 0x37d   :  { %5078 = vmatprep.subr.bf16.mxu1 %v6859_v3  ;;  %5126 = vmatprep.subr.bf16.mxu0 %v6859_v3  ;;  %v2573_v3 = vld [vmem:[#allocation6 + $0x68] sm:$0xff] }
 0x37e   :  { %4673 = vmatprep.mubr.msk.f32.mxu0 %vm370_vm0, %v2569_v52  ;;  %4641 = vmatprep.mubr.msk.f32.mxu1 %vm370_vm0, %v1761_v26 }
 0x37f   :  { %2737 = vmatmul.mubr.f32.gmra.mrb[56].mxu0 %v2568_v17  ;;  %1881 = vmatmul.mubr.f32.gmra.mrb[40].mxu1 %v1760_v44 }
 0x380   :  { %5080 = vmatpush1.bf16.msra.mxu1 %v6868_v31  ;;  %5128 = vmatpush1.bf16.msra.mxu0 %v6868_v31  ;;  %v1764_v31 = vld [vmem:[#allocation8 + $0x160] sm:$0xff] }
 0x381   :  { %5082 = vmatprep.subr.bf16.mxu1 %v6876_v20  ;;  %5130 = vmatprep.subr.bf16.mxu0 %v6876_v20  ;;  %v2575_v20 = vld [vmem:[#allocation6 + $0x78] sm:$0xff] }
 0x382   :  { %4674 = vmatprep.mubr.msk.f32.mxu0 %vm370_vm0, %v2571_v34  ;;  %4642 = vmatprep.mubr.msk.f32.mxu1 %vm370_vm0, %v1763_v33 }
 0x383   :  { %2743 = vmatmul.mubr.f32.gmra.mrb[58].mxu0 %v2570_v50  ;;  %1887 = vmatmul.mubr.f32.gmra.mrb[42].mxu1 %v1762_v15 }
 0x384   :  { %5084 = vmatpush1.bf16.msra.mxu1 %v6884_v6  ;;  %5132 = vmatpush1.bf16.msra.mxu0 %v6884_v6  ;;  %v1766_v6 = vld [vmem:[#allocation8 + $0x170] sm:$0xff] }
 0x385   :  { %5086 = vmatprep.subr.bf16.mxu1 %v6890_v48  ;;  %5134 = vmatprep.subr.bf16.mxu0 %v6890_v48  ;;  %v3011_v48 = vld [vmem:[#allocation6 + $0x108] sm:$0xff] }
 0x386   :  { %4675 = vmatprep.mubr.msk.f32.mxu0 %vm370_vm0, %v2573_v3  ;;  %4643 = vmatprep.mubr.msk.f32.mxu1 %vm370_vm0, %v1765_v53 }
 0x387   :  { %2749 = vmatmul.mubr.f32.gmra.mrb[60].mxu0 %v2572_v14  ;;  %1893 = vmatmul.mubr.f32.gmra.mrb[44].mxu1 %v1764_v31 }
 0x388   :  { %5088 = vmatpush1.bf16.msra.mxu1 %v6900_v11  ;;  %5136 = vmatpush1.bf16.msra.mxu0 %v6900_v11  ;;  %v3010_v11 = vld [vmem:[#allocation6 + $0x100] sm:$0xff] }
 0x389   :  { %5090 = vmatprep.subr.bf16.mxu1 %v6906_v8  ;;  %5138 = vmatprep.subr.bf16.mxu0 %v6906_v8  ;;  %v2841_v8 = vld [vmem:[#allocation6 + $0x80] sm:$0xff] }
 0x38a   :  { %4676 = vmatprep.mubr.msk.f32.mxu0 %vm370_vm0, %v2575_v20  ;;  %4644 = vmatprep.mubr.msk.f32.mxu1 %vm370_vm0, %v1767_v27 }
 0x38b   :  { %2755 = vmatmul.mubr.f32.gmra.mrb[62].mxu0 %v2574_v19  ;;  %1899 = vmatmul.mubr.f32.gmra.mrb[46].mxu1 %v1766_v6 }
 0x38c   :  { %5092 = vmatpush1.bf16.msra.mxu1 %v6925_v39  ;;  %5140 = vmatpush1.bf16.msra.mxu0 %v6925_v39  ;;  %v3013_v39 = vld [vmem:[#allocation6 + $0x118] sm:$0xff] }
 0x38d   :  { %5094 = vmatprep.subr.bf16.mxu1 %v6939_v57  ;;  %5142 = vmatprep.subr.bf16.mxu0 %v6939_v57  ;;  %v2844_v57 = vld [vmem:[#allocation6 + $0x98] sm:$0xff] }
 0x38e   :  { %4685 = vmatprep.mubr.msk.f32.mxu0 %vm370_vm0, %v3011_v48  ;;  %4677 = vmatprep.mubr.msk.f32.mxu1 %vm370_vm0, %v2842_v47 }
 0x390   :  { %5096 = vmatpush1.bf16.msra.mxu1 %v6944_v40  ;;  %5144 = vmatpush1.bf16.msra.mxu0 %v6944_v40  ;;  %v3012_v40 = vld [vmem:[#allocation6 + $0x110] sm:$0xff] }
 0x391   :  { %5098 = vmatprep.subr.bf16.mxu1 %v6961_v25  ;;  %5146 = vmatprep.subr.bf16.mxu0 %v6961_v25  ;;  %v3015_v25 = vld [vmem:[#allocation6 + $0x128] sm:$0xff] }
 0x394   :  { %5100 = vmatpush1.bf16.msra.mxu1 %v6972_v60  ;;  %5148 = vmatpush1.bf16.msra.mxu0 %v6972_v60  ;;  %v2847_v60 = vld [vmem:[#allocation6 + $0xb0] sm:$0xff] }
 0x395   :  { %5102 = vmatprep.subr.bf16.mxu1 %v6975_v32  ;;  %5150 = vmatprep.subr.bf16.mxu0 %v6975_v32  ;;  %v2850_v32 = vld [vmem:[#allocation6 + $0xc8] sm:$0xff] }
 0x398   :  { %5104 = vmatpush1.bf16.msra.mxu1 %v6986_v9  ;;  %5152 = vmatpush1.bf16.msra.mxu0 %v6986_v9  ;;  %v3023_v9 = vld [vmem:[#allocation6 + $0x168] sm:$0xff] }
 0x399   :  { %5106 = vmatprep.subr.bf16.mxu1 %v7001_v12  ;;  %5154 = vmatprep.subr.bf16.mxu0 %v7001_v12 }
 0x39c   :  { %5108 = vmatpush1.bf16.msra.mxu1 %v6998_v13  ;;  %5156 = vmatpush1.bf16.msra.mxu0 %v6998_v13  ;;  %v2855_v13 = vld [vmem:[#allocation6 + $0xf0] sm:$0xff] }
 0x39f   :  { %3115 = vmatmul.mubr.f32.vlgmr.msra.gmra.mrb[64].mxu0 %v3010_v11  ;;  %2946 = vmatmul.mubr.f32.vlgmr.msra.gmra.mrb[48].mxu1 %v2841_v8 }
 0x3a0   :  { %4686 = vmatprep.mubr.msk.f32.mxu0 %vm370_vm0, %v3013_v39  ;;  %4678 = vmatprep.mubr.msk.f32.mxu1 %vm370_vm0, %v2844_v57 }
 0x3a3   :  { %3121 = vmatmul.mubr.f32.gmra.mrb[66].mxu0 %v3012_v40  ;;  %2952 = vmatmul.mubr.f32.gmra.mrb[50].mxu1 %v2843_v22 }
 0x3a4   :  { %4687 = vmatprep.mubr.msk.f32.mxu0 %vm370_vm0, %v3015_v25  ;;  %4679 = vmatprep.mubr.msk.f32.mxu1 %vm370_vm0, %v2846_v2 }
 0x3a7   :  { %3127 = vmatmul.mubr.f32.gmra.mrb[68].mxu0 %v3014_v38  ;;  %2958 = vmatmul.mubr.f32.gmra.mrb[52].mxu1 %v2845_v62 }
 0x3a8   :  { %4688 = vmatprep.mubr.msk.f32.mxu0 %vm370_vm0, %v3017_v0  ;;  %4680 = vmatprep.mubr.msk.f32.mxu1 %vm370_vm0, %v2848_v54 }
 0x3ab   :  { %3133 = vmatmul.mubr.f32.gmra.mrb[70].mxu0 %v3016_v36  ;;  %2964 = vmatmul.mubr.f32.gmra.mrb[54].mxu1 %v2847_v60 }
 0x3ac   :  { %4689 = vmatprep.mubr.msk.f32.mxu0 %vm370_vm0, %v3019_v42  ;;  %4681 = vmatprep.mubr.msk.f32.mxu1 %vm370_vm0, %v2850_v32 }
 0x3af   :  { %3139 = vmatmul.mubr.f32.gmra.mrb[72].mxu0 %v3018_v41  ;;  %2970 = vmatmul.mubr.f32.gmra.mrb[56].mxu1 %v2849_v35 }
 0x3b0   :  { %4690 = vmatprep.mubr.msk.f32.mxu0 %vm370_vm0, %v3021_v45  ;;  %4682 = vmatprep.mubr.msk.f32.mxu1 %vm370_vm0, %v2852_v61 }
 0x3b3   :  { %3145 = vmatmul.mubr.f32.gmra.mrb[74].mxu0 %v3020_v24  ;;  %2976 = vmatmul.mubr.f32.gmra.mrb[58].mxu1 %v2851_v51 }
 0x3b4   :  { %4691 = vmatprep.mubr.msk.f32.mxu0 %vm370_vm0, %v3023_v9  ;;  %4683 = vmatprep.mubr.msk.f32.mxu1 %vm370_vm0, %v2854_v5 }
 0x3b7   :  { %3151 = vmatmul.mubr.f32.gmra.mrb[76].mxu0 %v3022_v49  ;;  %2982 = vmatmul.mubr.f32.gmra.mrb[60].mxu1 %v2853_v46 }
 0x3b8   :  { %4692 = vmatprep.mubr.msk.f32.mxu0 %vm370_vm0, %v3025_v43  ;;  %4684 = vmatprep.mubr.msk.f32.mxu1 %vm370_vm0, %v2856_v30 }
 0x3bb   :  { %3157 = vmatmul.mubr.f32.gmra.mrb[78].mxu0 %v3024_v55  ;;  %2988 = vmatmul.mubr.f32.gmra.mrb[62].mxu1 %v2855_v13 }
 0x412   :  { %v7084_v12 = vpop.f32.mrb[32].mxu0  ;;  %v7086_v23 = vpop.f32.mrb[16].mxu1 }
 0x413   :  { %8744 = vst [vmem:[#allocation21_spill] sm:$0xff] %v7084_v12  ;;  %v7088_v58 = vpop.f32.mrb[33].mxu0  ;;  %v7090_v29 = vpop.f32.mrb[17].mxu1 }
 0x414   :  { %8745 = vst [vmem:[#allocation14_spill] sm:$0xff] %v7088_v58  ;;  %8746 = vst [vmem:[#allocation20_spill] sm:$0xff] %v7090_v29 }
 0x416   :  { %v7092_v10 = vpop.f32.mrb[34].mxu0  ;;  %v7094_v4 = vpop.f32.mrb[18].mxu1 }
 0x417   :  { %8747 = vst [vmem:[#allocation19_spill] sm:$0xff] %v7092_v10  ;;  %8748 = vst [vmem:[#allocation15_spill] sm:$0xff] %v7094_v4  ;;  %v7096_v37 = vpop.f32.mrb[35].mxu0  ;;  %v7098_v59 = vpop.f32.mrb[19].mxu1  ;;  %v3213_v4 = vld [vmem:[#allocation3 + $0x290] sm:$0xff] }
 0x418   :  { %8749 = vst [vmem:[#allocation23_spill] sm:$0xff] %v7096_v37  ;;  %8750 = vst [vmem:[#allocation26_spill] sm:$0xff] %v7098_v59  ;;  %v2813_v59 = vld [vmem:[#allocation3 + $0x1a0] sm:$0xff] }
 0x41a   :  { %v7100_v63 = vpop.f32.mrb[36].mxu0  ;;  %v7102_v28 = vpop.f32.mrb[20].mxu1 }
 0x41b   :  { %8751 = vst [vmem:[#allocation16_spill] sm:$0xff] %v7100_v63  ;;  %v7104_v16 = vpop.f32.mrb[37].mxu0  ;;  %v7106_v21 = vpop.f32.mrb[21].mxu1 }
 0x41c   :  { %8752 = vst [vmem:[#allocation22_spill] sm:$0xff] %v7104_v16  ;;  %8753 = vst [vmem:[#allocation24_spill] sm:$0xff] %v7106_v21 }
 0x41e   :  { %v7108_v1 = vpop.f32.mrb[38].mxu0 }
 0x41f   :  { %8754 = vst [vmem:[#allocation17_spill] sm:$0xff] %v7108_v1  ;;  %v7110_v7 = vpop.f32.mrb[39].mxu0 }
 0x420   :  { %8755 = vst [vmem:[#allocation27_spill] sm:$0xff] %v7110_v7  ;;  %v7244_v7 = vpop.permute.xlu1 %3269 }
 0x421   :  { %v7112_v56 = vpop.f32.mrb[22].mxu1 }
 0x422   :  { %8756 = vst [vmem:[#allocation29_spill] sm:$0xff] %v7112_v56  ;;  %v7114_v52 = vpop.f32.mrb[40].mxu0  ;;  %v7116_v26 = vpop.f32.mrb[23].mxu1 }
 0x423   :  { %8757 = vst [vmem:[#allocation30_spill] sm:$0xff] %v7114_v52  ;;  %8758 = vst [vmem:[#allocation18_spill] sm:$0xff] %v7116_v26  ;;  %v7118_v17 = vpop.f32.mrb[41].mxu0  ;;  %v2812_v26 = vld [vmem:[#allocation3 + $0x198] sm:$0xff] }
 0x424   :  { %8759 = vst [vmem:[#allocation25_spill] sm:$0xff] %v7118_v17 }
 0x425   :  { %v7120_v44 = vpop.f32.mrb[24].mxu1 }
 0x426   :  { %8760 = vst [vmem:[#allocation28_spill] sm:$0xff] %v7120_v44  ;;  %v7122_v34 = vpop.f32.mrb[42].mxu0  ;;  %v7124_v33 = vpop.f32.mrb[25].mxu1 }
 0x427   :  { %8761 = vst [vmem:[#allocation31_spill] sm:$0xff] %v7122_v34  ;;  %8762 = vst [vmem:[#allocation32_spill] sm:$0xff] %v7124_v33  ;;  %v7126_v50 = vpop.f32.mrb[43].mxu0 }
 0x428   :  { %8763 = vst [vmem:[#allocation13_spill] sm:$0xff] %v7126_v50 }
 0x429   :  { %v7128_v15 = vpop.f32.mrb[26].mxu1 }
 0x42a   :  { %8764 = vst [vmem:[#allocation33_spill] sm:$0xff] %v7128_v15  ;;  %v7130_v3 = vpop.f32.mrb[44].mxu0  ;;  %v7132_v53 = vpop.f32.mrb[27].mxu1 }
 0x42b   :  { %8765 = vst [vmem:[#allocation34_spill] sm:$0xff] %v7130_v3  ;;  %8766 = vst [vmem:[#allocation35_spill] sm:$0xff] %v7132_v53  ;;  %v7134_v14 = vpop.f32.mrb[45].mxu0 }
 0x42c   :  { %8767 = vst [vmem:[#allocation36_spill] sm:$0xff] %v7134_v14 }
 0x42d   :  { %v7136_v31 = vpop.f32.mrb[28].mxu1 }
 0x42e   :  { %8768 = vst [vmem:[#allocation37_spill] sm:$0xff] %v7136_v31  ;;  %v7138_v20 = vpop.f32.mrb[46].mxu0  ;;  %v7140_v27 = vpop.f32.mrb[29].mxu1 }
 0x42f   :  { %8769 = vst [vmem:[#allocation38_spill] sm:$0xff] %v7138_v20  ;;  %8770 = vst [vmem:[#allocation39_spill] sm:$0xff] %v7140_v27  ;;  %v7142_v19 = vpop.f32.mrb[47].mxu0 }
 0x430   :  { %8771 = vst [vmem:[#allocation40_spill] sm:$0xff] %v7142_v19 }
 0x431   :  { %v7144_v6 = vpop.f32.mrb[30].mxu1 }
 0x432   :  { %8772 = vst [vmem:[#allocation41_spill] sm:$0xff] %v7144_v6  ;;  %v7146_v48 = vpop.f32.mrb[31].mxu1 }
 0x433   :  { %8773 = vst [vmem:[#allocation42_spill] sm:$0xff] %v7146_v48 }
 0x442   :  { %v2714_v47 = vpop.f32.mrb[48].mxu0  ;;  %v7148_v11 = vpop.f32.mrb[32].mxu1 }
 0x443   :  { %8774 = vst [vmem:[#allocation43_spill] sm:$0xff] %v7148_v11  ;;  %2761 = vrot.lane.b32.xlu1 %v2714_v47, %s5527_s2  ;;  %v2716_v8 = vpop.f32.mrb[49].mxu0  ;;  %v7151_v39 = vpop.f32.mrb[33].mxu1 }
 0x444   :  { %8775 = vst [vmem:[#allocation44_spill] sm:$0xff] %v7151_v39  ;;  %v2811_v39 = vld [vmem:[#allocation3 + $0x190] sm:$0xff] }
 0x446   :  { %v2720_v57 = vpop.f32.mrb[50].mxu0  ;;  %v7153_v40 = vpop.f32.mrb[34].mxu1 }
 0x447   :  { %8776 = vst [vmem:[#allocation45_spill] sm:$0xff] %v7153_v40  ;;  %2777 = vrot.lane.b32.xlu1 %v2716_v8, %s5527_s2  ;;  %2763 = vrot.lane.b32.xlu0 %v2720_v57, %s5527_s2  ;;  %v2722_v22 = vpop.f32.mrb[51].mxu0  ;;  %v7157_v25 = vpop.f32.mrb[35].mxu1 }
 0x448   :  { %8777 = vst [vmem:[#allocation46_spill] sm:$0xff] %v7157_v25 }
 0x44a   :  { %v2726_v2 = vpop.f32.mrb[52].mxu0  ;;  %v7159_v38 = vpop.f32.mrb[36].mxu1 }
 0x44b   :  { %8778 = vst [vmem:[#allocation47_spill] sm:$0xff] %v7159_v38  ;;  %2779 = vrot.lane.b32.xlu0 %v2722_v22, %s5527_s2  ;;  %2765 = vrot.lane.b32.xlu1 %v2726_v2, %s5527_s2  ;;  %v2728_v62 = vpop.f32.mrb[53].mxu0  ;;  %v7163_v0 = vpop.f32.mrb[37].mxu1  ;;  %v2810_v38 = vld [vmem:[#allocation3 + $0x188] sm:$0xff] }
 0x44c   :  { %8779 = vst [vmem:[#allocation48_spill] sm:$0xff] %v7163_v0 }
 0x44e   :  { %v2732_v54 = vpop.f32.mrb[54].mxu0  ;;  %v7165_v36 = vpop.f32.mrb[38].mxu1 }
 0x44f   :  { %8780 = vst [vmem:[#allocation49_spill] sm:$0xff] %v7165_v36  ;;  %2781 = vrot.lane.b32.xlu1 %v2728_v62, %s5527_s2  ;;  %2767 = vrot.lane.b32.xlu0 %v2732_v54, %s5527_s2  ;;  %v2734_v60 = vpop.f32.mrb[55].mxu0  ;;  %v7169_v42 = vpop.f32.mrb[39].mxu1  ;;  %v2809_v36 = vld [vmem:[#allocation3 + $0x180] sm:$0xff] }
 0x450   :  { %8781 = vst [vmem:[#allocation50_spill] sm:$0xff] %v7169_v42 }
 0x452   :  { %v2738_v32 = vpop.f32.mrb[56].mxu0  ;;  %v7171_v41 = vpop.f32.mrb[40].mxu1 }
 0x453   :  { %8782 = vst [vmem:[#allocation51_spill] sm:$0xff] %v7171_v41  ;;  %2783 = vrot.lane.b32.xlu0 %v2734_v60, %s5527_s2  ;;  %2769 = vrot.lane.b32.xlu1 %v2738_v32, %s5527_s2  ;;  %v2740_v35 = vpop.f32.mrb[57].mxu0  ;;  %v7175_v45 = vpop.f32.mrb[41].mxu1 }
 0x454   :  { %8783 = vst [vmem:[#allocation52_spill] sm:$0xff] %v7175_v45 }
 0x456   :  { %v2744_v61 = vpop.f32.mrb[58].mxu0  ;;  %v7177_v24 = vpop.f32.mrb[42].mxu1 }
 0x457   :  { %8784 = vst [vmem:[#allocation53_spill] sm:$0xff] %v7177_v24  ;;  %2785 = vrot.lane.b32.xlu1 %v2740_v35, %s5527_s2  ;;  %2771 = vrot.lane.b32.xlu0 %v2744_v61, %s5527_s2  ;;  %v2746_v51 = vpop.f32.mrb[59].mxu0  ;;  %v7181_v9 = vpop.f32.mrb[43].mxu1 }
 0x458   :  { %8785 = vst [vmem:[#allocation54_spill] sm:$0xff] %v7181_v9 }
 0x45a   :  { %v2750_v5 = vpop.f32.mrb[60].mxu0  ;;  %v7183_v49 = vpop.f32.mrb[44].mxu1 }
 0x45b   :  { %8786 = vst [vmem:[#allocation55_spill] sm:$0xff] %v7183_v49  ;;  %2787 = vrot.lane.b32.xlu0 %v2746_v51, %s5527_s2  ;;  %2773 = vrot.lane.b32.xlu1 %v2750_v5, %s5527_s2  ;;  %v2752_v46 = vpop.f32.mrb[61].mxu0  ;;  %v7187_v43 = vpop.f32.mrb[45].mxu1 }
 0x45c   :  { %8787 = vst [vmem:[#allocation56_spill] sm:$0xff] %v7187_v43 }
 0x45e   :  { %v2756_v30 = vpop.f32.mrb[62].mxu0  ;;  %v7189_v55 = vpop.f32.mrb[46].mxu1 }
 0x45f   :  { %8788 = vst [vmem:[#allocation57_spill] sm:$0xff] %v7189_v55  ;;  %2789 = vrot.lane.b32.xlu1 %v2752_v46, %s5527_s2  ;;  %2775 = vrot.lane.b32.xlu0 %v2756_v30, %s5527_s2  ;;  %v2758_v13 = vpop.f32.mrb[63].mxu0  ;;  %v7193_v47 = vpop.f32.mrb[47].mxu1 }
 0x460   :  { %8789 = vst [vmem:[#allocation58_spill] sm:$0xff] %v7193_v47 }
 0x463   :  { %2791 = vrot.lane.b32.xlu0 %v2758_v13, %s5527_s2 }
 0x472   :  { %v3116_v8 = vpop.f32.mrb[64].mxu0  ;;  %v7196_v57 = vpop.f32.mrb[48].mxu1 }
 0x473   :  { %3163 = vrot.lane.b32.xlu1 %v3116_v8, %s5528_s14  ;;  %v3118_v22 = vpop.f32.mrb[65].mxu0  ;;  %v7199_v2 = vpop.f32.mrb[49].mxu1 }
 0x476   :  { %v3122_v62 = vpop.f32.mrb[66].mxu0  ;;  %v7201_v54 = vpop.f32.mrb[50].mxu1 }
 0x477   :  { %3179 = vrot.lane.b32.xlu1 %v3118_v22, %s5528_s14  ;;  %3165 = vrot.lane.b32.xlu0 %v3122_v62, %s5528_s14  ;;  %v3124_v60 = vpop.f32.mrb[67].mxu0  ;;  %v7205_v32 = vpop.f32.mrb[51].mxu1 }
 0x47a   :  { %v3128_v35 = vpop.f32.mrb[68].mxu0  ;;  %v7207_v61 = vpop.f32.mrb[52].mxu1 }
 0x47b   :  { %3181 = vrot.lane.b32.xlu0 %v3124_v60, %s5528_s14  ;;  %3167 = vrot.lane.b32.xlu1 %v3128_v35, %s5528_s14  ;;  %v3130_v51 = vpop.f32.mrb[69].mxu0  ;;  %v7211_v5 = vpop.f32.mrb[53].mxu1 }
 0x47e   :  { %v3134_v46 = vpop.f32.mrb[70].mxu0  ;;  %v7213_v30 = vpop.f32.mrb[54].mxu1 }
 0x47f   :  { %3183 = vrot.lane.b32.xlu1 %v3130_v51, %s5528_s14  ;;  %3169 = vrot.lane.b32.xlu0 %v3134_v46, %s5528_s14  ;;  %v3136_v13 = vpop.f32.mrb[71].mxu0  ;;  %v7217_v8 = vpop.f32.mrb[55].mxu1 }
 0x482   :  { %v3140_v22 = vpop.f32.mrb[72].mxu0  ;;  %v7219_v62 = vpop.f32.mrb[56].mxu1 }
 0x483   :  { %3185 = vrot.lane.b32.xlu0 %v3136_v13, %s5528_s14  ;;  %3171 = vrot.lane.b32.xlu1 %v3140_v22, %s5528_s14  ;;  %v3142_v60 = vpop.f32.mrb[73].mxu0  ;;  %v7223_v35 = vpop.f32.mrb[57].mxu1 }
 0x486   :  { %v3146_v19 = vpop.f32.mrb[74].mxu0  ;;  %v7225_v20 = vpop.f32.mrb[58].mxu1 }
 0x487   :  { %3187 = vrot.lane.b32.xlu1 %v3142_v60, %s5528_s14  ;;  %3173 = vrot.lane.b32.xlu0 %v3146_v19, %s5528_s14  ;;  %v3148_v51 = vpop.f32.mrb[75].mxu0  ;;  %v7229_v46 = vpop.f32.mrb[59].mxu1 }
 0x48a   :  { %v3152_v14 = vpop.f32.mrb[76].mxu0  ;;  %v7231_v3 = vpop.f32.mrb[60].mxu1 }
 0x48b   :  { %3189 = vrot.lane.b32.xlu0 %v3148_v51, %s5528_s14  ;;  %3175 = vrot.lane.b32.xlu1 %v3152_v14, %s5528_s14  ;;  %v3154_v13 = vpop.f32.mrb[77].mxu0  ;;  %v7235_v22 = vpop.f32.mrb[61].mxu1 }
 0x48c   :  { %v7246_v51 = vpop.permute.xlu0 %3274  ;;  %v7248_v14 = vpop.permute.xlu1 %3279 }
 0x48e   :  { %v3158_v17 = vpop.f32.mrb[78].mxu0  ;;  %v7237_v52 = vpop.f32.mrb[62].mxu1 }
 0x48f   :  { %3191 = vrot.lane.b32.xlu1 %v3154_v13, %s5528_s14  ;;  %3177 = vrot.lane.b32.xlu0 %v3158_v17, %s5528_s14  ;;  %v3160_v19 = vpop.f32.mrb[79].mxu0  ;;  %v7241_v60 = vpop.f32.mrb[63].mxu1 }
 0x490   :  { %v7250_v1 = vpop.permute.xlu0 %3284  ;;  %v7252_v58 = vpop.permute.xlu1 %3289 }
 0x493   :  { %3193 = vrot.lane.b32.xlu0 %v3160_v19, %s5528_s14 }
 0x494   :  { %v7254_v12 = vpop.permute.xlu0 %3294  ;;  %v7256_v13 = vpop.permute.xlu1 %3299 }
 0x498   :  { %v7258_v17 = vpop.permute.xlu0 %3304 }
 0x4b5   :  { %v2762_v16 = vpop.permute.xlu1 %2761 }
 0x4b9   :  { %v2764_v63 = vpop.permute.xlu0 %2763  ;;  %v2778_v37 = vpop.permute.xlu1 %2777 }
 0x4ba   :  { %v2801_v42 = vsel %vm540_vm3, %v2778_v37, %v2762_v16  ;;  %v2793_v0 = vsel %vm540_vm3, %v2762_v16, %v2778_v37  ;;  %v2814_v16 = vld [vmem:[#allocation3 + $0x1a8] sm:$0xff] }
 0x4bb   :  { %v2825_v25 = vmul.f32 %v2809_v36, %v2801_v42  ;;  %v2826_v53 = vmul.f32 %v2810_v38, %v2793_v0  ;;  %v3211_v36 = vld [vmem:[#allocation3 + $0x280] sm:$0xff]  ;;  %v3212_v42 = vld [vmem:[#allocation3 + $0x288] sm:$0xff]  ;;  %v2815_v0 = vld [vmem:[#allocation3 + $0x1b0] sm:$0xff] }
 0x4bd   :  { %v2780_v19 = vpop.permute.xlu0 %2779  ;;  %v2766_v10 = vpop.permute.xlu1 %2765  ;;  %v2994_v6 = vadd.f32 %v7196_v57, %v2825_v25 }
 0x4be   :  { %v2802_v40 = vsel %vm540_vm3, %v2780_v19, %v2764_v63  ;;  %v2794_v27 = vsel %vm540_vm3, %v2764_v63, %v2780_v19 }
 0x4bf   :  { %v2827_v21 = vmul.f32 %v2811_v39, %v2802_v40  ;;  %v2828_v19 = vmul.f32 %v2812_v26, %v2794_v27  ;;  %v3214_v26 = vld [vmem:[#allocation3 + $0x298] sm:$0xff]  ;;  %v2817_v27 = vld [vmem:[#allocation3 + $0x1c0] sm:$0xff] }
 0x4c1   :  { %v2768_v50 = vpop.permute.xlu0 %2767  ;;  %v2782_v34 = vpop.permute.xlu1 %2781  ;;  %v2996_v25 = vadd.f32 %v7201_v54, %v2827_v21  ;;  %v2997_v21 = vadd.f32 %v7205_v32, %v2828_v19 }
 0x4c2   :  { %v2803_v33 = vsel %vm540_vm3, %v2782_v34, %v2766_v10  ;;  %v2795_v37 = vsel %vm540_vm3, %v2766_v10, %v2782_v34  ;;  %v2995_v10 = vadd.f32 %v7199_v2, %v2826_v53  ;;  %v2818_v53 = vld [vmem:[#allocation3 + $0x1c8] sm:$0xff] }
 0x4c3   :  { %v2829_v15 = vmul.f32 %v2813_v59, %v2803_v33  ;;  %v2830_v34 = vmul.f32 %v2814_v16, %v2795_v37  ;;  %v2816_v59 = vld [vmem:[#allocation3 + $0x1b8] sm:$0xff] }
 0x4c5   :  { %v2784_v47 = vpop.permute.xlu0 %2783  ;;  %v2770_v55 = vpop.permute.xlu1 %2769  ;;  %v2998_v54 = vadd.f32 %v7207_v61, %v2829_v15  ;;  %v2999_v16 = vadd.f32 %v7211_v5, %v2830_v34  ;;  %v2820_v34 = vld [vmem:[#allocation3 + $0x1d8] sm:$0xff] }
 0x4c6   :  { %v2804_v38 = vsel %vm540_vm3, %v2784_v47, %v2768_v50  ;;  %v2796_v44 = vsel %vm540_vm3, %v2768_v50, %v2784_v47 }
 0x4c7   :  { %v2831_v57 = vmul.f32 %v2815_v0, %v2804_v38  ;;  %v3216_v0 = vld [vmem:[#allocation3 + $0x2a8] sm:$0xff] }
 0x4c9   :  { %v7260_v43 = vpop.permute.xlu0 %2771  ;;  %v2786_v49 = vpop.permute.xlu1 %2785  ;;  %v3000_v15 = vadd.f32 %v7213_v30, %v2831_v57  ;;  %v2819_v30 = vld [vmem:[#allocation3 + $0x1d0] sm:$0xff] }
 0x4ca   :  { %v2805_v33 = vsel %vm540_vm3, %v2786_v49, %v2770_v55 }
 0x4cb   :  { %v2833_v38 = vmul.f32 %v2817_v27, %v2805_v33  ;;  %v3217_v33 = vld [vmem:[#allocation3 + $0x2b0] sm:$0xff]  ;;  %v3218_v27 = vld [vmem:[#allocation3 + $0x2b8] sm:$0xff] }
 0x4cd   :  { %v7262_v9 = vpop.permute.xlu0 %2787  ;;  %v7264_v24 = vpop.permute.xlu1 %2773 }
 0x4d1   :  { %v7266_v45 = vpop.permute.xlu0 %2775  ;;  %v7268_v41 = vpop.permute.xlu1 %2789 }
 0x4d5   :  { %v7276_v48 = vpop.permute.xlu0 %2791 }
 0x4e5   :  { %v3164_v11 = vpop.permute.xlu1 %3163 }
 0x4e9   :  { %v3180_v29 = vpop.permute.xlu1 %3179  ;;  %v3166_v63 = vpop.permute.xlu0 %3165 }
 0x4ea   :  { %v3195_v31 = vsel %vm946_vm4, %v3164_v11, %v3180_v29  ;;  %v3203_v39 = vsel %vm946_vm4, %v3180_v29, %v3164_v11  ;;  %v2797_v29 = vsel %vm540_vm3, %v2770_v55, %v2786_v49  ;;  %v2832_v55 = vmul.f32 %v2816_v59, %v2796_v44 }
 0x4eb   :  { %v3227_v40 = vmul.f32 %v3211_v36, %v3195_v31  ;;  %v3228_v56 = vmul.f32 %v3212_v42, %v3203_v39  ;;  %v2798_v44 = vsel %vm540_vm3, %v7260_v43, %v7262_v9 }
 0x4ec   :  { %v3001_v59 = vadd.f32 %v7217_v8, %v2832_v55 }
 0x4ed   :  { %v3168_v11 = vpop.permute.xlu1 %3167  ;;  %v3182_v31 = vpop.permute.xlu0 %3181  ;;  %v3243_v2 = vadd.f32 %v3227_v40, %v2994_v6  ;;  %v3244_v37 = vadd.f32 %v3228_v56, %v2995_v10  ;;  %v2834_v6 = vmul.f32 %v2818_v53, %v2797_v29  ;;  %v3215_v56 = vld [vmem:[#allocation3 + $0x2a0] sm:$0xff] }
 0x4ee   :  { %v3196_v50 = vsel %vm946_vm4, %v3166_v63, %v3182_v31  ;;  %v3204_v47 = vsel %vm946_vm4, %v3182_v31, %v3166_v63 }
 0x4ef   :  { %v3229_v36 = vmul.f32 %v3213_v4, %v3196_v50  ;;  %v3230_v42 = vmul.f32 %v3214_v26, %v3204_v47  ;;  %v3307_v49 = vadd.f32 %v7244_v7, %v3243_v2  ;;  %v3308_v32 = vadd.f32 %v7244_v7, %v3244_v37 }
 0x4f0   :  { %v2806_v4 = vsel %vm540_vm3, %v7262_v9, %v7260_v43  ;;  %v3002_v9 = vadd.f32 %v7219_v62, %v2833_v38  ;;  %v3003_v43 = vadd.f32 %v7223_v35, %v2834_v6  ;;  %v2821_v6 = vld [vmem:[#allocation3 + $0x1e0] sm:$0xff] }
 0x4f1   :  { %v3184_v61 = vpop.permute.xlu1 %3183  ;;  %v3170_v19 = vpop.permute.xlu0 %3169  ;;  %v7309_v39 = vmax.f32 %v3307_v49, 0.0  ;;  %v3245_v63 = vadd.f32 %v3229_v36, %v2996_v25  ;;  %v3246_v10 = vadd.f32 %v3230_v42, %v2997_v21  ;;  %v7330_v29 = vmax.f32 %v3308_v32, 0.0  ;;  %v3219_v42 = vld [vmem:[#allocation3 + $0x2c0] sm:$0xff]  ;;  %v3220_v49 = vld [vmem:[#allocation3 + $0x2c8] sm:$0xff] }
 0x4f2   :  { %v3197_v7 = vsel %vm946_vm4, %v3168_v11, %v3184_v61  ;;  %v3205_v5 = vsel %vm946_vm4, %v3184_v61, %v3168_v11  ;;  %v2835_v50 = vmul.f32 %v2819_v30, %v2806_v4  ;;  %v2799_v36 = vsel %vm540_vm3, %v7264_v24, %v7268_v41  ;;  %v3221_v30 = vld [vmem:[#allocation3 + $0x2d0] sm:$0xff] }
 0x4f3   :  { %v3231_v40 = vmul.f32 %v3215_v56, %v3197_v7  ;;  %v3232_v25 = vmul.f32 %v3216_v0, %v3205_v5  ;;  %3339 = vrot.lane.b32.xlu1 %v7309_v39, %s5523_s26  ;;  %v3309_v57 = vadd.f32 %v7246_v51, %v3245_v63  ;;  %v3310_v26 = vadd.f32 %v7246_v51, %v3246_v10  ;;  %v2822_v56 = vld [vmem:[#allocation3 + $0x1e8] sm:$0xff] }
 0x4f4   :  { %v2836_v51 = vmul.f32 %v2820_v34, %v2798_v44  ;;  %v3222_v34 = vld [vmem:[#allocation3 + $0x2d8] sm:$0xff] }
 0x4f5   :  { %v3172_v53 = vpop.permute.xlu1 %3171  ;;  %v3186_v11 = vpop.permute.xlu0 %3185  ;;  %v7332_v31 = vmax.f32 %v3309_v57, 0.0  ;;  %v3247_v2 = vadd.f32 %v3231_v40, %v2998_v54  ;;  %v7334_v37 = vmax.f32 %v3310_v26, 0.0  ;;  %v3248_v21 = vadd.f32 %v3232_v25, %v2999_v16  ;;  %v2823_v25 = vld [vmem:[#allocation3 + $0x1f0] sm:$0xff] }
 0x4f6   :  { %v3198_v8 = vsel %vm946_vm4, %v3170_v19, %v3186_v11  ;;  %v3206_v62 = vsel %vm946_vm4, %v3186_v11, %v3170_v19  ;;  %v2807_v16 = vsel %vm540_vm3, %v7268_v41, %v7264_v24  ;;  %v3004_v24 = vadd.f32 %v7225_v20, %v2835_v50  ;;  %v2824_v50 = vld [vmem:[#allocation3 + $0x1f8] sm:$0xff] }
 0x4f7   :  { %v3233_v35 = vmul.f32 %v3217_v33, %v3198_v8  ;;  %v3234_v47 = vmul.f32 %v3218_v27, %v3206_v62  ;;  %3355 = vrot.lane.b32.xlu1 %v7330_v29, %s5523_s26  ;;  %3341 = vrot.lane.b32.xlu0 %v7332_v31, %s5523_s26  ;;  %v3311_v54 = vadd.f32 %v7248_v14, %v3247_v2  ;;  %v3224_v62 = vld [vmem:[#allocation3 + $0x2e8] sm:$0xff] }
 0x4f8   :  { %v7355_v55 = vpack.c.bf16 %v7334_v37, %v7330_v29  ;;  %v7359_v38 = vpack.c.bf16 %v7332_v31, %v7309_v39  ;;  %v3312_v19 = vadd.f32 %v7248_v14, %v3248_v21  ;;  %v3005_v10 = vadd.f32 %v7229_v46, %v2836_v51 }
 0x4f9   :  { %v3188_v0 = vpop.permute.xlu1 %3187  ;;  %v3174_v32 = vpop.permute.xlu0 %3173  ;;  %v7361_v61 = vmax.f32 %v3311_v54, 0.0  ;;  %v3249_v63 = vadd.f32 %v3233_v35, %v3000_v15  ;;  %v3250_v41 = vadd.f32 %v3234_v47, %v3001_v59  ;;  %v2837_v15 = vmul.f32 %v2821_v6, %v2807_v16 }
 0x4fa   :  { %v3199_v4 = vsel %vm946_vm4, %v3172_v53, %v3188_v0  ;;  %v3207_v44 = vsel %vm946_vm4, %v3188_v0, %v3172_v53  ;;  %v2838_v20 = vmul.f32 %v2822_v56, %v2799_v36  ;;  %v2808_v46 = vsel %vm540_vm3, %v7276_v48, %v7266_v45 }
 0x4fb   :  { %v3235_v7 = vmul.f32 %v3219_v42, %v3199_v4  ;;  %v3236_v5 = vmul.f32 %v3220_v49, %v3207_v44  ;;  %3343 = vrot.lane.b32.xlu1 %v7361_v61, %s5523_s26  ;;  %3357 = vrot.lane.b32.xlu0 %v7334_v37, %s5523_s26  ;;  %v3313_v14 = vadd.f32 %v7250_v1, %v3249_v63  ;;  %v7380_v59 = vmax.f32 %v3312_v19, 0.0 }
 0x4fc   :  { %v3314_v40 = vadd.f32 %v7250_v1, %v3250_v41  ;;  %v2800_v11 = vsel %vm540_vm3, %v7266_v45, %v7276_v48  ;;  %v3006_v48 = vadd.f32 %v7231_v3, %v2837_v15  ;;  %v2839_v45 = vmul.f32 %v2823_v25, %v2808_v46 }
 0x4fd   :  { %v3176_v57 = vpop.permute.xlu1 %3175  ;;  %v3190_v26 = vpop.permute.xlu0 %3189  ;;  %v7382_v33 = vmax.f32 %v3313_v14, 0.0  ;;  %v3251_v27 = vadd.f32 %v3235_v7, %v3002_v9  ;;  %v3252_v53 = vadd.f32 %v3236_v5, %v3003_v43  ;;  %v3223_v43 = vld [vmem:[#allocation3 + $0x2e0] sm:$0xff]  ;;  %v3007_v3 = vadd.f32 %v7235_v22, %v2838_v20  ;;  %v3226_v22 = vld [vmem:[#allocation3 + $0x2f8] sm:$0xff] }
 0x4fe   :  { %v3200_v2 = vsel %vm946_vm4, %v3174_v32, %v3190_v26  ;;  %v3208_v1 = vsel %vm946_vm4, %v3190_v26, %v3174_v32  ;;  %v7392_v21 = vmax.f32 %v3314_v40, 0.0  ;;  %v2840_v56 = vmul.f32 %v2824_v50, %v2800_v11 }
 0x4ff   :  { %v3237_v51 = vmul.f32 %v3221_v30, %v3200_v2  ;;  %v3238_v8 = vmul.f32 %v3222_v34, %v3208_v1  ;;  %3359 = vrot.lane.b32.xlu1 %v7380_v59, %s5523_s26  ;;  %3345 = vrot.lane.b32.xlu0 %v7382_v33, %s5523_s26  ;;  %v3315_v9 = vadd.f32 %v7252_v58, %v3251_v27 }
 0x500   :  { %v7402_v35 = vpack.c.bf16 %v7392_v21, %v7380_v59  ;;  %v7406_v47 = vpack.c.bf16 %v7382_v33, %v7361_v61  ;;  %v3316_v42 = vadd.f32 %v7252_v58, %v3252_v53  ;;  %v3008_v41 = vadd.f32 %v7237_v52, %v2839_v45  ;;  %v8803_v45 = vld [vmem:[#allocation43_spill] sm:$0xff] }
 0x501   :  { %v3192_v54 = vpop.permute.xlu1 %3191  ;;  %v3178_v16 = vpop.permute.xlu0 %3177  ;;  %v3331_v36 = vmax.f32 %v3315_v9, 0.0  ;;  %v3253_v49 = vadd.f32 %v3237_v51, %v3004_v24  ;;  %v3254_v6 = vadd.f32 %v3238_v8, %v3005_v10  ;;  %v3225_v24 = vld [vmem:[#allocation3 + $0x2f0] sm:$0xff]  ;;  %v3009_v15 = vadd.f32 %v7241_v60, %v2840_v56  ;;  %v8800_v8 = vld [vmem:[#allocation18_spill] sm:$0xff]  ;;  %v2004_v56 = vld [vmem:[%s8638_s5 + $0x18] sm:$0xff] }
 0x502   :  { %v3201_v0 = vsel %vm946_vm4, %v3176_v57, %v3192_v54  ;;  %v3209_v32 = vsel %vm946_vm4, %v3192_v54, %v3176_v57  ;;  %v3332_v44 = vmax.f32 %v3316_v42, 0.0  ;;  %v8801_v9 = vld [vmem:[#allocation39_spill] sm:$0xff]  ;;  %v2001_v54 = vld [vmem:[%s8638_s5] sm:$0xff] }
 0x503   :  { %v3239_v19 = vmul.f32 %v3223_v43, %v3201_v0  ;;  %v3240_v63 = vmul.f32 %v3224_v62, %v3209_v32  ;;  %3347 = vrot.lane.b32.xlu1 %v3331_v36, %s5523_s26  ;;  %3361 = vrot.lane.b32.xlu0 %v7392_v21, %s5523_s26  ;;  %v3317_v58 = vadd.f32 %v7254_v12, %v3253_v49  ;;  %v8804_v43 = vld [vmem:[#allocation42_spill] sm:$0xff]  ;;  %v2003_v42 = vld [vmem:[%s8638_s5 + $0x10] sm:$0xff] }
 0x504   :  { %v3318_v10 = vadd.f32 %v7254_v12, %v3254_v6  ;;  %v2002_v62 = vld [vmem:[%s8638_s5 + $0x8] sm:$0xff] }
 0x505   :  { %v3194_v4 = vpop.permute.xlu0 %3193  ;;  %v3333_v7 = vmax.f32 %v3317_v58, 0.0  ;;  %v3255_v5 = vadd.f32 %v3239_v19, %v3006_v48  ;;  %v3256_v14 = vadd.f32 %v3240_v63, %v3007_v3  ;;  %v8802_v48 = vld [vmem:[#allocation35_spill] sm:$0xff]  ;;  %v8807_v49 = vld [vmem:[#allocation46_spill] sm:$0xff]  ;;  %v3387_v19 = vld [vmem:[#allocation3] sm:$0xff] }
 0x506   :  { %v3202_v20 = vsel %vm946_vm4, %v3178_v16, %v3194_v4  ;;  %v3210_v46 = vsel %vm946_vm4, %v3194_v4, %v3178_v16  ;;  %v3334_v30 = vmax.f32 %v3318_v10, 0.0  ;;  %v8805_v16 = vld [vmem:[#allocation44_spill] sm:$0xff]  ;;  %v8808_v3 = vld [vmem:[#allocation47_spill] sm:$0xff] }
 0x507   :  { %v3241_v34 = vmul.f32 %v3225_v24, %v3202_v20  ;;  %v3242_v52 = vmul.f32 %v3226_v22, %v3210_v46  ;;  %3363 = vrot.lane.b32.xlu1 %v3332_v44, %s5523_s26  ;;  %3349 = vrot.lane.b32.xlu0 %v3333_v7, %s5523_s26  ;;  %v3319_v12 = vadd.f32 %v7256_v13, %v3255_v5  ;;  %v8809_v58 = vld [vmem:[#allocation48_spill] sm:$0xff]  ;;  %v3389_v22 = vld [vmem:[#allocation3 + $0x10] sm:$0xff] }
 0x508   :  { %v7428_v40 = vpack.c.bf16 %v3334_v30, %v3332_v44  ;;  %v7430_v25 = vpack.c.bf16 %v3333_v7, %v3331_v36  ;;  %v3320_v57 = vadd.f32 %v7256_v13, %v3256_v14  ;;  %v3390_v10 = vld [vmem:[#allocation3 + $0x18] sm:$0xff] }
 0x509   :  { %v3335_v60 = vmax.f32 %v3319_v12, 0.0  ;;  %v3257_v26 = vadd.f32 %v3241_v34, %v3008_v41  ;;  %v3258_v27 = vadd.f32 %v3242_v52, %v3009_v15  ;;  %v3388_v41 = vld [vmem:[#allocation3 + $0x8] sm:$0xff]  ;;  %v2005_v34 = vld [vmem:[%s8638_s5 + $0x20] sm:$0xff] }
 0x50a   :  { %v3336_v2 = vmax.f32 %v3320_v57, 0.0 }
 0x50b   :  { %3351 = vrot.lane.b32.xlu1 %v3335_v60, %s5523_s26  ;;  %3365 = vrot.lane.b32.xlu0 %v3334_v30, %s5523_s26  ;;  %v3321_v53 = vadd.f32 %v7258_v17, %v3257_v26  ;;  %v3322_v11 = vadd.f32 %v7258_v17, %v3258_v27  ;;  %v3548_v17 = vld [vmem:[#allocation8 + $0x8] sm:$0xff]  ;;  %v3391_v26 = vld [vmem:[#allocation3 + $0x20] sm:$0xff] }
 0x50c   :  { %4693 = vmatprep.mubr.msk.f32.mxu1 %vm370_vm0, %v3548_v17 }
 0x50d   :  { %v3337_v1 = vmax.f32 %v3321_v53, 0.0  ;;  %v3338_v50 = vmax.f32 %v3322_v11, 0.0  ;;  %v8811_v53 = vld [vmem:[#allocation50_spill] sm:$0xff] }
 0x50e   :  { %v3392_v11 = vld [vmem:[#allocation3 + $0x28] sm:$0xff] }
 0x50f   :  { %3367 = vrot.lane.b32.xlu1 %v3336_v2, %s5523_s26  ;;  %3353 = vrot.lane.b32.xlu0 %v3337_v1, %s5523_s26  ;;  %v7439_v51 = vpack.c.bf16 %v3338_v50, %v3336_v2  ;;  %v7441_v13 = vpack.c.bf16 %v3337_v1, %v3335_v60 }
 0x513   :  { %3451 = vrot.lane.b32.xlu1 %v7309_v39, %s5525_s21  ;;  %3369 = vrot.lane.b32.xlu0 %v3338_v50, %s5523_s26  ;;  %v8790_v39 = vld [vmem:[#allocation15_spill] sm:$0xff] }
 0x517   :  { %3467 = vrot.lane.b32.xlu1 %v7330_v29, %s5525_s21  ;;  %3453 = vrot.lane.b32.xlu0 %v7332_v31, %s5525_s21  ;;  %v8791_v29 = vld [vmem:[#allocation28_spill] sm:$0xff]  ;;  %v8792_v31 = vld [vmem:[#allocation29_spill] sm:$0xff] }
 0x51b   :  { %3455 = vrot.lane.b32.xlu1 %v7361_v61, %s5525_s21  ;;  %3469 = vrot.lane.b32.xlu0 %v7334_v37, %s5525_s21  ;;  %v8793_v37 = vld [vmem:[#allocation37_spill] sm:$0xff] }
 0x51c   :  { %v8794_v61 = vld [vmem:[#allocation33_spill] sm:$0xff] }
 0x51f   :  { %3471 = vrot.lane.b32.xlu1 %v7380_v59, %s5525_s21  ;;  %3457 = vrot.lane.b32.xlu0 %v7382_v33, %s5525_s21  ;;  %v8797_v59 = vld [vmem:[#allocation24_spill] sm:$0xff]  ;;  %v8798_v33 = vld [vmem:[#allocation26_spill] sm:$0xff] }
 0x523   :  { %3459 = vrot.lane.b32.xlu1 %v3331_v36, %s5525_s21  ;;  %3473 = vrot.lane.b32.xlu0 %v7392_v21, %s5525_s21  ;;  %v8799_v21 = vld [vmem:[#allocation32_spill] sm:$0xff]  ;;  %v8806_v36 = vld [vmem:[#allocation45_spill] sm:$0xff] }
 0x527   :  { %3475 = vrot.lane.b32.xlu1 %v3332_v44, %s5525_s21  ;;  %3461 = vrot.lane.b32.xlu0 %v3333_v7, %s5525_s21 }
 0x52b   :  { %3463 = vrot.lane.b32.xlu1 %v3335_v60, %s5525_s21  ;;  %3477 = vrot.lane.b32.xlu0 %v3334_v30, %s5525_s21  ;;  %v8810_v30 = vld [vmem:[#allocation49_spill] sm:$0xff] }
 0x52f   :  { %3479 = vrot.lane.b32.xlu1 %v3336_v2, %s5525_s21  ;;  %3465 = vrot.lane.b32.xlu0 %v3337_v1, %s5525_s21  ;;  %v3393_v1 = vld [vmem:[#allocation3 + $0x30] sm:$0xff] }
 0x533   :  { %1501 = vrot.lane.b32.xlu1 %v7086_v23, %s5527_s2  ;;  %3481 = vrot.lane.b32.xlu0 %v3338_v50, %s5525_s21  ;;  %v8795_v23 = vld [vmem:[#allocation20_spill] sm:$0xff] }
 0x534   :  { %v3394_v50 = vld [vmem:[#allocation3 + $0x38] sm:$0xff] }
 0x537   :  { %1505 = vrot.lane.b32.xlu1 %v7102_v28, %s5527_s2  ;;  %1503 = vrot.lane.b32.xlu0 %v8790_v39, %s5527_s2  ;;  %v8796_v28 = vld [vmem:[#allocation41_spill] sm:$0xff] }
 0x53b   :  { %1509 = vrot.lane.b32.xlu1 %v8791_v29, %s5527_s2  ;;  %1507 = vrot.lane.b32.xlu0 %v8792_v31, %s5527_s2 }
 0x53f   :  { %1513 = vrot.lane.b32.xlu1 %v8793_v37, %s5527_s2  ;;  %1511 = vrot.lane.b32.xlu0 %v8794_v61, %s5527_s2 }
 0x543   :  { %1517 = vrot.lane.b32.xlu1 %v8795_v23, %s5527_s2  ;;  %1515 = vrot.lane.b32.xlu0 %v8796_v28, %s5527_s2 }
 0x547   :  { %1521 = vrot.lane.b32.xlu1 %v8797_v59, %s5527_s2  ;;  %1519 = vrot.lane.b32.xlu0 %v8798_v33, %s5527_s2  ;;  %v8812_v59 = vld [vmem:[#allocation51_spill] sm:$0xff]  ;;  %v2006_v33 = vld [vmem:[%s8638_s5 + $0x28] sm:$0xff] }
 0x54b   :  { %1525 = vrot.lane.b32.xlu1 %v8799_v21, %s5527_s2  ;;  %1523 = vrot.lane.b32.xlu0 %v8800_v8, %s5527_s2 }
 0x54f   :  { %1529 = vrot.lane.b32.xlu1 %v8801_v9, %s5527_s2  ;;  %1527 = vrot.lane.b32.xlu0 %v8802_v48, %s5527_s2 }
 0x553   :  { %1905 = vrot.lane.b32.xlu1 %v8803_v45, %s5528_s14  ;;  %1531 = vrot.lane.b32.xlu0 %v8804_v43, %s5527_s2  ;;  %v3395_v45 = vld [vmem:[#allocation3 + $0x40] sm:$0xff] }
 0x557   :  { %2016 = vperm.xlu1 %5312, %v2002_v62   ;;  %2011 = vperm.xlu0 %5311, %v2001_v54  }
 0x55b   :  { %4261 = vperm.xlu1 %5312, %v2002_v62   ;;  %4256 = vperm.xlu0 %5311, %v2001_v54   ;;  %v8813_v62 = vld [vmem:[#allocation52_spill] sm:$0xff]  ;;  %v3396_v54 = vld [vmem:[#allocation3 + $0x48] sm:$0xff] }
 0x55f   :  { %1921 = vrot.lane.b32.xlu1 %v8805_v16, %s5528_s14  ;;  %1907 = vrot.lane.b32.xlu0 %v8806_v36, %s5528_s14  ;;  %v3397_v36 = vld [vmem:[#allocation3 + $0x50] sm:$0xff] }
 0x563   :  { %2021 = vperm.xlu1 %5312, %v2003_v42   ;;  %1923 = vrot.lane.b32.xlu0 %v8807_v49, %s5528_s14 }
 0x565   :  { %v3340_v6 = vpop.permute.xlu1 %3339 }
 0x567   :  { %1909 = vrot.lane.b32.xlu1 %v8808_v3, %s5528_s14  ;;  %4266 = vperm.xlu0 %5311, %v2003_v42   ;;  %v3398_v42 = vld [vmem:[#allocation3 + $0x58] sm:$0xff] }
 0x569   :  { %v3356_v0 = vpop.permute.xlu1 %3355  ;;  %v3342_v32 = vpop.permute.xlu0 %3341 }
 0x56a   :  { %v3379_v63 = vsel %vm127_vm1, %v3356_v0, %v3340_v6  ;;  %v3371_v24 = vsel %vm127_vm1, %v3340_v6, %v3356_v0 }
 0x56b   :  { %2026 = vperm.xlu1 %5312, %v2004_v56   ;;  %1925 = vrot.lane.b32.xlu0 %v8809_v58, %s5528_s14  ;;  %v3403_v7 = vmul.f32 %v3387_v19, %v3379_v63  ;;  %v3404_v15 = vmul.f32 %v3388_v41, %v3371_v24  ;;  %v8814_v58 = vld [vmem:[#allocation53_spill] sm:$0xff]  ;;  %v2007_v41 = vld [vmem:[%s8638_s5 + $0x30] sm:$0xff] }
 0x56d   :  { %v3344_v4 = vpop.permute.xlu1 %3343  ;;  %v3358_v44 = vpop.permute.xlu0 %3357 }
 0x56e   :  { %v3372_v5 = vsel %vm127_vm1, %v3342_v32, %v3358_v44  ;;  %v3380_v14 = vsel %vm127_vm1, %v3358_v44, %v3342_v32  ;;  %v3399_v44 = vld [vmem:[#allocation3 + $0x60] sm:$0xff] }
 0x56f   :  { %v3405_v20 = vmul.f32 %v3389_v22, %v3380_v14  ;;  %v3406_v46 = vmul.f32 %v3390_v10, %v3372_v5  ;;  %1911 = vrot.lane.b32.xlu1 %v8810_v30, %s5528_s14  ;;  %4271 = vperm.xlu0 %5311, %v2004_v56   ;;  %v8815_v5 = vld [vmem:[#allocation54_spill] sm:$0xff] }
 0x570   :  { %v3400_v14 = vld [vmem:[#allocation3 + $0x68] sm:$0xff] }
 0x571   :  { %v7538_v52 = vpack.c.bf16 %v3405_v20, %v3403_v7  ;;  %v3360_v12 = vpop.permute.xlu1 %3359  ;;  %v3346_v60 = vpop.permute.xlu0 %3345  ;;  %v7540_v57 = vpack.c.bf16 %v3406_v46, %v3404_v15  ;;  %v3401_v20 = vld [vmem:[#allocation3 + $0x70] sm:$0xff]  ;;  %v3402_v46 = vld [vmem:[#allocation3 + $0x78] sm:$0xff] }
 0x572   :  { %v3381_v27 = vsel %vm127_vm1, %v3360_v12, %v3344_v4  ;;  %v3373_v2 = vsel %vm127_vm1, %v3344_v4, %v3360_v12 }
 0x573   :  { %2031 = vperm.xlu1 %5312, %v2005_v34   ;;  %1927 = vrot.lane.b32.xlu0 %v8811_v53, %s5528_s14  ;;  %v3407_v29 = vmul.f32 %v3391_v26, %v3381_v27  ;;  %v3408_v61 = vmul.f32 %v3392_v11, %v3373_v2  ;;  %v8816_v2 = vld [vmem:[#allocation55_spill] sm:$0xff] }
 0x574   :  { %5158 = vmatprep.subr.bf16.mxu1 %v7540_v57  ;;  %5206 = vmatprep.subr.bf16.mxu0 %v7540_v57 }
 0x575   :  { %5160 = vmatpush1.bf16.msra.mxu1 %v7538_v52  ;;  %5208 = vmatpush1.bf16.msra.mxu0 %v7538_v52  ;;  %v3348_v17 = vpop.permute.xlu1 %3347  ;;  %v3362_v39 = vpop.permute.xlu0 %3361 }
 0x576   :  { %v3374_v31 = vsel %vm127_vm1, %v3346_v60, %v3362_v39  ;;  %v3382_v37 = vsel %vm127_vm1, %v3362_v39, %v3346_v60 }
 0x577   :  { %v3409_v23 = vmul.f32 %v3393_v1, %v3382_v37  ;;  %v3410_v28 = vmul.f32 %v3394_v50, %v3374_v31  ;;  %1913 = vrot.lane.b32.xlu1 %v8812_v59, %s5528_s14  ;;  %4276 = vperm.xlu0 %5311, %v2005_v34   ;;  %v2008_v1 = vld [vmem:[%s8638_s5 + $0x38] sm:$0xff] }
 0x578   :  { %v8817_v31 = vld [vmem:[#allocation56_spill] sm:$0xff] }
 0x579   :  { %v7561_v21 = vpack.c.bf16 %v3409_v23, %v3407_v29  ;;  %v3364_v8 = vpop.permute.xlu1 %3363  ;;  %v3350_v9 = vpop.permute.xlu0 %3349  ;;  %v7563_v48 = vpack.c.bf16 %v3410_v28, %v3408_v61  ;;  %v8818_v23 = vld [vmem:[#allocation57_spill] sm:$0xff] }
 0x57a   :  { %v3383_v43 = vsel %vm127_vm1, %v3364_v8, %v3348_v17  ;;  %v3375_v16 = vsel %vm127_vm1, %v3348_v17, %v3364_v8  ;;  %v3502_v8 = vld [vmem:[#allocation3 + $0x118] sm:$0xff] }
 0x57b   :  { %2036 = vperm.xlu1 %5312, %v2006_v33   ;;  %1929 = vrot.lane.b32.xlu0 %v8813_v62, %s5528_s14  ;;  %v3411_v3 = vmul.f32 %v3395_v45, %v3383_v43  ;;  %v3412_v32 = vmul.f32 %v3396_v54, %v3375_v16  ;;  %v3829_v62 = vld [vmem:[#allocation8 + $0x88] sm:$0xff] }
 0x57c   :  { %5162 = vmatprep.subr.bf16.mxu1 %v7563_v48  ;;  %5210 = vmatprep.subr.bf16.mxu0 %v7563_v48  ;;  %v3500_v54 = vld [vmem:[#allocation3 + $0x108] sm:$0xff] }
 0x57d   :  { %5164 = vmatpush1.bf16.msra.mxu1 %v7561_v21  ;;  %5212 = vmatpush1.bf16.msra.mxu0 %v7561_v21  ;;  %v3352_v49 = vpop.permute.xlu1 %3351  ;;  %v3366_v6 = vpop.permute.xlu0 %3365 }
 0x57e   :  { %v3376_v56 = vsel %vm127_vm1, %v3350_v9, %v3366_v6  ;;  %v3384_v0 = vsel %vm127_vm1, %v3366_v6, %v3350_v9  ;;  %4701 = vmatprep.mubr.msk.f32.mxu0 %vm370_vm0, %v3829_v62  ;;  %v3506_v6 = vld [vmem:[#allocation3 + $0x138] sm:$0xff]  ;;  %v3512_v62 = vld [vmem:[#allocation3 + $0x168] sm:$0xff] }
 0x57f   :  { %v3413_v19 = vmul.f32 %v3397_v36, %v3384_v0  ;;  %v3414_v63 = vmul.f32 %v3398_v42, %v3376_v56  ;;  %1915 = vrot.lane.b32.xlu1 %v8814_v58, %s5528_s14  ;;  %4281 = vperm.xlu0 %5311, %v2006_v33   ;;  %v8819_v33 = vld [vmem:[#allocation58_spill] sm:$0xff]  ;;  %v3501_v36 = vld [vmem:[#allocation3 + $0x110] sm:$0xff] }
 0x581   :  { %v7584_v24 = vpack.c.bf16 %v3413_v19, %v3411_v3  ;;  %v3368_v22 = vpop.permute.xlu1 %3367  ;;  %v3354_v10 = vpop.permute.xlu0 %3353  ;;  %v7586_v4 = vpack.c.bf16 %v3414_v63, %v3412_v32  ;;  %v3499_v32 = vld [vmem:[#allocation3 + $0x100] sm:$0xff] }
 0x582   :  { %v3385_v7 = vsel %vm127_vm1, %v3368_v22, %v3352_v49  ;;  %v3377_v15 = vsel %vm127_vm1, %v3352_v49, %v3368_v22 }
 0x583   :  { %2041 = vperm.xlu1 %5312, %v2007_v41   ;;  %1931 = vrot.lane.b32.xlu0 %v8815_v5, %s5528_s14  ;;  %v3415_v12 = vmul.f32 %v3399_v44, %v3385_v7  ;;  %v3416_v27 = vmul.f32 %v3400_v14, %v3377_v15 }
 0x584   :  { %5166 = vmatprep.subr.bf16.mxu1 %v7586_v4  ;;  %5214 = vmatprep.subr.bf16.mxu0 %v7586_v4 }
 0x585   :  { %5168 = vmatpush1.bf16.msra.mxu1 %v7584_v24  ;;  %5216 = vmatpush1.bf16.msra.mxu0 %v7584_v24  ;;  %v3452_v30 = vpop.permute.xlu1 %3451  ;;  %v3370_v34 = vpop.permute.xlu0 %3369 }
 0x586   :  { %v3378_v60 = vsel %vm127_vm1, %v3354_v10, %v3370_v34  ;;  %v3386_v26 = vsel %vm127_vm1, %v3370_v34, %v3354_v10  ;;  %v3505_v10 = vld [vmem:[#allocation3 + $0x130] sm:$0xff] }
 0x587   :  { %v3417_v53 = vmul.f32 %v3401_v20, %v3386_v26  ;;  %v3418_v11 = vmul.f32 %v3402_v46, %v3378_v60  ;;  %1917 = vrot.lane.b32.xlu1 %v8816_v2, %s5528_s14  ;;  %4286 = vperm.xlu0 %5311, %v2007_v41   ;;  %v3504_v41 = vld [vmem:[#allocation3 + $0x128] sm:$0xff]  ;;  %v3510_v20 = vld [vmem:[#allocation3 + $0x158] sm:$0xff]  ;;  %v3509_v2 = vld [vmem:[#allocation3 + $0x150] sm:$0xff] }
 0x589   :  { %v7607_v50 = vpack.c.bf16 %v3417_v53, %v3415_v12  ;;  %v3468_v17 = vpop.permute.xlu1 %3467  ;;  %v3454_v39 = vpop.permute.xlu0 %3453  ;;  %v7609_v29 = vpack.c.bf16 %v3418_v11, %v3416_v27  ;;  %v3508_v53 = vld [vmem:[#allocation3 + $0x148] sm:$0xff] }
 0x58a   :  { %v3491_v16 = vsel %vm240_vm2, %v3468_v17, %v3452_v30  ;;  %v3483_v19 = vsel %vm240_vm2, %v3452_v30, %v3468_v17  ;;  %v3503_v30 = vld [vmem:[#allocation3 + $0x120] sm:$0xff] }
 0x58b   :  { %2046 = vperm.xlu1 %5312, %v2008_v1   ;;  %1933 = vrot.lane.b32.xlu0 %v8817_v31, %s5528_s14  ;;  %v3516_v63 = vmul.f32 %v3500_v54, %v3491_v16  ;;  %v3515_v14 = vmul.f32 %v3499_v32, %v3483_v19 }
 0x58c   :  { %5170 = vmatprep.subr.bf16.mxu1 %v7609_v29  ;;  %5218 = vmatprep.subr.bf16.mxu0 %v7609_v29 }
 0x58d   :  { %5172 = vmatpush1.bf16.msra.mxu1 %v7607_v50  ;;  %5220 = vmatpush1.bf16.msra.mxu0 %v7607_v50  ;;  %v3456_v37 = vpop.permute.xlu1 %3455  ;;  %v3470_v61 = vpop.permute.xlu0 %3469 }
 0x58e   :  { %5174 = vmatprep.subr.bf16.mxu1 %v7355_v55  ;;  %5222 = vmatprep.subr.bf16.mxu0 %v7355_v55  ;;  %v3492_v9 = vsel %vm240_vm2, %v3470_v61, %v3454_v39  ;;  %v3484_v42 = vsel %vm240_vm2, %v3454_v39, %v3470_v61 }
 0x58f   :  { %1919 = vrot.lane.b32.xlu1 %v8818_v23, %s5528_s14  ;;  %4291 = vperm.xlu0 %5311, %v2008_v1   ;;  %v3518_v49 = vmul.f32 %v3502_v8, %v3492_v9  ;;  %v3517_v58 = vmul.f32 %v3501_v36, %v3484_v42  ;;  %v3511_v9 = vld [vmem:[#allocation3 + $0x160] sm:$0xff]  ;;  %v3513_v36 = vld [vmem:[#allocation3 + $0x170] sm:$0xff]  ;;  %v3514_v42 = vld [vmem:[#allocation3 + $0x178] sm:$0xff] }
 0x591   :  { %5176 = vmatpush1.bf16.msra.mxu1 %v7359_v38  ;;  %5224 = vmatpush1.bf16.msra.mxu0 %v7359_v38  ;;  %v3472_v28 = vpop.permute.xlu1 %3471  ;;  %v3458_v59 = vpop.permute.xlu0 %3457  ;;  %v7650_v5 = vpack.c.bf16 %v3518_v49, %v3516_v63  ;;  %v7660_v26 = vpack.c.bf16 %v3517_v58, %v3515_v14  ;;  %v3828_v14 = vld [vmem:[#allocation8 + $0x80] sm:$0xff] }
 0x592   :  { %5178 = vmatprep.subr.bf16.mxu1 %v7402_v35  ;;  %5226 = vmatprep.subr.bf16.mxu0 %v7402_v35  ;;  %v3493_v22 = vsel %vm240_vm2, %v3472_v28, %v3456_v37  ;;  %v3485_v34 = vsel %vm240_vm2, %v3456_v37, %v3472_v28  ;;  %v3507_v37 = vld [vmem:[#allocation3 + $0x140] sm:$0xff] }
 0x593   :  { %1935 = vrot.lane.b32.xlu0 %v8819_v33, %s5528_s14  ;;  %v3520_v12 = vmul.f32 %v3504_v41, %v3493_v22  ;;  %v3519_v31 = vmul.f32 %v3503_v30, %v3485_v34  ;;  %v3831_v30 = vld [vmem:[#allocation8 + $0x98] sm:$0xff]  ;;  %v3549_v34 = vld [vmem:[#allocation8 + $0x10] sm:$0xff] }
 0x595   :  { %5180 = vmatpush1.bf16.msra.mxu1 %v7406_v47  ;;  %5228 = vmatpush1.bf16.msra.mxu0 %v7406_v47  ;;  %v3460_v45 = vpop.permute.xlu1 %3459  ;;  %v3474_v43 = vpop.permute.xlu0 %3473 }
 0x596   :  { %5182 = vmatprep.subr.bf16.mxu1 %v7428_v40  ;;  %5230 = vmatprep.subr.bf16.mxu0 %v7428_v40  ;;  %v3494_v3 = vsel %vm240_vm2, %v3474_v43, %v3458_v59  ;;  %v3486_v44 = vsel %vm240_vm2, %v3458_v59, %v3474_v43 }
 0x597   :  { %v3522_v7 = vmul.f32 %v3506_v6, %v3494_v3  ;;  %v3521_v27 = vmul.f32 %v3505_v10, %v3486_v44 }
 0x599   :  { %5184 = vmatpush1.bf16.msra.mxu1 %v7430_v25  ;;  %5232 = vmatpush1.bf16.msra.mxu0 %v7430_v25  ;;  %v3476_v56 = vpop.permute.xlu1 %3475  ;;  %v3462_v0 = vpop.permute.xlu0 %3461  ;;  %v7666_v39 = vpack.c.bf16 %v3522_v7, %v3520_v12  ;;  %v7674_v8 = vpack.c.bf16 %v3521_v27, %v3519_v31  ;;  %v3547_v7 = vld [vmem:[#allocation8] sm:$0xff]  ;;  %v3830_v12 = vld [vmem:[#allocation8 + $0x90] sm:$0xff]  ;;  %v3833_v27 = vld [vmem:[#allocation8 + $0xa8] sm:$0xff] }
 0x59a   :  { %5186 = vmatprep.subr.bf16.mxu1 %v7439_v51  ;;  %5234 = vmatprep.subr.bf16.mxu0 %v7439_v51  ;;  %v3495_v11 = vsel %vm240_vm2, %v3476_v56, %v3460_v45  ;;  %v3487_v61 = vsel %vm240_vm2, %v3460_v45, %v3476_v56 }
 0x59b   :  { %v3524_v59 = vmul.f32 %v3508_v53, %v3495_v11  ;;  %v3523_v43 = vmul.f32 %v3507_v37, %v3487_v61  ;;  %v3832_v11 = vld [vmem:[#allocation8 + $0xa0] sm:$0xff]  ;;  %v3837_v61 = vld [vmem:[#allocation8 + $0xc8] sm:$0xff] }
 0x59c   :  { %v3555_v37 = vld [vmem:[#allocation8 + $0x40] sm:$0xff] }
 0x59d   :  { %5188 = vmatpush1.bf16.msra.mxu1 %v7441_v13  ;;  %5236 = vmatpush1.bf16.msra.mxu0 %v7441_v13  ;;  %v3464_v15 = vpop.permute.xlu1 %3463  ;;  %v3478_v46 = vpop.permute.xlu0 %3477 }
 0x59e   :  { %5190 = vmatprep.subr.bf16.mxu1 %v7650_v5  ;;  %5238 = vmatprep.subr.bf16.mxu0 %v7650_v5  ;;  %v3496_v60 = vsel %vm240_vm2, %v3478_v46, %v3462_v0  ;;  %v3488_v1 = vsel %vm240_vm2, %v3462_v0, %v3478_v46  ;;  %v3550_v46 = vld [vmem:[#allocation8 + $0x18] sm:$0xff] }
 0x59f   :  { %v3526_v17 = vmul.f32 %v3510_v20, %v3496_v60  ;;  %v3525_v33 = vmul.f32 %v3509_v2, %v3488_v1  ;;  %v3552_v60 = vld [vmem:[#allocation8 + $0x28] sm:$0xff]  ;;  %v3554_v2 = vld [vmem:[#allocation8 + $0x38] sm:$0xff]  ;;  %v3553_v1 = vld [vmem:[#allocation8 + $0x30] sm:$0xff] }
 0x5a1   :  { %5192 = vmatpush1.bf16.msra.mxu1 %v7660_v26  ;;  %5240 = vmatpush1.bf16.msra.mxu0 %v7660_v26  ;;  %v3480_v23 = vpop.permute.xlu1 %3479  ;;  %v3466_v28 = vpop.permute.xlu0 %3465  ;;  %v7680_v16 = vpack.c.bf16 %v3526_v17, %v3524_v59  ;;  %v7686_v3 = vpack.c.bf16 %v3525_v33, %v3523_v43  ;;  %v3834_v17 = vld [vmem:[#allocation8 + $0xb0] sm:$0xff]  ;;  %v3836_v59 = vld [vmem:[#allocation8 + $0xc0] sm:$0xff] }
 0x5a2   :  { %5194 = vmatprep.subr.bf16.mxu1 %v7666_v39  ;;  %5242 = vmatprep.subr.bf16.mxu0 %v7666_v39  ;;  %v3489_v45 = vsel %vm240_vm2, %v3464_v15, %v3480_v23  ;;  %v3497_v54 = vsel %vm240_vm2, %v3480_v23, %v3464_v15  ;;  %v3559_v33 = vld [vmem:[#allocation8 + $0x60] sm:$0xff] }
 0x5a3   :  { %v3527_v32 = vmul.f32 %v3511_v9, %v3489_v45  ;;  %v3528_v19 = vmul.f32 %v3512_v62, %v3497_v54  ;;  %v3838_v9 = vld [vmem:[#allocation8 + $0xd0] sm:$0xff]  ;;  %v3840_v45 = vld [vmem:[#allocation8 + $0xe0] sm:$0xff]  ;;  %v3998_v54 = vld [vmem:[#allocation8 + $0x108] sm:$0xff] }
 0x5a5   :  { %5196 = vmatpush1.bf16.msra.mxu1 %v7674_v8  ;;  %5244 = vmatpush1.bf16.msra.mxu0 %v7674_v8  ;;  %v7684_v49 = vpop.permute.xlu1 %1501  ;;  %v3482_v6 = vpop.permute.xlu0 %3481 }
 0x5a6   :  { %5198 = vmatprep.subr.bf16.mxu1 %v7680_v16  ;;  %5246 = vmatprep.subr.bf16.mxu0 %v7680_v16  ;;  %v3490_v56 = vsel %vm240_vm2, %v3466_v28, %v3482_v6  ;;  %v3498_v0 = vsel %vm240_vm2, %v3482_v6, %v3466_v28  ;;  %v3558_v28 = vld [vmem:[#allocation8 + $0x58] sm:$0xff] }
 0x5a7   :  { %v3529_v63 = vmul.f32 %v3513_v36, %v3490_v56  ;;  %v3530_v58 = vmul.f32 %v3514_v42, %v3498_v0  ;;  %v3997_v0 = vld [vmem:[#allocation8 + $0x100] sm:$0xff] }
 0x5a9   :  { %v7694_v41 = vpack.c.bf16 %v3529_v63, %v3527_v32  ;;  %5200 = vmatpush1.bf16.msra.mxu1 %v7686_v3  ;;  %5248 = vmatpush1.bf16.msra.mxu0 %v7686_v3  ;;  %v7698_v22 = vpop.permute.xlu1 %1505  ;;  %v7700_v10 = vpop.permute.xlu0 %1503  ;;  %v7702_v44 = vpack.c.bf16 %v3530_v58, %v3528_v19  ;;  %v3999_v32 = vld [vmem:[#allocation8 + $0x110] sm:$0xff]  ;;  %v4002_v63 = vld [vmem:[#allocation8 + $0x128] sm:$0xff]  ;;  %v4001_v58 = vld [vmem:[#allocation8 + $0x120] sm:$0xff] }
 0x5ab   :  { %5202 = vmatprep.subr.bf16.mxu1 %v7702_v44  ;;  %5250 = vmatprep.subr.bf16.mxu0 %v7702_v44 }
 0x5ad   :  { %5204 = vmatpush1.bf16.msra.mxu1 %v7694_v41  ;;  %5252 = vmatpush1.bf16.msra.mxu0 %v7694_v41  ;;  %v7708_v15 = vpop.permute.xlu1 %1509  ;;  %v7711_v20 = vpop.permute.xlu0 %1507 }
 0x5ae   :  { %5254 = vmatprep.subr.bf16.mxu1 %v7540_v57 }
 0x5b0   :  { %3700 = vmatmul.mubr.f32.vlgmr.msra.gmra.mrb[64].mxu1 %v3547_v7  ;;  %3933 = vmatmul.mubr.f32.vlgmr.msra.gmra.mrb[80].mxu0 %v3828_v14  ;;  %v4004_v7 = vld [vmem:[#allocation8 + $0x138] sm:$0xff]  ;;  %v4003_v14 = vld [vmem:[#allocation8 + $0x130] sm:$0xff] }
 0x5b1   :  { %5256 = vmatpush1.bf16.msra.mxu1 %v7538_v52  ;;  %4694 = vmatprep.mubr.msk.f32.mxu1 %vm370_vm0, %v3550_v46  ;;  %v7717_v53 = vpop.permute.xlu1 %1513  ;;  %v7719_v57 = vpop.permute.xlu0 %1511  ;;  %v3551_v52 = vld [vmem:[#allocation8 + $0x20] sm:$0xff] }
 0x5b2   :  { %5258 = vmatprep.subr.bf16.mxu1 %v7563_v48  ;;  %4702 = vmatprep.mubr.msk.f32.mxu0 %vm370_vm0, %v3831_v30  ;;  %v3835_v48 = vld [vmem:[#allocation8 + $0xb8] sm:$0xff] }
 0x5b4   :  { %3706 = vmatmul.mubr.f32.gmra.mrb[66].mxu1 %v3549_v34  ;;  %3939 = vmatmul.mubr.f32.gmra.mrb[82].mxu0 %v3830_v12  ;;  %v4006_v34 = vld [vmem:[#allocation8 + $0x148] sm:$0xff]  ;;  %v4005_v12 = vld [vmem:[#allocation8 + $0x140] sm:$0xff] }
 0x5b5   :  { %5260 = vmatpush1.bf16.msra.mxu1 %v7561_v21  ;;  %4695 = vmatprep.mubr.msk.f32.mxu1 %vm370_vm0, %v3552_v60  ;;  %v7727_v31 = vpop.permute.xlu1 %1517  ;;  %v7729_v21 = vpop.permute.xlu0 %1515 }
 0x5b6   :  { %5262 = vmatprep.subr.bf16.mxu1 %v7586_v4  ;;  %4703 = vmatprep.mubr.msk.f32.mxu0 %vm370_vm0, %v3833_v27  ;;  %v3556_v4 = vld [vmem:[#allocation8 + $0x48] sm:$0xff] }
 0x5b8   :  { %3712 = vmatmul.mubr.f32.gmra.mrb[68].mxu1 %v3551_v52  ;;  %3945 = vmatmul.mubr.f32.gmra.mrb[84].mxu0 %v3832_v11  ;;  %v4008_v52 = vld [vmem:[#allocation8 + $0x158] sm:$0xff]  ;;  %v4007_v11 = vld [vmem:[#allocation8 + $0x150] sm:$0xff] }
 0x5b9   :  { %5264 = vmatpush1.bf16.msra.mxu1 %v7584_v24  ;;  %4696 = vmatprep.mubr.msk.f32.mxu1 %vm370_vm0, %v3554_v2  ;;  %v7736_v24 = vpop.permute.xlu1 %1521  ;;  %v7738_v23 = vpop.permute.xlu0 %1519 }
 0x5ba   :  { %5266 = vmatprep.subr.bf16.mxu1 %v7609_v29  ;;  %4704 = vmatprep.mubr.msk.f32.mxu0 %vm370_vm0, %v3835_v48  ;;  %v3557_v29 = vld [vmem:[#allocation8 + $0x50] sm:$0xff] }
 0x5bc   :  { %3718 = vmatmul.mubr.f32.gmra.mrb[70].mxu1 %v3553_v1  ;;  %3951 = vmatmul.mubr.f32.gmra.mrb[86].mxu0 %v3834_v17  ;;  %v4010_v1 = vld [vmem:[#allocation8 + $0x168] sm:$0xff]  ;;  %v4009_v17 = vld [vmem:[#allocation8 + $0x160] sm:$0xff] }
 0x5bd   :  { %5268 = vmatpush1.bf16.msra.mxu1 %v7607_v50  ;;  %4697 = vmatprep.mubr.msk.f32.mxu1 %vm370_vm0, %v3556_v4  ;;  %v3560_v50 = vld [vmem:[#allocation8 + $0x68] sm:$0xff]  ;;  %v7745_v43 = vpop.permute.xlu1 %1525  ;;  %v7747_v62 = vpop.permute.xlu0 %1523 }
 0x5be   :  { %5270 = vmatprep.subr.bf16.mxu1 %v7355_v55  ;;  %4705 = vmatprep.mubr.msk.f32.mxu0 %vm370_vm0, %v3837_v61  ;;  %v3839_v55 = vld [vmem:[#allocation8 + $0xd8] sm:$0xff] }
 0x5bf   :  { %v4012_v61 = vld [vmem:[#allocation8 + $0x178] sm:$0xff] }
 0x5c0   :  { %3724 = vmatmul.mubr.f32.gmra.mrb[72].mxu1 %v3555_v37  ;;  %3957 = vmatmul.mubr.f32.gmra.mrb[88].mxu0 %v3836_v59 }
 0x5c1   :  { %5272 = vmatpush1.bf16.msra.mxu1 %v7359_v38  ;;  %4698 = vmatprep.mubr.msk.f32.mxu1 %vm370_vm0, %v3558_v28  ;;  %v3562_v38 = vld [vmem:[#allocation8 + $0x78] sm:$0xff]  ;;  %v7756_v36 = vpop.permute.xlu1 %1529  ;;  %v7758_v42 = vpop.permute.xlu0 %1527  ;;  %v4011_v28 = vld [vmem:[#allocation8 + $0x170] sm:$0xff] }
 0x5c2   :  { %5274 = vmatprep.subr.bf16.mxu1 %v7402_v35  ;;  %4706 = vmatprep.mubr.msk.f32.mxu0 %vm370_vm0, %v3839_v55  ;;  %v3841_v35 = vld [vmem:[#allocation8 + $0xe8] sm:$0xff]  ;;  %v7822_v55 = vld [vmem:[#allocation3 + $0x1d8] sm:$0xff] }
 0x5c3   :  { %8825 = vst [vmem:[#allocation20_spill] sm:$0xff] %v7822_v55 }
 0x5c4   :  { %3730 = vmatmul.mubr.f32.gmra.mrb[74].mxu1 %v3557_v29  ;;  %3963 = vmatmul.mubr.f32.gmra.mrb[90].mxu0 %v3838_v9  ;;  %v1546_v9 = vsel %vm540_vm3, %v7758_v42, %v7719_v57 }
 0x5c5   :  { %5276 = vmatpush1.bf16.msra.mxu1 %v7406_v47  ;;  %4699 = vmatprep.mubr.msk.f32.mxu1 %vm370_vm0, %v3560_v50  ;;  %v3561_v47 = vld [vmem:[#allocation8 + $0x70] sm:$0xff]  ;;  %v7767_v6 = vpop.permute.xlu0 %1531 }
 0x5c6   :  { %5278 = vmatprep.subr.bf16.mxu1 %v7428_v40  ;;  %4707 = vmatprep.mubr.msk.f32.mxu0 %vm370_vm0, %v3841_v35  ;;  %v3843_v40 = vld [vmem:[#allocation8 + $0xf8] sm:$0xff]  ;;  %v7820_v50 = vld [vmem:[#allocation3 + $0x1d0] sm:$0xff] }
 0x5c7   :  { %8824 = vst [vmem:[#allocation33_spill] sm:$0xff] %v7820_v50  ;;  %v1575_v35 = vmul.f32 %v7820_v50, %v1546_v9 }
 0x5c8   :  { %3736 = vmatmul.mubr.f32.gmra.mrb[76].mxu1 %v3559_v33  ;;  %3969 = vmatmul.mubr.f32.gmra.mrb[92].mxu0 %v3840_v45  ;;  %v1538_v33 = vsel %vm540_vm3, %v7719_v57, %v7758_v42  ;;  %v7836_v45 = vld [vmem:[#allocation3 + $0x2d0] sm:$0xff]  ;;  %v8830_v42 = vld [vmem:[#allocation13_spill] sm:$0xff] }
 0x5c9   :  { %5280 = vmatpush1.bf16.msra.mxu1 %v7430_v25  ;;  %4700 = vmatprep.mubr.msk.f32.mxu1 %vm370_vm0, %v3562_v38  ;;  %v3842_v25 = vld [vmem:[#allocation8 + $0xf0] sm:$0xff]  ;;  %8827 = vst [vmem:[#allocation24_spill] sm:$0xff] %v7836_v45 }
 0x5ca   :  { %5282 = vmatprep.subr.bf16.mxu1 %v7439_v51  ;;  %4708 = vmatprep.mubr.msk.f32.mxu0 %vm370_vm0, %v3843_v40  ;;  %v7765_v51 = vpop.permute.xlu1 %1905 }
 0x5cc   :  { %3742 = vmatmul.mubr.f32.gmra.mrb[78].mxu1 %v3561_v47  ;;  %3975 = vmatmul.mubr.f32.gmra.mrb[94].mxu0 %v3842_v25  ;;  %v1576_v47 = vmul.f32 %v7822_v55, %v1538_v33  ;;  %v5387_v55 = vld [vmem:[#allocation3 + $0x188] sm:$0xff] }
 0x5cd   :  { %5284 = vmatpush1.bf16.msra.mxu1 %v7441_v13  ;;  %4709 = vmatprep.mubr.msk.f32.mxu1 %vm370_vm0, %v3998_v54  ;;  %v7838_v54 = vld [vmem:[#allocation3 + $0x2d8] sm:$0xff] }
 0x5ce   :  { %5286 = vmatprep.subr.bf16.mxu1 %v7650_v5  ;;  %8828 = vst [vmem:[#allocation26_spill] sm:$0xff] %v7838_v54 }
 0x5d1   :  { %5288 = vmatpush1.bf16.msra.mxu1 %v7660_v26 }
 0x5d2   :  { %5290 = vmatprep.subr.bf16.mxu1 %v7666_v39 }
 0x5d5   :  { %5292 = vmatpush1.bf16.msra.mxu1 %v7674_v8 }
 0x5d6   :  { %5294 = vmatprep.subr.bf16.mxu1 %v7680_v16  ;;  %v7772_v13 = vpop.permute.xlu1 %2016  ;;  %v7774_v56 = vpop.permute.xlu0 %2011  ;;  %v4000_v16 = vld [vmem:[#allocation8 + $0x118] sm:$0xff] }
 0x5d9   :  { %5296 = vmatpush1.bf16.msra.mxu1 %v7686_v3 }
 0x5da   :  { %5298 = vmatprep.subr.bf16.mxu1 %v7702_v44  ;;  %v7778_v5 = vpop.permute.xlu1 %4261  ;;  %v7780_v26 = vpop.permute.xlu0 %4256 }
 0x5db   :  { %8820 = vst [vmem:[#allocation15_spill] sm:$0xff] %v7778_v5  ;;  %v5388_v5 = vld [vmem:[#allocation3 + $0x1c0] sm:$0xff] }
 0x5dd   :  { %5300 = vmatpush1.bf16.msra.mxu1 %v7694_v41 }
 0x5de   :  { %v7783_v39 = vpop.permute.xlu1 %1921  ;;  %v7785_v8 = vpop.permute.xlu0 %1907 }
 0x5e0   :  { %4102 = vmatmul.mubr.f32.vlgmr.msra.gmra.mrb[80].mxu1 %v3997_v0 }
 0x5e1   :  { %4710 = vmatprep.mubr.msk.f32.mxu1 %vm370_vm0, %v4000_v16 }
 0x5e2   :  { %v7788_v19 = vpop.permute.xlu1 %2021  ;;  %v7790_v3 = vpop.permute.xlu0 %1923 }
 0x5e4   :  { %4108 = vmatmul.mubr.f32.gmra.mrb[82].mxu1 %v3999_v32  ;;  %v8829_v32 = vld [vmem:[#allocation31_spill] sm:$0xff] }
 0x5e5   :  { %4711 = vmatprep.mubr.msk.f32.mxu1 %vm370_vm0, %v4002_v63  ;;  %v1745_v57 = vadd.f32 %v8829_v32, %v1575_v35  ;;  %v1746_v63 = vadd.f32 %v8830_v42, %v1576_v47 }
 0x5e6   :  { %v7793_v41 = vpop.permute.xlu1 %1909  ;;  %v7795_v44 = vpop.permute.xlu0 %4266 }
 0x5e7   :  { %8821 = vst [vmem:[#allocation28_spill] sm:$0xff] %v7795_v44 }
 0x5e8   :  { %4114 = vmatmul.mubr.f32.gmra.mrb[84].mxu1 %v4001_v58 }
 0x5e9   :  { %4712 = vmatprep.mubr.msk.f32.mxu1 %vm370_vm0, %v4004_v7 }
 0x5ea   :  { %v7798_v46 = vpop.permute.xlu1 %2026  ;;  %v7800_v30 = vpop.permute.xlu0 %1925 }
 0x5ec   :  { %4120 = vmatmul.mubr.f32.gmra.mrb[86].mxu1 %v4003_v14 }
 0x5ed   :  { %4713 = vmatprep.mubr.msk.f32.mxu1 %vm370_vm0, %v4006_v34 }
 0x5ee   :  { %v7803_v60 = vpop.permute.xlu1 %1911  ;;  %v7805_v27 = vpop.permute.xlu0 %4271 }
 0x5ef   :  { %8822 = vst [vmem:[#allocation29_spill] sm:$0xff] %v7805_v27  ;;  %v7978_v27 = vld [vmem:[#allocation3 + $0x1b0] sm:$0xff] }
 0x5f0   :  { %4126 = vmatmul.mubr.f32.gmra.mrb[88].mxu1 %v4005_v12 }
 0x5f1   :  { %4714 = vmatprep.mubr.msk.f32.mxu1 %vm370_vm0, %v4008_v52 }
 0x5f2   :  { %v7808_v2 = vpop.permute.xlu1 %2031  ;;  %v7810_v48 = vpop.permute.xlu0 %1927 }
 0x5f4   :  { %4132 = vmatmul.mubr.f32.gmra.mrb[90].mxu1 %v4007_v11 }
 0x5f5   :  { %4715 = vmatprep.mubr.msk.f32.mxu1 %vm370_vm0, %v4010_v1 }
 0x5f6   :  { %v7813_v4 = vpop.permute.xlu1 %1913  ;;  %v7815_v37 = vpop.permute.xlu0 %4276 }
 0x5f7   :  { %8823 = vst [vmem:[#allocation37_spill] sm:$0xff] %v7815_v37 }
 0x5f8   :  { %4138 = vmatmul.mubr.f32.gmra.mrb[92].mxu1 %v4009_v17 }
 0x5f9   :  { %4716 = vmatprep.mubr.msk.f32.mxu1 %vm370_vm0, %v4012_v61 }
 0x5fa   :  { %v7818_v29 = vpop.permute.xlu0 %1929  ;;  %v2037_v59 = vpop.permute.xlu1 %2036 }
 0x5fc   :  { %4144 = vmatmul.mubr.f32.gmra.mrb[94].mxu1 %v4011_v28 }
 0x5fe   :  { %v7832_v38 = vpop.permute.xlu0 %4281  ;;  %v1916_v40 = vpop.permute.xlu1 %1915 }
 0x5ff   :  { %8826 = vst [vmem:[#allocation41_spill] sm:$0xff] %v7832_v38 }
 0x602   :  { %v1932_v25 = vpop.permute.xlu0 %1931 }
 0x603   :  { %v1942_v0 = vsel %vm946_vm4, %v1916_v40, %v1932_v25  ;;  %v1950_v16 = vsel %vm946_vm4, %v1932_v25, %v1916_v40 }
 0x604   :  { %v1979_v58 = vmul.f32 %v7836_v45, %v1942_v0  ;;  %v1980_v7 = vmul.f32 %v7838_v54, %v1950_v16  ;;  %v5385_v54 = vld [vmem:[#allocation3 + $0x1a0] sm:$0xff] }
 0x606   :  { %v1995_v14 = vadd.f32 %v1979_v58, %v1745_v57  ;;  %v1996_v34 = vadd.f32 %v1980_v7, %v1746_v63 }
 0x608   :  { %v7848_v12 = vadd.f32 %v2037_v59, %v1995_v14  ;;  %v7850_v52 = vadd.f32 %v2037_v59, %v1996_v34 }
 0x683   :  { %v3701_v11 = vpop.f32.mrb[64].mxu1  ;;  %v7852_v1 = vpop.f32.mrb[80].mxu0 }
 0x684   :  { %3748 = vrot.lane.b32.xlu0 %v3701_v11, %s5527_s2  ;;  %v3703_v17 = vpop.f32.mrb[65].mxu1  ;;  %v7855_v61 = vpop.f32.mrb[81].mxu0 }
 0x687   :  { %v3707_v28 = vpop.f32.mrb[66].mxu1  ;;  %v7857_v33 = vpop.f32.mrb[82].mxu0 }
 0x688   :  { %3764 = vrot.lane.b32.xlu0 %v3703_v17, %s5527_s2  ;;  %3750 = vrot.lane.b32.xlu1 %v3707_v28, %s5527_s2  ;;  %v3709_v9 = vpop.f32.mrb[67].mxu1  ;;  %v7861_v35 = vpop.f32.mrb[83].mxu0 }
 0x68b   :  { %v3713_v59 = vpop.f32.mrb[68].mxu1  ;;  %v7863_v47 = vpop.f32.mrb[84].mxu0 }
 0x68c   :  { %3766 = vrot.lane.b32.xlu1 %v3709_v9, %s5527_s2  ;;  %v3715_v40 = vpop.f32.mrb[69].mxu1  ;;  %3752 = vrot.lane.b32.xlu0 %v3713_v59, %s5527_s2  ;;  %v7867_v25 = vpop.f32.mrb[85].mxu0 }
 0x68f   :  { %v3719_v0 = vpop.f32.mrb[70].mxu1  ;;  %v7869_v16 = vpop.f32.mrb[86].mxu0 }
 0x690   :  { %8831 = vst [vmem:[#allocation32_spill] sm:$0xff] %v7869_v16  ;;  %3768 = vrot.lane.b32.xlu1 %v3715_v40, %s5527_s2  ;;  %v3721_v32 = vpop.f32.mrb[71].mxu1  ;;  %3754 = vrot.lane.b32.xlu0 %v3719_v0, %s5527_s2  ;;  %v7873_v57 = vpop.f32.mrb[87].mxu0  ;;  %v8850_v16 = vld [vmem:[#allocation21_spill] sm:$0xff] }
 0x691   :  { %8832 = vst [vmem:[#allocation18_spill] sm:$0xff] %v7873_v57  ;;  %v8846_v57 = vld [vmem:[#allocation22_spill] sm:$0xff] }
 0x693   :  { %v3725_v42 = vpop.f32.mrb[72].mxu1  ;;  %v7877_v7 = vpop.f32.mrb[88].mxu0 }
 0x694   :  { %3770 = vrot.lane.b32.xlu1 %v3721_v32, %s5527_s2  ;;  %v3727_v63 = vpop.f32.mrb[73].mxu1  ;;  %3756 = vrot.lane.b32.xlu0 %v3725_v42, %s5527_s2  ;;  %8833 = vst [vmem:[#allocation39_spill] sm:$0xff] %v7877_v7  ;;  %v7881_v34 = vpop.f32.mrb[89].mxu0  ;;  %v8845_v7 = vld [vmem:[#allocation16_spill] sm:$0xff] }
 0x695   :  { %8834 = vst [vmem:[#allocation35_spill] sm:$0xff] %v7881_v34 }
 0x697   :  { %v3731_v58 = vpop.f32.mrb[74].mxu1  ;;  %v7883_v17 = vpop.f32.mrb[90].mxu0 }
 0x698   :  { %3772 = vrot.lane.b32.xlu1 %v3727_v63, %s5527_s2  ;;  %v3733_v14 = vpop.f32.mrb[75].mxu1  ;;  %3758 = vrot.lane.b32.xlu0 %v3731_v58, %s5527_s2  ;;  %8835 = vst [vmem:[#allocation43_spill] sm:$0xff] %v7883_v17  ;;  %v7887_v9 = vpop.f32.mrb[91].mxu0  ;;  %v7954_v17 = vld [vmem:[#allocation3 + $0x2a8] sm:$0xff] }
 0x699   :  { %8836 = vst [vmem:[#allocation42_spill] sm:$0xff] %v7887_v9  ;;  %v7952_v9 = vld [vmem:[#allocation3 + $0x2a0] sm:$0xff]  ;;  %8841 = vst [vmem:[#allocation48_spill] sm:$0xff] %v7954_v17 }
 0x69b   :  { %v3737_v11 = vpop.f32.mrb[76].mxu1  ;;  %v7889_v40 = vpop.f32.mrb[92].mxu0 }
 0x69c   :  { %3774 = vrot.lane.b32.xlu1 %v3733_v14, %s5527_s2  ;;  %v3739_v28 = vpop.f32.mrb[77].mxu1  ;;  %3760 = vrot.lane.b32.xlu0 %v3737_v11, %s5527_s2  ;;  %8837 = vst [vmem:[#allocation44_spill] sm:$0xff] %v7889_v40  ;;  %v7893_v32 = vpop.f32.mrb[93].mxu0 }
 0x69d   :  { %8838 = vst [vmem:[#allocation45_spill] sm:$0xff] %v7893_v32 }
 0x69f   :  { %v3743_v59 = vpop.f32.mrb[78].mxu1  ;;  %v7895_v42 = vpop.f32.mrb[94].mxu0 }
 0x6a0   :  { %3776 = vrot.lane.b32.xlu1 %v3739_v28, %s5527_s2  ;;  %v3745_v0 = vpop.f32.mrb[79].mxu1  ;;  %3762 = vrot.lane.b32.xlu0 %v3743_v59, %s5527_s2  ;;  %8839 = vst [vmem:[#allocation46_spill] sm:$0xff] %v7895_v42  ;;  %v7898_v63 = vpop.f32.mrb[95].mxu0 }
 0x6a1   :  { %8840 = vst [vmem:[#allocation47_spill] sm:$0xff] %v7898_v63 }
 0x6a4   :  { %3778 = vrot.lane.b32.xlu1 %v3745_v0, %s5527_s2 }
 0x6b3   :  { %v4103_v58 = vpop.f32.mrb[80].mxu1 }
 0x6b4   :  { %4150 = vrot.lane.b32.xlu0 %v4103_v58, %s5528_s14  ;;  %v4105_v14 = vpop.f32.mrb[81].mxu1 }
 0x6b7   :  { %v4109_v11 = vpop.f32.mrb[82].mxu1 }
 0x6b8   :  { %4166 = vrot.lane.b32.xlu0 %v4105_v14, %s5528_s14  ;;  %4152 = vrot.lane.b32.xlu1 %v4109_v11, %s5528_s14  ;;  %v4111_v28 = vpop.f32.mrb[83].mxu1 }
 0x6bb   :  { %v4115_v38 = vpop.f32.mrb[84].mxu1 }
 0x6bc   :  { %4168 = vrot.lane.b32.xlu1 %v4111_v28, %s5528_s14  ;;  %4154 = vrot.lane.b32.xlu0 %v4115_v38, %s5528_s14  ;;  %v4117_v59 = vpop.f32.mrb[85].mxu1 }
 0x6bf   :  { %v4121_v42 = vpop.f32.mrb[86].mxu1 }
 0x6c0   :  { %4170 = vrot.lane.b32.xlu1 %v4117_v59, %s5528_s14  ;;  %4156 = vrot.lane.b32.xlu0 %v4121_v42, %s5528_s14  ;;  %v4123_v0 = vpop.f32.mrb[87].mxu1 }
 0x6c3   :  { %v4127_v58 = vpop.f32.mrb[88].mxu1 }
 0x6c4   :  { %4172 = vrot.lane.b32.xlu1 %v4123_v0, %s5528_s14  ;;  %4158 = vrot.lane.b32.xlu0 %v4127_v58, %s5528_s14  ;;  %v4129_v14 = vpop.f32.mrb[89].mxu1  ;;  %v7916_v0 = vld [vmem:[#allocation3 + $0x190] sm:$0xff]  ;;  %v7918_v58 = vld [vmem:[#allocation3 + $0x198] sm:$0xff] }
 0x6c7   :  { %v4133_v11 = vpop.f32.mrb[90].mxu1 }
 0x6c8   :  { %4174 = vrot.lane.b32.xlu1 %v4129_v14, %s5528_s14  ;;  %4160 = vrot.lane.b32.xlu0 %v4133_v11, %s5528_s14  ;;  %v4135_v28 = vpop.f32.mrb[91].mxu1  ;;  %v1534_v14 = vsel %vm540_vm3, %v7700_v10, %v7738_v23  ;;  %v1542_v11 = vsel %vm540_vm3, %v7738_v23, %v7700_v10  ;;  %v1543_v10 = vsel %vm540_vm3, %v7736_v24, %v7698_v22 }
 0x6c9   :  { %v1567_v23 = vmul.f32 %v7916_v0, %v1542_v11  ;;  %v1568_v32 = vmul.f32 %v7918_v58, %v1534_v14  ;;  %v7964_v14 = vpop.permute.xlu0 %4286  ;;  %v7966_v11 = vld [vmem:[#allocation3 + $0x180] sm:$0xff] }
 0x6ca   :  { %8842 = vst [vmem:[#allocation49_spill] sm:$0xff] %v7964_v14 }
 0x6cb   :  { %v4139_v38 = vpop.f32.mrb[92].mxu1 }
 0x6cc   :  { %4176 = vrot.lane.b32.xlu1 %v4135_v28, %s5528_s14  ;;  %4162 = vrot.lane.b32.xlu0 %v4139_v38, %s5528_s14  ;;  %v4141_v59 = vpop.f32.mrb[93].mxu1  ;;  %v7928_v28 = vld [vmem:[#allocation3 + $0x290] sm:$0xff]  ;;  %v7930_v38 = vld [vmem:[#allocation3 + $0x298] sm:$0xff] }
 0x6cf   :  { %v4145_v42 = vpop.f32.mrb[94].mxu1 }
 0x6d0   :  { %4178 = vrot.lane.b32.xlu1 %v4141_v59, %s5528_s14  ;;  %v4147_v63 = vpop.f32.mrb[95].mxu1  ;;  %v1946_v59 = vsel %vm946_vm4, %v7790_v3, %v7785_v8 }
 0x6d1   :  { %4180 = vrot.lane.b32.xlu0 %v4147_v63, %s5528_s14  ;;  %v1938_v63 = vsel %vm946_vm4, %v7785_v8, %v7790_v3  ;;  %v1972_v37 = vmul.f32 %v7930_v38, %v1946_v59  ;;  %v1569_v8 = vmul.f32 %v5385_v54, %v1543_v10  ;;  %v5386_v3 = vld [vmem:[#allocation3 + $0x1a8] sm:$0xff]  ;;  %v1533_v54 = vsel %vm540_vm3, %v7684_v49, %v7727_v31  ;;  %v8843_v59 = vld [vmem:[#allocation19_spill] sm:$0xff] }
 0x6d2   :  { %v1971_v40 = vmul.f32 %v7928_v28, %v1938_v63  ;;  %v1541_v63 = vsel %vm540_vm3, %v7727_v31, %v7684_v49  ;;  %v8844_v10 = vld [vmem:[#allocation23_spill] sm:$0xff]  ;;  %v1937_v49 = vsel %vm946_vm4, %v7765_v51, %v7783_v39  ;;  %v1945_v31 = vsel %vm946_vm4, %v7783_v39, %v7765_v51  ;;  %v8007_v39 = vpop.permute.xlu1 %2041 }
 0x6d3   :  { %v1565_v34 = vmul.f32 %v7966_v11, %v1541_v63  ;;  %v1566_v50 = vmul.f32 %v5387_v55, %v1533_v54  ;;  %v1739_v44 = vadd.f32 %v8845_v7, %v1569_v8  ;;  %v1940_v55 = vsel %vm946_vm4, %v7803_v60, %v7810_v48  ;;  %v8033_v8 = vpop.permute.xlu0 %1933 }
 0x6d4   :  { %4164 = vrot.lane.b32.xlu1 %v4145_v42, %s5528_s14  ;;  %v1535_v42 = vsel %vm540_vm3, %v7698_v22, %v7736_v24  ;;  %v1939_v22 = vsel %vm946_vm4, %v7793_v41, %v7800_v30  ;;  %v1947_v24 = vsel %vm946_vm4, %v7800_v30, %v7793_v41  ;;  %v1536_v41 = vsel %vm540_vm3, %v7711_v20, %v7747_v62 }
 0x6d5   :  { %v1570_v45 = vmul.f32 %v5386_v3, %v1535_v42  ;;  %v1737_v42 = vadd.f32 %v8843_v59, %v1567_v23  ;;  %v1738_v3 = vadd.f32 %v8844_v10, %v1568_v32  ;;  %v1544_v30 = vsel %vm540_vm3, %v7747_v62, %v7711_v20  ;;  %v7996_v32 = vld [vmem:[#allocation3 + $0x1b8] sm:$0xff]  ;;  %v7998_v23 = vld [vmem:[#allocation3 + $0x280] sm:$0xff]  ;;  %v8000_v59 = vld [vmem:[#allocation3 + $0x288] sm:$0xff] }
 0x6d6   :  { %v1973_v20 = vmul.f32 %v7952_v9, %v1939_v22  ;;  %v1974_v62 = vmul.f32 %v7954_v17, %v1947_v24  ;;  %v8017_v22 = vld [vmem:[#allocation3 + $0x2b0] sm:$0xff]  ;;  %v8019_v24 = vld [vmem:[#allocation3 + $0x2b8] sm:$0xff]  ;;  %v1572_v7 = vmul.f32 %v7996_v32, %v1536_v41  ;;  %v8045_v17 = vld [vmem:[#allocation3 + $0x2c0] sm:$0xff] }
 0x6d7   :  { %v1987_v10 = vadd.f32 %v1971_v40, %v1737_v42  ;;  %v1988_v14 = vadd.f32 %v1972_v37, %v1738_v3  ;;  %v1740_v51 = vadd.f32 %v8846_v57, %v1570_v45  ;;  %v1537_v40 = vsel %vm540_vm3, %v7708_v15, %v7745_v43  ;;  %8847 = vst [vmem:[#allocation50_spill] sm:$0xff] %v8019_v24 }
 0x6d8   :  { %v1545_v37 = vsel %vm540_vm3, %v7745_v43, %v7708_v15  ;;  %v1948_v45 = vsel %vm946_vm4, %v7810_v48, %v7803_v60  ;;  %v1571_v57 = vmul.f32 %v7978_v27, %v1544_v30  ;;  %v1969_v15 = vmul.f32 %v7998_v23, %v1937_v49  ;;  %v8851_v30 = vld [vmem:[#allocation14_spill] sm:$0xff] }
 0x6d9   :  { %v1970_v43 = vmul.f32 %v8000_v59, %v1945_v31  ;;  %v1989_v54 = vadd.f32 %v1973_v20, %v1739_v44  ;;  %v1990_v63 = vadd.f32 %v1974_v62, %v1740_v51  ;;  %v8036_v42 = vadd.f32 %v7772_v13, %v1987_v10  ;;  %v8047_v44 = vld [vmem:[#allocation3 + $0x2c8] sm:$0xff]  ;;  %v8852_v10 = vld [vmem:[#allocation17_spill] sm:$0xff]  ;;  %v8853_v20 = vld [vmem:[#allocation27_spill] sm:$0xff]  ;;  %v1918_v51 = vpop.permute.xlu1 %1917 }
 0x6da   :  { %v8039_v3 = vadd.f32 %v7772_v13, %v1988_v14  ;;  %v1735_v60 = vadd.f32 %v8850_v16, %v1565_v34  ;;  %v1975_v48 = vmul.f32 %v8017_v22, %v1940_v55  ;;  %v1976_v41 = vmul.f32 %v8019_v24, %v1948_v45  ;;  %v5389_v34 = vld [vmem:[#allocation3 + $0x1c8] sm:$0xff] }
 0x6db   :  { %8848 = vst [vmem:[#allocation51_spill] sm:$0xff] %v8036_v42  ;;  %v1736_v49 = vadd.f32 %v8851_v30, %v1566_v50  ;;  %v1573_v31 = vmul.f32 %v5388_v5, %v1545_v37  ;;  %v1941_v13 = vsel %vm946_vm4, %v7813_v4, %v7818_v29  ;;  %v1949_v16 = vsel %vm946_vm4, %v7818_v29, %v7813_v4 }
 0x6dc   :  { %8849 = vst [vmem:[#allocation52_spill] sm:$0xff] %v8039_v3  ;;  %v1574_v14 = vmul.f32 %v5389_v34, %v1537_v40  ;;  %v1741_v50 = vadd.f32 %v8852_v10, %v1571_v57  ;;  %v1742_v5 = vadd.f32 %v8853_v20, %v1572_v7  ;;  %v1985_v62 = vadd.f32 %v1969_v15, %v1735_v60  ;;  %v8069_v57 = vpop.permute.xlu0 %4291  ;;  %v8857_v7 = vld [vmem:[#allocation30_spill] sm:$0xff] }
 0x6dd   :  { %v1986_v37 = vadd.f32 %v1970_v43, %v1736_v49  ;;  %v2068_v55 = vadd.f32 %v8039_v3, %v8036_v42  ;;  %v8062_v45 = vadd.f32 %v7788_v19, %v1989_v54  ;;  %v8065_v30 = vadd.f32 %v7788_v19, %v1990_v63  ;;  %8856 = vst [vmem:[#allocation55_spill] sm:$0xff] %v8069_v57  ;;  %v8858_v43 = vld [vmem:[#allocation25_spill] sm:$0xff]  ;;  %v8155_v42 = vld [vmem:[#allocation3 + $0x2f8] sm:$0xff] }
 0x6de   :  { %v1991_v24 = vadd.f32 %v1975_v48, %v1741_v50  ;;  %v1992_v4 = vadd.f32 %v1976_v41, %v1742_v5  ;;  %v1977_v29 = vmul.f32 %v8045_v17, %v1941_v13  ;;  %v1978_v40 = vmul.f32 %v8047_v44, %v1949_v16  ;;  %v8081_v41 = vpop.permute.xlu1 %2046 }
 0x6df   :  { %8854 = vst [vmem:[#allocation53_spill] sm:$0xff] %v8062_v45  ;;  %8855 = vst [vmem:[#allocation54_spill] sm:$0xff] %v8065_v30  ;;  %v1743_v15 = vadd.f32 %v8857_v7, %v1573_v31  ;;  %v1744_v60 = vadd.f32 %v8858_v43, %v1574_v14  ;;  %v2071_v54 = vadd.f32 %v8065_v30, %v8062_v45  ;;  %v8867_v45 = vld [vmem:[#allocation34_spill] sm:$0xff] }
 0x6e0   :  { %v8076_v49 = vadd.f32 %v7774_v56, %v1985_v62  ;;  %v8079_v19 = vadd.f32 %v7774_v56, %v1986_v37  ;;  %v8084_v13 = vadd.f32 %v7798_v46, %v1991_v24  ;;  %v8087_v31 = vadd.f32 %v7798_v46, %v1992_v4  ;;  %v1936_v16 = vpop.permute.xlu0 %1935 }
 0x6e1   :  { %v1993_v63 = vadd.f32 %v1977_v29, %v1743_v15  ;;  %v1994_v48 = vadd.f32 %v1978_v40, %v1744_v60  ;;  %v1539_v15 = vsel %vm540_vm3, %v7717_v53, %v7756_v36  ;;  %v1547_v43 = vsel %vm540_vm3, %v7756_v36, %v7717_v53 }
 0x6e2   :  { %8859 = vst [vmem:[#allocation56_spill] sm:$0xff] %v8076_v49  ;;  %8860 = vst [vmem:[#allocation57_spill] sm:$0xff] %v8079_v19  ;;  %v2065_v34 = vadd.f32 %v8079_v19, %v8076_v49  ;;  %v2074_v14 = vadd.f32 %v8087_v31, %v8084_v13  ;;  %v1920_v50 = vpop.permute.xlu1 %1919  ;;  %v8868_v49 = vld [vmem:[#allocation36_spill] sm:$0xff] }
 0x6e3   :  { %8861 = vst [vmem:[#allocation58_spill] sm:$0xff] %v8084_v13  ;;  %8862 = vst [vmem:[#allocation31_spill] sm:$0xff] %v8087_v31  ;;  %v8094_v56 = vadd.f32 %v7808_v2, %v1993_v63  ;;  %v8097_v10 = vadd.f32 %v7808_v2, %v1994_v48  ;;  %v8123_v63 = vld [vmem:[#allocation3 + $0x2e0] sm:$0xff]  ;;  %v8125_v48 = vld [vmem:[#allocation3 + $0x2e8] sm:$0xff] }
 0x6e4   :  { %8865 = vst [vmem:[#allocation23_spill] sm:$0xff] %v8123_v63  ;;  %8866 = vst [vmem:[#allocation16_spill] sm:$0xff] %v8125_v48 }
 0x6e5   :  { %8863 = vst [vmem:[#allocation13_spill] sm:$0xff] %v8094_v56  ;;  %8864 = vst [vmem:[#allocation19_spill] sm:$0xff] %v8097_v10  ;;  %v2077_v46 = vadd.f32 %v8097_v10, %v8094_v56  ;;  %v5391_v56 = vld [vmem:[#allocation3 + $0x1e8] sm:$0xff] }
 0x6e6   :  { %v1578_v53 = vmul.f32 %v5391_v56, %v1539_v15 }
 0x6e8   :  { %v1748_v3 = vadd.f32 %v8868_v49, %v1578_v53  ;;  %v8153_v53 = vld [vmem:[#allocation3 + $0x2f0] sm:$0xff] }
 0x6f0   :  { %2069 = vadd.xlane.f32.xlu0 %v2068_v55 }
 0x6f4   :  { %2072 = vadd.xlane.f32.xlu0 %v2071_v54 }
 0x6f6   :  { %v3749_v24 = vpop.permute.xlu0 %3748 }
 0x6f8   :  { %2066 = vadd.xlane.f32.xlu1 %v2065_v34  ;;  %2075 = vadd.xlane.f32.xlu0 %v2074_v14  ;;  %v1943_v34 = vsel %vm946_vm4, %v1918_v51, %v8033_v8  ;;  %v1951_v14 = vsel %vm946_vm4, %v8033_v8, %v1918_v51  ;;  %v1540_v8 = vsel %vm540_vm3, %v7729_v21, %v7767_v6 }
 0x6f9   :  { %v1981_v36 = vmul.f32 %v8123_v63, %v1943_v34  ;;  %v1982_v31 = vmul.f32 %v8125_v48, %v1951_v14  ;;  %v1548_v51 = vsel %vm540_vm3, %v7767_v6, %v7729_v21  ;;  %v5393_v14 = vld [vmem:[#allocation3 + $0x1f8] sm:$0xff]  ;;  %v1944_v21 = vsel %vm946_vm4, %v1920_v50, %v1936_v16 }
 0x6fa   :  { %v3751_v20 = vpop.permute.xlu1 %3750  ;;  %v3765_v5 = vpop.permute.xlu0 %3764  ;;  %v1952_v6 = vsel %vm946_vm4, %v1936_v16, %v1920_v50  ;;  %v8872_v50 = vld [vmem:[#allocation40_spill] sm:$0xff]  ;;  %v1983_v57 = vmul.f32 %v8153_v53, %v1944_v21 }
 0x6fb   :  { %v1998_v15 = vadd.f32 %v1982_v31, %v1748_v3  ;;  %v3788_v49 = vsel %vm540_vm3, %v3765_v5, %v3749_v24  ;;  %v1984_v48 = vmul.f32 %v8155_v42, %v1952_v6 }
 0x6fc   :  { %2078 = vadd.xlane.f32.xlu0 %v2077_v46  ;;  %v5390_v46 = vld [vmem:[#allocation3 + $0x1e0] sm:$0xff] }
 0x6fd   :  { %v1577_v10 = vmul.f32 %v5390_v46, %v1547_v43  ;;  %v5392_v43 = vld [vmem:[#allocation3 + $0x1f0] sm:$0xff]  ;;  %v1580_v46 = vmul.f32 %v5393_v14, %v1540_v8  ;;  %v3812_v8 = vmul.f32 %v3788_v49, %v7966_v11  ;;  %v3800_v11 = vld [vmem:[#allocation3 + $0x1a0] sm:$0xff] }
 0x6fe   :  { %v3767_v62 = vpop.permute.xlu1 %3766  ;;  %v3753_v37 = vpop.permute.xlu0 %3752  ;;  %v1579_v34 = vmul.f32 %v5392_v43, %v1548_v51  ;;  %v8871_v43 = vld [vmem:[#allocation38_spill] sm:$0xff] }
 0x6ff   :  { %v1747_v19 = vadd.f32 %v8867_v45, %v1577_v10  ;;  %v3780_v45 = vsel %vm540_vm3, %v3749_v24, %v3765_v5  ;;  %v3797_v10 = vld [vmem:[#allocation3 + $0x188] sm:$0xff]  ;;  %v3781_v31 = vsel %vm540_vm3, %v3751_v20, %v3767_v62  ;;  %v3789_v24 = vsel %vm540_vm3, %v3767_v62, %v3751_v20 }
 0x700   :  { %v3813_v51 = vmul.f32 %v3797_v10, %v3780_v45  ;;  %v1749_v16 = vadd.f32 %v8871_v43, %v1579_v34  ;;  %v1750_v14 = vadd.f32 %v8872_v50, %v1580_v46  ;;  %v3814_v63 = vmul.f32 %v3789_v24, %v7916_v0 }
 0x701   :  { %v1997_v56 = vadd.f32 %v1981_v36, %v1747_v19  ;;  %v8171_v36 = vadd.f32 %v8007_v39, %v1998_v15  ;;  %v3815_v20 = vmul.f32 %v3781_v31, %v7918_v58  ;;  %v2080_v0 = vadd.f32 %v7850_v52, %v7848_v12 }
 0x702   :  { %v3769_v55 = vpop.permute.xlu1 %3768  ;;  %v8101_v4 = vpop.permute.xlu0 %3754  ;;  %v3981_v49 = vadd.f32 %v7852_v1, %v3812_v8  ;;  %v1999_v21 = vadd.f32 %v1983_v57, %v1749_v16  ;;  %v2000_v6 = vadd.f32 %v1984_v48, %v1750_v14 }
 0x703   :  { %v8168_v5 = vadd.f32 %v8007_v39, %v1997_v56  ;;  %8870 = vst [vmem:[#allocation21_spill] sm:$0xff] %v8171_v36  ;;  %v3782_v62 = vsel %vm540_vm3, %v3753_v37, %v3769_v55  ;;  %v3790_v39 = vsel %vm540_vm3, %v3769_v55, %v3753_v37  ;;  %v3801_v56 = vld [vmem:[#allocation3 + $0x1a8] sm:$0xff]  ;;  %v3982_v37 = vadd.f32 %v7855_v61, %v3813_v51 }
 0x704   :  { %v3816_v31 = vmul.f32 %v3800_v11, %v3790_v39  ;;  %v3817_v24 = vmul.f32 %v3801_v56, %v3782_v62  ;;  %v3984_v43 = vadd.f32 %v7861_v35, %v3815_v20  ;;  %v8874_v56 = vld [vmem:[#allocation15_spill] sm:$0xff] }
 0x705   :  { %8869 = vst [vmem:[#allocation22_spill] sm:$0xff] %v8168_v5  ;;  %v8192_v58 = vadd.f32 %v8171_v36, %v8168_v5 }
 0x706   :  { %v8103_v29 = vpop.permute.xlu1 %3770  ;;  %v8105_v40 = vpop.permute.xlu0 %3756  ;;  %v3985_v48 = vadd.f32 %v7863_v47, %v3816_v31  ;;  %v8875_v31 = vld [vmem:[#allocation32_spill] sm:$0xff] }
 0x707   :  { %v3783_v1 = vsel %vm540_vm3, %v8101_v4, %v8103_v29  ;;  %v3791_v61 = vsel %vm540_vm3, %v8103_v29, %v8101_v4  ;;  %v3986_v4 = vadd.f32 %v7867_v25, %v3817_v24 }
 0x708   :  { %v3818_v14 = vmul.f32 %v3791_v61, %v7978_v27  ;;  %v3819_v20 = vmul.f32 %v3783_v1, %v7996_v32  ;;  %v8879_v61 = vld [vmem:[#allocation39_spill] sm:$0xff] }
 0x70a   :  { %v8107_v2 = vpop.permute.xlu1 %3772  ;;  %v8109_v7 = vpop.permute.xlu0 %3758  ;;  %v3987_v24 = vadd.f32 %v8875_v31, %v3818_v14 }
 0x70b   :  { %v3784_v29 = vsel %vm540_vm3, %v8105_v40, %v8107_v2 }
 0x70e   :  { %v8119_v60 = vpop.permute.xlu1 %3774  ;;  %v8121_v54 = vpop.permute.xlu0 %3760 }
 0x70f   :  { %v3785_v32 = vsel %vm540_vm3, %v8109_v7, %v8119_v60 }
 0x712   :  { %v8135_v13 = vpop.permute.xlu1 %3776  ;;  %v8137_v30 = vpop.permute.xlu0 %3762 }
 0x716   :  { %v8161_v3 = vpop.permute.xlu1 %3778 }
 0x726   :  { %v4151_v19 = vpop.permute.xlu0 %4150 }
 0x72a   :  { %v4153_v15 = vpop.permute.xlu1 %4152  ;;  %v4167_v34 = vpop.permute.xlu0 %4166 }
 0x72b   :  { %v4182_v46 = vsel %vm946_vm4, %v4151_v19, %v4167_v34  ;;  %v4190_v45 = vsel %vm946_vm4, %v4167_v34, %v4151_v19  ;;  %v3983_v19 = vadd.f32 %v7857_v33, %v3814_v63 }
 0x72c   :  { %v4214_v55 = vmul.f32 %v4182_v46, %v7998_v23  ;;  %v4215_v10 = vmul.f32 %v4190_v45, %v8000_v59 }
 0x72e   :  { %v4230_v50 = vadd.f32 %v4214_v55, %v3981_v49  ;;  %v4231_v34 = vadd.f32 %v4215_v10, %v3982_v37  ;;  %v4169_v36 = vpop.permute.xlu1 %4168  ;;  %v4155_v5 = vpop.permute.xlu0 %4154 }
 0x72f   :  { %v4183_v23 = vsel %vm946_vm4, %v4153_v15, %v4169_v36  ;;  %v4191_v33 = vsel %vm946_vm4, %v4169_v36, %v4153_v15  ;;  %v8227_v36 = vadd.f32 %v8081_v41, %v1999_v21 }
 0x730   :  { %v4216_v35 = vmul.f32 %v4183_v23, %v7928_v28  ;;  %v4217_v59 = vmul.f32 %v4191_v33, %v7930_v38  ;;  %v8215_v57 = vadd.f32 %v7780_v26, %v4230_v50  ;;  %v8218_v63 = vadd.f32 %v7780_v26, %v4231_v34  ;;  %v3804_v38 = vld [vmem:[#allocation3 + $0x1c0] sm:$0xff]  ;;  %v3805_v26 = vld [vmem:[#allocation3 + $0x1c8] sm:$0xff]  ;;  %v8878_v34 = vld [vmem:[#allocation28_spill] sm:$0xff] }
 0x731   :  { %v3792_v28 = vsel %vm540_vm3, %v8107_v2, %v8105_v40  ;;  %v8873_v2 = vld [vmem:[#allocation48_spill] sm:$0xff]  ;;  %v3821_v45 = vmul.f32 %v3805_v26, %v3784_v29  ;;  %v8880_v33 = vld [vmem:[#allocation33_spill] sm:$0xff]  ;;  %v8882_v29 = vld [vmem:[#allocation35_spill] sm:$0xff] }
 0x732   :  { %v4232_v8 = vadd.f32 %v4216_v35, %v3983_v19  ;;  %v4233_v51 = vadd.f32 %v4217_v59, %v3984_v43  ;;  %v4171_v47 = vpop.permute.xlu1 %4170  ;;  %v4310_v25 = vadd.f32 %v8218_v63, %v8215_v57  ;;  %v4157_v16 = vpop.permute.xlu0 %4156  ;;  %v3820_v27 = vmul.f32 %v3804_v38, %v3792_v28  ;;  %v8876_v19 = vld [vmem:[#allocation18_spill] sm:$0xff]  ;;  %v8881_v59 = vld [vmem:[#allocation20_spill] sm:$0xff] }
 0x733   :  { %v4184_v62 = vsel %vm946_vm4, %v4155_v5, %v4171_v47  ;;  %v4192_v39 = vsel %vm946_vm4, %v4171_v47, %v4155_v5  ;;  %v8254_v5 = vadd.f32 %v8081_v41, %v2000_v6  ;;  %v3988_v43 = vadd.f32 %v8876_v19, %v3819_v20  ;;  %v3811_v19 = vld [vmem:[#allocation3 + $0x1f8] sm:$0xff] }
 0x734   :  { %v4218_v40 = vmul.f32 %v4184_v62, %v7952_v9  ;;  %v4219_v11 = vmul.f32 %v4192_v39, %v8873_v2  ;;  %4311 = vadd.xlane.f32.xlu0 %v4310_v25  ;;  %v8244_v15 = vadd.f32 %v8874_v56, %v4232_v8  ;;  %v8247_v46 = vadd.f32 %v8874_v56, %v4233_v51  ;;  %v3809_v25 = vld [vmem:[#allocation3 + $0x1e8] sm:$0xff] }
 0x735   :  { %v3793_v9 = vsel %vm540_vm3, %v8119_v60, %v8109_v7  ;;  %v8877_v7 = vld [vmem:[#allocation50_spill] sm:$0xff]  ;;  %v3989_v23 = vadd.f32 %v8879_v61, %v3820_v27  ;;  %v3990_v28 = vadd.f32 %v8882_v29, %v3821_v45  ;;  %v3786_v47 = vsel %vm540_vm3, %v8121_v54, %v8135_v13  ;;  %v8890_v61 = vld [vmem:[#allocation45_spill] sm:$0xff] }
 0x736   :  { %v4234_v49 = vadd.f32 %v4218_v40, %v3985_v48  ;;  %v4235_v37 = vadd.f32 %v4219_v11, %v3986_v4  ;;  %v4173_v55 = vpop.permute.xlu1 %4172  ;;  %v4313_v10 = vadd.f32 %v8247_v46, %v8244_v15  ;;  %v4159_v21 = vpop.permute.xlu0 %4158  ;;  %v3822_v35 = vmul.f32 %v3793_v9, %v8880_v33  ;;  %v8883_v40 = vld [vmem:[#allocation29_spill] sm:$0xff]  ;;  %v8885_v56 = vld [vmem:[#allocation42_spill] sm:$0xff] }
 0x737   :  { %v4185_v41 = vsel %vm946_vm4, %v4157_v16, %v4173_v55  ;;  %v4193_v6 = vsel %vm946_vm4, %v4173_v55, %v4157_v16  ;;  %v3823_v48 = vmul.f32 %v3785_v32, %v8881_v59  ;;  %v2086_v32 = vadd.f32 %v8254_v5, %v8227_v36 }
 0x738   :  { %v4220_v50 = vmul.f32 %v4185_v41, %v8017_v22  ;;  %v4221_v60 = vmul.f32 %v4193_v6, %v8877_v7  ;;  %4314 = vadd.xlane.f32.xlu1 %v4313_v10  ;;  %2081 = vadd.xlane.f32.xlu0 %v2080_v0  ;;  %v8271_v1 = vadd.f32 %v8878_v34, %v4234_v49  ;;  %v3808_v0 = vld [vmem:[#allocation3 + $0x1e0] sm:$0xff]  ;;  %v8887_v6 = vld [vmem:[#allocation26_spill] sm:$0xff] }
 0x739   :  { %v8277_v4 = vadd.f32 %v8878_v34, %v4235_v37  ;;  %v3794_v22 = vsel %vm540_vm3, %v8135_v13, %v8121_v54  ;;  %v8884_v54 = vld [vmem:[#allocation43_spill] sm:$0xff]  ;;  %v3992_v27 = vadd.f32 %v8885_v56, %v3823_v48  ;;  %v3787_v55 = vsel %vm540_vm3, %v8137_v30, %v8161_v3  ;;  %v8888_v7 = vld [vmem:[#allocation37_spill] sm:$0xff] }
 0x73a   :  { %v4236_v38 = vadd.f32 %v4220_v50, %v3987_v24  ;;  %v4237_v26 = vadd.f32 %v4221_v60, %v3988_v43  ;;  %v4175_v8 = vpop.permute.xlu1 %4174  ;;  %v4161_v51 = vpop.permute.xlu0 %4160  ;;  %v3991_v11 = vadd.f32 %v8884_v54, %v3822_v35  ;;  %v3824_v45 = vmul.f32 %v3808_v0, %v3794_v22  ;;  %v3810_v24 = vld [vmem:[#allocation3 + $0x1f0] sm:$0xff]  ;;  %v8886_v43 = vld [vmem:[#allocation24_spill] sm:$0xff]  ;;  %v8894_v54 = vld [vmem:[#allocation46_spill] sm:$0xff] }
 0x73b   :  { %v4186_v16 = vsel %vm946_vm4, %v4159_v21, %v4175_v8  ;;  %v4194_v14 = vsel %vm946_vm4, %v4175_v8, %v4159_v21  ;;  %v4316_v20 = vadd.f32 %v8277_v4, %v8271_v1  ;;  %v3795_v10 = vsel %vm540_vm3, %v8161_v3, %v8137_v30  ;;  %v8889_v30 = vld [vmem:[#allocation44_spill] sm:$0xff]  ;;  %v8895_v56 = vld [vmem:[#allocation47_spill] sm:$0xff] }
 0x73c   :  { %v4222_v62 = vmul.f32 %v4186_v16, %v8045_v17  ;;  %v4223_v39 = vmul.f32 %v4194_v14, %v8047_v44  ;;  %2084 = vadd.xlane.f32.xlu0 %v8192_v58  ;;  %v8298_v2 = vadd.f32 %v8883_v40, %v4236_v38  ;;  %v8301_v13 = vadd.f32 %v8883_v40, %v4237_v26  ;;  %v8891_v38 = vld [vmem:[#allocation23_spill] sm:$0xff]  ;;  %v8892_v8 = vld [vmem:[#allocation16_spill] sm:$0xff] }
 0x73d   :  { %4317 = vadd.xlane.f32.xlu1 %v4316_v20  ;;  %v3825_v17 = vmul.f32 %v3809_v25, %v3786_v47  ;;  %v3993_v3 = vadd.f32 %v8889_v30, %v3824_v45  ;;  %v3826_v29 = vmul.f32 %v3810_v24, %v3795_v10  ;;  %v8893_v25 = vld [vmem:[#allocation41_spill] sm:$0xff] }
 0x73e   :  { %v4238_v9 = vadd.f32 %v4222_v62, %v3989_v23  ;;  %v4239_v44 = vadd.f32 %v4223_v39, %v3990_v28  ;;  %v4177_v49 = vpop.permute.xlu1 %4176  ;;  %v4319_v58 = vadd.f32 %v8301_v13, %v8298_v2  ;;  %v4163_v37 = vpop.permute.xlu0 %4162  ;;  %v3827_v28 = vmul.f32 %v3811_v19, %v3787_v55 }
 0x73f   :  { %v4187_v21 = vsel %vm946_vm4, %v4161_v51, %v4177_v49  ;;  %v4195_v31 = vsel %vm946_vm4, %v4177_v49, %v4161_v51  ;;  %v3994_v23 = vadd.f32 %v8890_v61, %v3825_v17 }
 0x740   :  { %v4224_v41 = vmul.f32 %v4187_v21, %v8886_v43  ;;  %v4225_v50 = vmul.f32 %v4195_v31, %v8887_v6  ;;  %2087 = vadd.xlane.f32.xlu0 %v2086_v32  ;;  %v8324_v60 = vadd.f32 %v8888_v7, %v4238_v9  ;;  %v8327_v34 = vadd.f32 %v8888_v7, %v4239_v44  ;;  %v8896_v44 = vld [vmem:[#allocation49_spill] sm:$0xff]  ;;  %v8897_v21 = vld [vmem:[#allocation55_spill] sm:$0xff]  ;;  %v2099_v7 = vld [vmem:[%s8639_s6 + $0x8] sm:$0xff] }
 0x741   :  { %4320 = vadd.xlane.f32.xlu1 %v4319_v58 }
 0x742   :  { %v4240_v33 = vadd.f32 %v4224_v41, %v3991_v11  ;;  %v4241_v35 = vadd.f32 %v4225_v50, %v3992_v27  ;;  %v4179_v59 = vpop.permute.xlu1 %4178  ;;  %v4322_v48 = vadd.f32 %v8327_v34, %v8324_v60  ;;  %v3995_v11 = vadd.f32 %v8894_v54, %v3826_v29  ;;  %v2098_v41 = vld [vmem:[%s8639_s6] sm:$0xff] }
 0x743   :  { %v4188_v22 = vsel %vm946_vm4, %v4163_v37, %v4179_v59  ;;  %v4196_v0 = vsel %vm946_vm4, %v4179_v59, %v4163_v37  ;;  %v4181_v47 = vpop.permute.xlu0 %4180  ;;  %v3996_v27 = vadd.f32 %v8895_v56, %v3827_v28 }
 0x744   :  { %v4226_v26 = vmul.f32 %v4188_v22, %v8891_v38  ;;  %v4227_v51 = vmul.f32 %v4196_v0, %v8892_v8  ;;  %v8340_v16 = vadd.f32 %v8893_v25, %v4240_v33  ;;  %v8343_v14 = vadd.f32 %v8893_v25, %v4241_v35  ;;  %v2101_v22 = vld [vmem:[%s8639_s6 + $0x18] sm:$0xff] }
 0x745   :  { %4323 = vadd.xlane.f32.xlu1 %v4322_v48 }
 0x746   :  { %v4242_v20 = vadd.f32 %v4226_v26, %v3993_v3  ;;  %v4243_v62 = vadd.f32 %v4227_v51, %v3994_v23  ;;  %v4165_v39 = vpop.permute.xlu1 %4164  ;;  %v4325_v40 = vadd.f32 %v8343_v14, %v8340_v16  ;;  %v2100_v23 = vld [vmem:[%s8639_s6 + $0x10] sm:$0xff] }
 0x747   :  { %v4189_v45 = vsel %vm946_vm4, %v4165_v39, %v4181_v47  ;;  %v4197_v32 = vsel %vm946_vm4, %v4181_v47, %v4165_v39  ;;  %v2102_v47 = vld [vmem:[%s8639_s6 + $0x20] sm:$0xff] }
 0x748   :  { %v4228_v17 = vmul.f32 %v4189_v45, %v8153_v53  ;;  %v4229_v9 = vmul.f32 %v4197_v32, %v8155_v42  ;;  %v8356_v49 = vadd.f32 %v8896_v44, %v4242_v20  ;;  %v8359_v58 = vadd.f32 %v8896_v44, %v4243_v62  ;;  %v2103_v20 = vld [vmem:[%s8639_s6 + $0x28] sm:$0xff] }
 0x749   :  { %4326 = vadd.xlane.f32.xlu1 %v4325_v40 }
 0x74a   :  { %v4244_v37 = vadd.f32 %v4228_v17, %v3995_v11  ;;  %v4245_v55 = vadd.f32 %v4229_v9, %v3996_v27  ;;  %v4328_v10 = vadd.f32 %v8359_v58, %v8356_v49  ;;  %v2104_v27 = vld [vmem:[%s8639_s6 + $0x30] sm:$0xff] }
 0x74c   :  { %v8364_v31 = vadd.f32 %v8897_v21, %v4244_v37  ;;  %v8367_v18 = vadd.f32 %v8897_v21, %v4245_v55  ;;  %v2105_v21 = vld [vmem:[%s8639_s6 + $0x38] sm:$0xff] }
 0x74d   :  { %4329 = vadd.xlane.f32.xlu1 %v4328_v10 }
 0x74e   :  { %v4331_v42 = vadd.f32 %v8367_v18, %v8364_v31 }
 0x751   :  { %4332 = vadd.xlane.f32.xlu1 %v4331_v42 }
 0x77d   :  { %v2070_v53 = vpop.xlane.xlu0 %2069 }
 0x77e   :  { %v2091_v50 = vmul.f32 0.00390625, %v2070_v53 }
 0x780   :  { %v2107_v3 = vmul.f32 %v2099_v7, %v2091_v50 }
 0x781   :  { %v2073_v24 = vpop.xlane.xlu0 %2072 }
 0x782   :  { %v2092_v61 = vmul.f32 0.00390625, %v2073_v24  ;;  %v2116_v59 = vsel %vm2114_vm5, %v2107_v3, 0.0 }
 0x784   :  { %v2108_v48 = vmul.f32 %v2100_v23, %v2092_v61 }
 0x785   :  { %v2067_v19 = vpop.xlane.xlu1 %2066  ;;  %v2076_v6 = vpop.xlane.xlu0 %2075 }
 0x786   :  { %v2090_v43 = vmul.f32 0.00390625, %v2067_v19  ;;  %v2093_v29 = vmul.f32 0.00390625, %v2076_v6  ;;  %v2118_v38 = vsel %vm2114_vm5, %v2108_v48, 0.0 }
 0x788   :  { %v2106_v30 = vmul.f32 %v2098_v41, %v2090_v43  ;;  %v2109_v26 = vmul.f32 %v2101_v22, %v2093_v29 }
 0x789   :  { %v2079_v33 = vpop.xlane.xlu0 %2078 }
 0x78a   :  { %v2115_v35 = vsel %vm2114_vm5, %v2106_v30, 0.0  ;;  %v2094_v8 = vmul.f32 0.00390625, %v2079_v33  ;;  %v2120_v40 = vsel %vm2114_vm5, %v2109_v26, 0.0 }
 0x78b   :  { %v2117_v28 = vadd.f32 %v2116_v59, %v2115_v35 }
 0x78c   :  { %v2110_v54 = vmul.f32 %v2102_v47, %v2094_v8 }
 0x78d   :  { %v2119_v51 = vadd.f32 %v2118_v38, %v2117_v28 }
 0x78e   :  { %v2122_v9 = vsel %vm2114_vm5, %v2110_v54, 0.0 }
 0x78f   :  { %v2121_v56 = vadd.f32 %v2120_v40, %v2119_v51 }
 0x791   :  { %v2123_v55 = vadd.f32 %v2122_v9, %v2121_v56 }
 0x7c1   :  { %v4312_v0 = vpop.xlane.xlu0 %4311 }
 0x7c2   :  { %v4334_v53 = vmul.f32 0.00390625, %v4312_v0 }
 0x7c4   :  { %v4350_v35 = vmul.f32 %v4334_v53, %v2098_v41 }
 0x7c5   :  { %v4315_v25 = vpop.xlane.xlu1 %4314  ;;  %v2082_v62 = vpop.xlane.xlu0 %2081 }
 0x7c6   :  { %v2095_v39 = vmul.f32 0.00390625, %v2082_v62  ;;  %v4335_v10 = vmul.f32 0.00390625, %v4315_v25  ;;  %v4358_v51 = vsel %vm2114_vm5, %v4350_v35, 0.0 }
 0x7c8   :  { %v2111_v11 = vmul.f32 %v2103_v20, %v2095_v39  ;;  %v4351_v3 = vmul.f32 %v4335_v10, %v2099_v7 }
 0x7c9   :  { %v2085_v45 = vpop.xlane.xlu0 %2084 }
 0x7ca   :  { %v4318_v32 = vpop.xlane.xlu1 %4317  ;;  %v2096_v17 = vmul.f32 0.00390625, %v2085_v45  ;;  %v2124_v44 = vsel %vm2114_vm5, %v2111_v11, 0.0  ;;  %v4359_v26 = vsel %vm2114_vm5, %v4351_v3, 0.0 }
 0x7cb   :  { %v2125_v6 = vadd.f32 %v2124_v44, %v2123_v55  ;;  %v4336_v50 = vmul.f32 0.00390625, %v4318_v32  ;;  %v4360_v54 = vadd.f32 %v4359_v26, %v4358_v51  ;;  %v8898_v44 = vlaneseq }
 0x7cc   :  { %v2112_v37 = vmul.f32 %v2104_v27, %v2096_v17 }
 0x7cd   :  { %v2088_v42 = vpop.xlane.xlu0 %2087  ;;  %v4352_v29 = vmul.f32 %v4336_v50, %v2100_v23 }
 0x7ce   :  { %v2126_v24 = vsel %vm2114_vm5, %v2112_v37, 0.0  ;;  %v4321_v19 = vpop.xlane.xlu1 %4320  ;;  %v2097_v43 = vmul.f32 0.00390625, %v2088_v42  ;;  %v2148_v37 = vshrl.u32 %v8898_v44, 7 }
 0x7cf   :  { %v2127_v61 = vadd.f32 %v2126_v24, %v2125_v6  ;;  %v4337_v33 = vmul.f32 0.00390625, %v4321_v19  ;;  %v4361_v62 = vsel %vm2114_vm5, %v4352_v29, 0.0 }
 0x7d0   :  { %v2113_v30 = vmul.f32 %v2105_v21, %v2097_v43  ;;  %v4362_v23 = vadd.f32 %v4361_v62, %v4360_v54  ;;  %v2149_v50 = vsub.s32 0, %v2148_v37  ;;  %v2143_v54 = vld [vmem:[%s8641_s8 + $0x20] sm:$0xff] }
 0x7d1   :  { %v4353_v0 = vmul.f32 %v4337_v33, %v2101_v22 }
 0x7d2   :  { %v2128_v59 = vsel %vm2114_vm5, %v2113_v30, 0.0  ;;  %v4324_v48 = vpop.xlane.xlu1 %4323 }
 0x7d3   :  { %v2129_v28 = vadd.f32 %v2128_v59, %v2127_v61  ;;  %v4338_v38 = vmul.f32 0.00390625, %v4324_v48  ;;  %v4363_v41 = vsel %vm2114_vm5, %v4353_v0, 0.0  ;;  %v2139_v48 = vld [vmem:[%s8641_s8] sm:$0xff] }
 0x7d4   :  { %v4364_v9 = vadd.f32 %v4363_v41, %v4362_v23 }
 0x7d5   :  { %v2130_v8 = vrot.slane %v2129_v28, 4  ;;  %v4354_v7 = vmul.f32 %v4338_v38, %v2102_v47  ;;  %v2136_v47 = vld [vmem:[%s8640_s7] sm:$0x1]  ;;  %v2142_v38 = vld [vmem:[%s8641_s8 + $0x18] sm:$0xff] }
 0x7d6   :  { %v4327_v25 = vpop.xlane.xlu1 %4326 }
 0x7d7   :  { %v2131_v39 = vadd.f32 %v2130_v8, %v2129_v28  ;;  %v4339_v40 = vmul.f32 0.00390625, %v4327_v25  ;;  %v4365_v17 = vsel %vm2114_vm5, %v4354_v7, 0.0 }
 0x7d8   :  { %v4366_v53 = vadd.f32 %v4365_v17, %v4364_v9  ;;  %v2146_v17 = vld [vmem:[%s8641_s8 + $0x38] sm:$0xff]  ;;  %v4379_v9 = vld [vmem:[%s8640_s7] sm:$0x1] }
 0x7d9   :  { %v2132_v11 = vrot.slane %v2131_v39, 2  ;;  %v4355_v56 = vmul.f32 %v4339_v40, %v2103_v20  ;;  %v2144_v40 = vld [vmem:[%s8641_s8 + $0x28] sm:$0xff] }
 0x7da   :  { %v4330_v45 = vpop.xlane.xlu1 %4329 }
 0x7db   :  { %v2133_v32 = vadd.f32 %v2132_v11, %v2131_v39  ;;  %v4340_v22 = vmul.f32 0.00390625, %v4330_v45  ;;  %v4367_v10 = vsel %vm2114_vm5, %v4355_v56, 0.0 }
 0x7dc   :  { %v4368_v6 = vadd.f32 %v4367_v10, %v4366_v53 }
 0x7dd   :  { %v2134_v55 = vrot.slane %v2133_v32, 1  ;;  %v4356_v42 = vmul.f32 %v4340_v22, %v2104_v27  ;;  %v2140_v27 = vld [vmem:[%s8641_s8 + $0x8] sm:$0xff]  ;;  %v2145_v22 = vld [vmem:[%s8641_s8 + $0x30] sm:$0xff] }
 0x7de   :  { %v4333_v24 = vpop.xlane.xlu1 %4332 }
 0x7df   :  { %v2135_v20 = vadd.f32 %v2134_v55, %v2133_v32  ;;  %v4369_v19 = vsel %vm2114_vm5, %v4356_v42, 0.0  ;;  %v4341_v43 = vmul.f32 0.00390625, %v4333_v24 }
 0x7e0   :  { %v4370_v61 = vadd.f32 %v4369_v19, %v4368_v6 }
 0x7e1   :  { %v2137_v30 = vadd.f32 %v2136_v47, %v2135_v20  ;;  %v4357_v3 = vmul.f32 %v4341_v43, %v2105_v21  ;;  %v2141_v21 = vld [vmem:[%s8641_s8 + $0x10] sm:$0xff]  ;;  %s5492_s8 = scalar_lea.vmem %s4585_s1, 4096 }
 0x7e2   :  { %p5493_p10 = scmp.ne.s32.totalorder %s4585_s1, %s5492_s8  ;;  %p5498_p12 = scmp.lt.s32.totalorder %s5492_s8, %s5492_s8 }
 0x7e3   :  { %v2138_v33 = vmax.f32 %v2137_v30, 0.0  ;;  %v4371_v35 = vsel %vm2114_vm5, %v4357_v3, 0.0 }
 0x7e4   :  { %v4372_v59 = vadd.f32 %v4371_v35, %v4370_v61  ;;  %p5499_p13 = por %p5498_p12, %p5497_p11 }
 0x7e5   :  { %v2150_v29 = vrot.slane %v2138_v33, %v2149_v50 }
 0x7e6   :  { %v4373_v28 = vrot.slane %v4372_v59, 4  ;;  %p5500_p0 = pnand %p5499_p13, %p5493_p10 }
 0x7e7   :  { %v2152_v26 = vmul.f32 %v2150_v29, %v2140_v27  ;;  %v2151_v0 = vmul.f32 %v2150_v29, %v2139_v48  ;;  %v2154_v62 = vmul.f32 %v2150_v29, %v2142_v38  ;;  %v2153_v39 = vmul.f32 %v2150_v29, %v2141_v21 }
 0x7e8   :  { %v4374_v8 = vadd.f32 %v4373_v28, %v4372_v59  ;;  %v2156_v23 = vmul.f32 %v2150_v29, %v2144_v40  ;;  %v2155_v45 = vmul.f32 %v2150_v29, %v2143_v54  ;;  %v2158_v10 = vmul.f32 %v2150_v29, %v2146_v17 }
 0x7e9   :  { %v2162_v51 = vsel %vm2114_vm5, %v2152_v26, 0.0  ;;  %v2159_v25 = vsel %vm2114_vm5, %v2151_v0, 0.0  ;;  %v2168_v11 = vsel %vm2114_vm5, %v2154_v62, 0.0  ;;  %v2165_v56 = vsel %vm2114_vm5, %v2153_v39, 0.0  ;;  %v2184_v0 = vld [vmem:[%s8642_s9 + $0x8] sm:$0xff] }
 0x7ea   :  { %v4375_v7 = vrot.slane %v4374_v8, 2  ;;  %2163 = vadd.xlane.f32.xlu1 %v2162_v51  ;;  %2160 = vadd.xlane.f32.xlu0 %v2159_v25  ;;  %v2174_v37 = vsel %vm2114_vm5, %v2156_v23, 0.0  ;;  %v2171_v55 = vsel %vm2114_vm5, %v2155_v45, 0.0  ;;  %v2157_v42 = vmul.f32 %v2150_v29, %v2145_v22 }
 0x7eb   :  { %v2180_v24 = vsel %vm2114_vm5, %v2158_v10, 0.0 }
 0x7ec   :  { %v4376_v41 = vadd.f32 %v4375_v7, %v4374_v8  ;;  %v2177_v20 = vsel %vm2114_vm5, %v2157_v42, 0.0  ;;  %v2183_v8 = vld [vmem:[%s8642_s9] sm:$0xff]  ;;  %v2186_v7 = vld [vmem:[%s8642_s9 + $0x18] sm:$0xff] }
 0x7ed   :  { %v8479_v42 = vld [vmem:[%s8642_s9 + $0x38] sm:$0xff] }
 0x7ee   :  { %v4377_v32 = vrot.slane %v4376_v41, 1  ;;  %2169 = vadd.xlane.f32.xlu1 %v2168_v11  ;;  %2166 = vadd.xlane.f32.xlu0 %v2165_v56 }
 0x7f0   :  { %v4378_v44 = vadd.f32 %v4377_v32, %v4376_v41  ;;  %v2188_v32 = vld [vmem:[%s8642_s9 + $0x28] sm:$0xff] }
 0x7f2   :  { %v4380_v47 = vadd.f32 %v4379_v9, %v4378_v44  ;;  %2175 = vadd.xlane.f32.xlu1 %v2174_v37  ;;  %2172 = vadd.xlane.f32.xlu0 %v2171_v55 }
 0x7f4   :  { %v4381_v53 = vmax.f32 %v4380_v47, 0.0  ;;  %v8484_v47 = vld [vmem:[%s8642_s9 + $0x30] sm:$0xff] }
 0x7f6   :  { %v4393_v19 = vrot.slane %v4381_v53, %v2149_v50  ;;  %2181 = vadd.xlane.f32.xlu1 %v2180_v24  ;;  %2178 = vadd.xlane.f32.xlu0 %v2177_v20 }
 0x7f8   :  { %v4395_v43 = vmul.f32 %v4393_v19, %v2140_v27  ;;  %v4394_v6 = vmul.f32 %v4393_v19, %v2139_v48  ;;  %v4397_v61 = vmul.f32 %v4393_v19, %v2142_v38  ;;  %v4396_v33 = vmul.f32 %v4393_v19, %v2141_v21 }
 0x7f9   :  { %v4399_v29 = vmul.f32 %v4393_v19, %v2144_v40  ;;  %v4398_v28 = vmul.f32 %v4393_v19, %v2143_v54  ;;  %v4401_v48 = vmul.f32 %v4393_v19, %v2146_v17  ;;  %v4400_v26 = vmul.f32 %v4393_v19, %v2145_v22  ;;  %v2185_v40 = vld [vmem:[%s8642_s9 + $0x10] sm:$0xff]  ;;  %v2187_v17 = vld [vmem:[%s8642_s9 + $0x20] sm:$0xff] }
 0x7fa   :  { %v4405_v30 = vsel %vm2114_vm5, %v4395_v43, 0.0  ;;  %v4402_v3 = vsel %vm2114_vm5, %v4394_v6, 0.0  ;;  %v4411_v35 = vsel %vm2114_vm5, %v4397_v61, 0.0  ;;  %v4408_v59 = vsel %vm2114_vm5, %v4396_v33, 0.0 }
 0x7fb   :  { %4406 = vadd.xlane.f32.xlu1 %v4405_v30  ;;  %4403 = vadd.xlane.f32.xlu0 %v4402_v3  ;;  %v4417_v50 = vsel %vm2114_vm5, %v4399_v29, 0.0  ;;  %v4414_v27 = vsel %vm2114_vm5, %v4398_v28, 0.0  ;;  %v4423_v38 = vsel %vm2114_vm5, %v4401_v48, 0.0  ;;  %v4420_v21 = vsel %vm2114_vm5, %v4400_v26, 0.0 }
 0x7ff   :  { %4412 = vadd.xlane.f32.xlu1 %v4411_v35  ;;  %4409 = vadd.xlane.f32.xlu0 %v4408_v59 }
 0x803   :  { %4418 = vadd.xlane.f32.xlu1 %v4417_v50  ;;  %4415 = vadd.xlane.f32.xlu0 %v4414_v27 }
 0x807   :  { %4424 = vadd.xlane.f32.xlu1 %v4423_v38  ;;  %4421 = vadd.xlane.f32.xlu0 %v4420_v21 }
 0x877   :  { %v2164_v51 = vpop.xlane.xlu1 %2163  ;;  %v2161_v25 = vpop.xlane.xlu0 %2160 }
 0x878   :  { %v2192_v62 = vadd.f32 %v2184_v0, %v2164_v51  ;;  %v2191_v39 = vadd.f32 %v2183_v8, %v2161_v25 }
 0x87a   :  { %v4646_v54 = vmul.f32 -1.442695, %v2192_v62  ;;  %v4645_v41 = vmul.f32 -1.442695, %v2191_v39 }
 0x87b   :  { %v2170_v11 = vpop.xlane.xlu1 %2169  ;;  %v2167_v56 = vpop.xlane.xlu0 %2166 }
 0x87c   :  { %5313 = vpow2.f32 %v4646_v54  ;;  %v2194_v23 = vadd.f32 %v2186_v7, %v2170_v11  ;;  %v2193_v45 = vadd.f32 %v2185_v40, %v2167_v56 }
 0x87d   :  { %5315 = vpow2.f32 %v4645_v41 }
 0x87e   :  { %v4648_v22 = vmul.f32 -1.442695, %v2194_v23  ;;  %v4647_v9 = vmul.f32 -1.442695, %v2193_v45 }
 0x87f   :  { %v2176_v44 = vpop.xlane.xlu1 %2175  ;;  %v2173_v37 = vpop.xlane.xlu0 %2172 }
 0x880   :  { %5317 = vpow2.f32 %v4648_v22  ;;  %v2196_v55 = vadd.f32 %v2188_v32, %v2176_v44  ;;  %v2195_v10 = vadd.f32 %v2187_v17, %v2173_v37 }
 0x881   :  { %5319 = vpow2.f32 %v4647_v9 }
 0x882   :  { %v4650_v53 = vmul.f32 -1.442695, %v2196_v55  ;;  %v4649_v24 = vmul.f32 -1.442695, %v2195_v10 }
 0x883   :  { %v2182_v20 = vpop.xlane.xlu1 %2181  ;;  %v2179_v19 = vpop.xlane.xlu0 %2178 }
 0x884   :  { %5321 = vpow2.f32 %v4650_v53  ;;  %v2198_v43 = vadd.f32 %v8479_v42, %v2182_v20  ;;  %v2197_v6 = vadd.f32 %v8484_v47, %v2179_v19 }
 0x885   :  { %5323 = vpow2.f32 %v4649_v24 }
 0x886   :  { %v5314_v30 = vpop.eup %5313  ;;  %v4652_v3 = vmul.f32 -1.442695, %v2198_v43  ;;  %v4651_v35 = vmul.f32 -1.442695, %v2197_v6 }
 0x887   :  { %v5316_v61 = vpop.eup %5315  ;;  %v2224_v33 = vadd.f32 1.0, %v5314_v30 }
 0x888   :  { %v2223_v59 = vadd.f32 1.0, %v5316_v61  ;;  %5325 = vpow2.f32 %v4652_v3  ;;  %v4407_v29 = vpop.xlane.xlu1 %4406  ;;  %v4404_v28 = vpop.xlane.xlu0 %4403 }
 0x889   :  { %5327 = vrcp.f32 %v2224_v33  ;;  %v4435_v50 = vadd.f32 %v4407_v29, %v2184_v0  ;;  %v4434_v27 = vadd.f32 %v4404_v28, %v2183_v8 }
 0x88a   :  { %v5318_v48 = vpop.eup %5317  ;;  %5329 = vrcp.f32 %v2223_v59 }
 0x88b   :  { %v5320_v26 = vpop.eup %5319  ;;  %v2226_v38 = vadd.f32 1.0, %v5318_v48  ;;  %5331 = vpow2.f32 %v4651_v35  ;;  %v4718_v21 = vmul.f32 -1.442695, %v4435_v50  ;;  %v4717_v25 = vmul.f32 -1.442695, %v4434_v27 }
 0x88c   :  { %v2225_v51 = vadd.f32 1.0, %v5320_v26  ;;  %v4413_v62 = vpop.xlane.xlu1 %4412  ;;  %v4410_v39 = vpop.xlane.xlu0 %4409 }
 0x88d   :  { %5333 = vrcp.f32 %v2226_v38  ;;  %v4437_v54 = vadd.f32 %v4413_v62, %v2186_v7  ;;  %v4436_v41 = vadd.f32 %v4410_v39, %v2185_v40 }
 0x88e   :  { %v5322_v11 = vpop.eup %5321  ;;  %5335 = vrcp.f32 %v2225_v51 }
 0x88f   :  { %v5324_v56 = vpop.eup %5323  ;;  %v2228_v23 = vadd.f32 1.0, %v5322_v11  ;;  %5337 = vpow2.f32 %v4718_v21  ;;  %v4720_v0 = vmul.f32 -1.442695, %v4437_v54  ;;  %v4719_v45 = vmul.f32 -1.442695, %v4436_v41 }
 0x890   :  { %v2227_v8 = vadd.f32 1.0, %v5324_v56  ;;  %5339 = vpow2.f32 %v4717_v25  ;;  %v4419_v22 = vpop.xlane.xlu1 %4418  ;;  %v4416_v9 = vpop.xlane.xlu0 %4415 }
 0x891   :  { %5341 = vrcp.f32 %v2228_v23  ;;  %v4439_v44 = vadd.f32 %v4419_v22, %v2188_v32  ;;  %v4438_v37 = vadd.f32 %v4416_v9, %v2187_v17 }
 0x892   :  { %v5326_v55 = vpop.eup %5325  ;;  %5343 = vrcp.f32 %v2227_v8 }
 0x893   :  { %v5328_v10 = vpop.eup %5327  ;;  %v2230_v53 = vadd.f32 1.0, %v5326_v55  ;;  %5345 = vpow2.f32 %v4720_v0  ;;  %v4722_v7 = vmul.f32 -1.442695, %v4439_v44  ;;  %v4721_v40 = vmul.f32 -1.442695, %v4438_v37 }
 0x894   :  { %v5330_v24 = vpop.eup %5329  ;;  %5347 = vpow2.f32 %v4719_v45  ;;  %v4425_v20 = vpop.xlane.xlu1 %4424  ;;  %2254 = vperm.xlu1 %5312, %v5328_v10   ;;  %v8899_v10 = vld [vmem:[#allocation51_spill] sm:$0xff] }
 0x895   :  { %v4422_v19 = vpop.xlane.xlu0 %4421  ;;  %v5332_v43 = vpop.eup %5331  ;;  %5349 = vrcp.f32 %v2230_v53  ;;  %v4441_v6 = vadd.f32 %v4425_v20, %v8479_v42  ;;  %2249 = vperm.xlu0 %5311, %v5330_v24   ;;  %v8901_v20 = vld [vmem:[#allocation56_spill] sm:$0xff] }
 0x896   :  { %v4440_v30 = vadd.f32 %v4422_v19, %v8484_v47  ;;  %v2229_v32 = vadd.f32 1.0, %v5332_v43  ;;  %5351 = vpow2.f32 %v4722_v7  ;;  %v8900_v7 = vld [vmem:[#allocation52_spill] sm:$0xff]  ;;  %v8902_v43 = vld [vmem:[#allocation57_spill] sm:$0xff] }
 0x897   :  { %v5334_v17 = vpop.eup %5333  ;;  %5353 = vpow2.f32 %v4721_v40  ;;  %v4724_v3 = vmul.f32 -1.442695, %v4441_v6 }
 0x898   :  { %v4723_v61 = vmul.f32 -1.442695, %v4440_v30  ;;  %v5336_v33 = vpop.eup %5335  ;;  %5355 = vrcp.f32 %v2229_v32  ;;  %v5394_v30 = vld [vmem:[%s8633_s0 + $0x10] sm:$0xff] }
 0x899   :  { %v5338_v35 = vpop.eup %5337  ;;  %5357 = vpow2.f32 %v4724_v3  ;;  %2264 = vperm.xlu0 %5311, %v5334_v17   ;;  %2259 = vperm.xlu1 %5312, %v5336_v33   ;;  %v5395_v17 = vld [vmem:[%s8633_s0 + $0x18] sm:$0xff] }
 0x89a   :  { %v5340_v59 = vpop.eup %5339  ;;  %v4467_v29 = vadd.f32 1.0, %v5338_v35  ;;  %5359 = vpow2.f32 %v4723_v61  ;;  %v5396_v61 = vld [vmem:[%s8633_s0] sm:$0xff]  ;;  %v5397_v35 = vld [vmem:[%s8633_s0 + $0x8] sm:$0xff] }
 0x89b   :  { %v5342_v28 = vpop.eup %5341  ;;  %v4466_v42 = vadd.f32 1.0, %v5340_v59 }
 0x89c   :  { %v5344_v50 = vpop.eup %5343  ;;  %5361 = vrcp.f32 %v4467_v29 }
 0x89d   :  { %v5346_v47 = vpop.eup %5345  ;;  %5363 = vrcp.f32 %v4466_v42  ;;  %2274 = vperm.xlu0 %5311, %v5342_v28   ;;  %2269 = vperm.xlu1 %5312, %v5344_v50   ;;  %v8903_v42 = vld [vmem:[#allocation53_spill] sm:$0xff] }
 0x89e   :  { %v5348_v27 = vpop.eup %5347  ;;  %v4469_v48 = vadd.f32 1.0, %v5346_v47  ;;  %v8904_v47 = vld [vmem:[#allocation54_spill] sm:$0xff] }
 0x89f   :  { %v5350_v26 = vpop.eup %5349  ;;  %v4468_v38 = vadd.f32 1.0, %v5348_v27 }
 0x8a0   :  { %v5352_v21 = vpop.eup %5351  ;;  %5365 = vrcp.f32 %v4469_v48  ;;  %v8905_v48 = vld [vmem:[#allocation58_spill] sm:$0xff] }
 0x8a1   :  { %v5354_v51 = vpop.eup %5353  ;;  %5367 = vrcp.f32 %v4468_v38  ;;  %v4471_v25 = vadd.f32 1.0, %v5352_v21  ;;  %2284 = vperm.xlu0 %5311, %v5350_v26   ;;  %v8906_v38 = vld [vmem:[#allocation31_spill] sm:$0xff] }
 0x8a2   :  { %v5356_v62 = vpop.eup %5355  ;;  %v4470_v39 = vadd.f32 1.0, %v5354_v51  ;;  %v5398_v51 = vld [vmem:[%s8633_s0 + $0x20] sm:$0xff] }
 0x8a3   :  { %v5358_v54 = vpop.eup %5357  ;;  %5369 = vrcp.f32 %v4471_v25  ;;  %2279 = vperm.xlu1 %5312, %v5356_v62   ;;  %v5399_v62 = vld [vmem:[%s8633_s0 + $0x28] sm:$0xff] }
 0x8a4   :  { %v5360_v41 = vpop.eup %5359  ;;  %5371 = vrcp.f32 %v4470_v39  ;;  %v4473_v11 = vadd.f32 1.0, %v5358_v54  ;;  %v5400_v54 = vld [vmem:[%s8633_s0 + $0x30] sm:$0xff] }
 0x8a5   :  { %v4472_v56 = vadd.f32 1.0, %v5360_v41 }
 0x8a6   :  { %v5362_v23 = vpop.eup %5361  ;;  %5373 = vrcp.f32 %v4473_v11  ;;  %v5401_v11 = vld [vmem:[%s8633_s0 + $0x38] sm:$0xff] }
 0x8a7   :  { %v5364_v0 = vpop.eup %5363  ;;  %5375 = vrcp.f32 %v4472_v56  ;;  %4497 = vperm.xlu0 %5311, %v5362_v23  }
 0x8a8   :  { %4492 = vperm.xlu1 %5312, %v5364_v0  }
 0x8aa   :  { %v5366_v8 = vpop.eup %5365 }
 0x8ab   :  { %v5368_v45 = vpop.eup %5367  ;;  %4507 = vperm.xlu0 %5311, %v5366_v8   ;;  %v8907_v8 = vld [vmem:[#allocation13_spill] sm:$0xff] }
 0x8ac   :  { %4502 = vperm.xlu1 %5312, %v5368_v45  }
 0x8ad   :  { %v5370_v22 = vpop.eup %5369 }
 0x8ae   :  { %v5372_v9 = vpop.eup %5371 }
 0x8af   :  { %4517 = vperm.xlu0 %5311, %v5370_v22   ;;  %v8908_v22 = vld [vmem:[#allocation19_spill] sm:$0xff] }
 0x8b0   :  { %v5374_v44 = vpop.eup %5373  ;;  %4512 = vperm.xlu1 %5312, %v5372_v9  }
 0x8b1   :  { %v5376_v37 = vpop.eup %5375 }
 0x8b3   :  { %4527 = vperm.xlu0 %5311, %v5374_v44  }
 0x8b4   :  { %4522 = vperm.xlu1 %5312, %v5376_v37  }
 0x913   :  { %v2255_v55 = vpop.permute.xlu1 %2254 }
 0x914   :  { %v2289_v53 = vmul.f32 %v2255_v55, %v8899_v10  ;;  %v2290_v40 = vmul.f32 %v2255_v55, %v8900_v7  ;;  %v2250_v24 = vpop.permute.xlu0 %2249  ;;  %v5402_v55 = vld [vmem:[%s8633_s0 + $0x40] sm:$0xff] }
 0x915   :  { %v2287_v19 = vmul.f32 %v2250_v24, %v8901_v20  ;;  %v2288_v6 = vmul.f32 %v2250_v24, %v8902_v43 }
 0x916   :  { %v2305_v32 = vadd.f32 %v5394_v30, %v2289_v53  ;;  %v2306_v3 = vadd.f32 %v5395_v17, %v2290_v40  ;;  %v5403_v53 = vld [vmem:[%s8633_s0 + $0x48] sm:$0xff]  ;;  %v5404_v40 = vld [vmem:[%s8633_s0 + $0x50] sm:$0xff]  ;;  %v8910_v17 = vld [vmem:[#allocation21_spill] sm:$0xff] }
 0x917   :  { %v2303_v33 = vadd.f32 %v5396_v61, %v2287_v19  ;;  %v2304_v59 = vadd.f32 %v5397_v35, %v2288_v6  ;;  %v8909_v30 = vld [vmem:[#allocation22_spill] sm:$0xff]  ;;  %v5406_v61 = vld [vmem:[%s8633_s0 + $0x70] sm:$0xff]  ;;  %v5407_v35 = vld [vmem:[%s8633_s0 + $0x78] sm:$0xff] }
 0x918   :  { %2321 = vst [vmem:[#allocation9 + $0x10] sm:$0xff] %v2305_v32  ;;  %2322 = vst [vmem:[#allocation9 + $0x18] sm:$0xff] %v2306_v3  ;;  %v2260_v29 = vpop.permute.xlu1 %2259  ;;  %v2265_v28 = vpop.permute.xlu0 %2264 }
 0x919   :  { %2319 = vst [vmem:[#allocation9] sm:$0xff] %v2303_v33  ;;  %2320 = vst [vmem:[#allocation9 + $0x8] sm:$0xff] %v2304_v59  ;;  %v2291_v50 = vmul.f32 %v2260_v29, %v8903_v42  ;;  %v2292_v27 = vmul.f32 %v2260_v29, %v8904_v47  ;;  %v2293_v26 = vmul.f32 %v2265_v28, %v8905_v48  ;;  %v5409_v29 = vld [vmem:[%s8633_s0 + $0x68] sm:$0xff] }
 0x91a   :  { %v2294_v21 = vmul.f32 %v2265_v28, %v8906_v38  ;;  %v5410_v38 = vld [vmem:[%s8633_s0 + $0x90] sm:$0xff] }
 0x91b   :  { %v2307_v25 = vadd.f32 %v5398_v51, %v2291_v50  ;;  %v2308_v39 = vadd.f32 %v5399_v62, %v2292_v27  ;;  %v2309_v41 = vadd.f32 %v5400_v54, %v2293_v26  ;;  %v5411_v51 = vld [vmem:[%s8633_s0 + $0x98] sm:$0xff] }
 0x91c   :  { %v2310_v56 = vadd.f32 %v5401_v11, %v2294_v21  ;;  %v2270_v23 = vpop.permute.xlu1 %2269  ;;  %v2275_v0 = vpop.permute.xlu0 %2274 }
 0x91d   :  { %2323 = vst [vmem:[#allocation9 + $0x20] sm:$0xff] %v2307_v25  ;;  %2324 = vst [vmem:[#allocation9 + $0x28] sm:$0xff] %v2308_v39  ;;  %v2295_v45 = vmul.f32 %v2270_v23, %v8907_v8  ;;  %v2296_v9 = vmul.f32 %v2270_v23, %v8908_v22  ;;  %v2297_v44 = vmul.f32 %v2275_v0, %v7848_v12  ;;  %v5405_v12 = vld [vmem:[%s8633_s0 + $0x58] sm:$0xff]  ;;  %v5414_v23 = vld [vmem:[%s8633_s0 + $0xb0] sm:$0xff] }
 0x91e   :  { %2325 = vst [vmem:[#allocation9 + $0x30] sm:$0xff] %v2309_v41  ;;  %2326 = vst [vmem:[#allocation9 + $0x38] sm:$0xff] %v2310_v56  ;;  %v2298_v37 = vmul.f32 %v2275_v0, %v7850_v52  ;;  %v5415_v8 = vld [vmem:[%s8633_s0 + $0xb8] sm:$0xff] }
 0x91f   :  { %v2311_v10 = vadd.f32 %v5402_v55, %v2295_v45  ;;  %v2312_v7 = vadd.f32 %v5403_v53, %v2296_v9  ;;  %v2313_v24 = vadd.f32 %v5404_v40, %v2297_v44  ;;  %v5418_v53 = vld [vmem:[%s8633_s0 + $0xd0] sm:$0xff]  ;;  %v5419_v40 = vld [vmem:[%s8633_s0 + $0xd8] sm:$0xff] }
 0x920   :  { %v2314_v52 = vadd.f32 %v5405_v12, %v2298_v37  ;;  %v2285_v20 = vpop.permute.xlu0 %2284 }
 0x921   :  { %2327 = vst [vmem:[#allocation9 + $0x40] sm:$0xff] %v2311_v10  ;;  %2328 = vst [vmem:[#allocation9 + $0x48] sm:$0xff] %v2312_v7  ;;  %v2301_v19 = vmul.f32 %v2285_v20, %v8227_v36  ;;  %v2302_v43 = vmul.f32 %v2285_v20, %v8254_v5  ;;  %v5408_v36 = vld [vmem:[%s8633_s0 + $0x60] sm:$0xff] }
 0x922   :  { %2329 = vst [vmem:[#allocation9 + $0x50] sm:$0xff] %v2313_v24  ;;  %2330 = vst [vmem:[#allocation9 + $0x58] sm:$0xff] %v2314_v52  ;;  %v2280_v6 = vpop.permute.xlu1 %2279 }
 0x923   :  { %v2299_v32 = vmul.f32 %v2280_v6, %v8909_v30  ;;  %v2300_v3 = vmul.f32 %v2280_v6, %v8910_v17  ;;  %v2317_v33 = vadd.f32 %v5406_v61, %v2301_v19  ;;  %v2318_v59 = vadd.f32 %v5407_v35, %v2302_v43  ;;  %v5422_v30 = vld [vmem:[%s8633_s0 + $0xf0] sm:$0xff]  ;;  %v5423_v17 = vld [vmem:[%s8633_s0 + $0xf8] sm:$0xff] }
 0x925   :  { %v2315_v5 = vadd.f32 %v5408_v36, %v2299_v32  ;;  %v2316_v28 = vadd.f32 %v5409_v29, %v2300_v3  ;;  %2333 = vst [vmem:[#allocation9 + $0x70] sm:$0xff] %v2317_v33  ;;  %2334 = vst [vmem:[#allocation9 + $0x78] sm:$0xff] %v2318_v59 }
 0x926   :  { %v4498_v42 = vpop.permute.xlu0 %4497 }
 0x927   :  { %2331 = vst [vmem:[#allocation9 + $0x60] sm:$0xff] %v2315_v5  ;;  %2332 = vst [vmem:[#allocation9 + $0x68] sm:$0xff] %v2316_v28  ;;  %v4493_v50 = vpop.permute.xlu1 %4492  ;;  %v4532_v47 = vmul.f32 %v4498_v42, %v8244_v15  ;;  %v4533_v27 = vmul.f32 %v4498_v42, %v8247_v46  ;;  %v5412_v15 = vld [vmem:[%s8633_s0 + $0x80] sm:$0xff] }
 0x928   :  { %v4530_v48 = vmul.f32 %v4493_v50, %v8215_v57  ;;  %v4531_v26 = vmul.f32 %v4493_v50, %v8218_v63  ;;  %v5413_v57 = vld [vmem:[%s8633_s0 + $0x88] sm:$0xff] }
 0x929   :  { %v4548_v21 = vadd.f32 %v5410_v38, %v4532_v47  ;;  %v4549_v25 = vadd.f32 %v5411_v51, %v4533_v27 }
 0x92a   :  { %v4546_v62 = vadd.f32 %v5412_v15, %v4530_v48  ;;  %v4547_v63 = vadd.f32 %v5413_v57, %v4531_v26  ;;  %v4508_v46 = vpop.permute.xlu0 %4507 }
 0x92b   :  { %4565 = vst [vmem:[#allocation9 + $0x90] sm:$0xff] %v4548_v21  ;;  %4566 = vst [vmem:[#allocation9 + $0x98] sm:$0xff] %v4549_v25  ;;  %v4503_v39 = vpop.permute.xlu1 %4502  ;;  %v4536_v54 = vmul.f32 %v4508_v46, %v8298_v2  ;;  %v4537_v41 = vmul.f32 %v4508_v46, %v8301_v13  ;;  %v5416_v2 = vld [vmem:[%s8633_s0 + $0xa0] sm:$0xff] }
 0x92c   :  { %4563 = vst [vmem:[#allocation9 + $0x80] sm:$0xff] %v4546_v62  ;;  %4564 = vst [vmem:[#allocation9 + $0x88] sm:$0xff] %v4547_v63  ;;  %v4534_v11 = vmul.f32 %v4503_v39, %v8271_v1  ;;  %v4535_v56 = vmul.f32 %v4503_v39, %v8277_v4  ;;  %v5417_v1 = vld [vmem:[%s8633_s0 + $0xa8] sm:$0xff] }
 0x92d   :  { %v4552_v0 = vadd.f32 %v5414_v23, %v4536_v54  ;;  %v4553_v45 = vadd.f32 %v5415_v8, %v4537_v41 }
 0x92e   :  { %v4550_v13 = vadd.f32 %v5416_v2, %v4534_v11  ;;  %v4551_v4 = vadd.f32 %v5417_v1, %v4535_v56  ;;  %v4518_v22 = vpop.permute.xlu0 %4517 }
 0x92f   :  { %4569 = vst [vmem:[#allocation9 + $0xb0] sm:$0xff] %v4552_v0  ;;  %4570 = vst [vmem:[#allocation9 + $0xb8] sm:$0xff] %v4553_v45  ;;  %v4513_v9 = vpop.permute.xlu1 %4512  ;;  %v4540_v44 = vmul.f32 %v4518_v22, %v8340_v16  ;;  %v4541_v37 = vmul.f32 %v4518_v22, %v8343_v14  ;;  %v5420_v16 = vld [vmem:[%s8633_s0 + $0xc0] sm:$0xff] }
 0x930   :  { %4567 = vst [vmem:[#allocation9 + $0xa0] sm:$0xff] %v4550_v13  ;;  %4568 = vst [vmem:[#allocation9 + $0xa8] sm:$0xff] %v4551_v4  ;;  %v4538_v55 = vmul.f32 %v4513_v9, %v8324_v60  ;;  %v4539_v10 = vmul.f32 %v4513_v9, %v8327_v34  ;;  %v5421_v60 = vld [vmem:[%s8633_s0 + $0xc8] sm:$0xff] }
 0x931   :  { %v4556_v7 = vadd.f32 %v5418_v53, %v4540_v44  ;;  %v4557_v24 = vadd.f32 %v5419_v40, %v4541_v37 }
 0x932   :  { %v4554_v14 = vadd.f32 %v5420_v16, %v4538_v55  ;;  %v4555_v34 = vadd.f32 %v5421_v60, %v4539_v10  ;;  %v4528_v12 = vpop.permute.xlu0 %4527 }
 0x933   :  { %4573 = vst [vmem:[#allocation9 + $0xd0] sm:$0xff] %v4556_v7  ;;  %4574 = vst [vmem:[#allocation9 + $0xd8] sm:$0xff] %v4557_v24  ;;  %v4523_v52 = vpop.permute.xlu1 %4522  ;;  %v4544_v20 = vmul.f32 %v4528_v12, %v8364_v31  ;;  %v4545_v19 = vmul.f32 %v4528_v12, %v8367_v18  ;;  %v5424_v18 = vld [vmem:[%s8633_s0 + $0xe0] sm:$0xff] }
 0x934   :  { %4571 = vst [vmem:[#allocation9 + $0xc0] sm:$0xff] %v4554_v14  ;;  %4572 = vst [vmem:[#allocation9 + $0xc8] sm:$0xff] %v4555_v34  ;;  %v4542_v43 = vmul.f32 %v4523_v52, %v8356_v49  ;;  %v4543_v6 = vmul.f32 %v4523_v52, %v8359_v58  ;;  %v5425_v49 = vld [vmem:[%s8633_s0 + $0xe8] sm:$0xff] }
 0x935   :  { %v4560_v32 = vadd.f32 %v5422_v30, %v4544_v20  ;;  %v4561_v31 = vadd.f32 %v5423_v17, %v4545_v19 }
 0x936   :  { %v4558_v3 = vadd.f32 %v5424_v18, %v4542_v43  ;;  %v4559_v58 = vadd.f32 %v5425_v49, %v4543_v6 }
 0x937   :  { %4577 = vst [vmem:[#allocation9 + $0xf0] sm:$0xff] %v4560_v32  ;;  %4578 = vst [vmem:[#allocation9 + $0xf8] sm:$0xff] %v4561_v31 }
 0x938   :  { %4575 = vst [vmem:[#allocation9 + $0xe0] sm:$0xff] %v4558_v3  ;;  %4576 = vst [vmem:[#allocation9 + $0xe8] sm:$0xff] %v4559_v58 }
 0x939   :  { %5503 = shalt.err (!%p5500_p0)
}
 0x93a   :  { %s5504_s18 = scalar_lea.hbm %s8643_s10, 4096 }
 0x93b   :  { %p5505_p1 = scmp.ne.s32.totalorder %s8643_s10, %s5504_s18  ;;  %p5508_p2 = scmp.lt.u32.totalorder %s5504_s18, %s8643_s10 }
 0x93d   :  { %p5510_p3 = pnand %p5508_p2, %p5505_p1 }
 0x93f   :  { %5513 = shalt.err (!%p5510_p3)
}
 0x940   :  { %4590 = dma.vmem_to_hbm [thread:$0]  %s4585_s1, 4096, %s8643_s10, [#allocation5], %s5522_s25, %s5522_s25, %s5523_s26  }
 0x941   :  { %5518 = dma.done.wait [#allocation5], 4096  }
 0x942   :  { %5519 = vsyncadd [#allocation5], 4294963200 }
 0x943   :  { %4594 = vsyncpa [#allocation4], 1 }
 0x944   :  { %4595 = vsyncpa [#allocation7], 1 }
 0x945   :  { %4596 = vsyncpa [#allocation5], 1 }

</bundles_post_ra>
